<compile_context>
chip_gen: v6e
topology: v6e:2x2x1
jax: 0.10.0
libtpu: 0.0.40
codegen_flags: <defaults>
</compile_context>

<pallas_src>
import functools
import math

import numpy as np
import jax
import jax.numpy as jnp
from jax.experimental import pallas as pl
from jax.experimental.pallas import tpu as pltpu

POOL_SIZES = (1, 2, 3, 6)


# ----------------------------------------------------------------------------
# Host-built interpolation matrices (tiny, shape-static glue)
# ----------------------------------------------------------------------------
def _adaptive_pool_matrix(out_size, in_size):
    """1-D PyTorch adaptive_avg_pool bin-averaging matrix (out_size, in_size)."""
    m = np.zeros((out_size, in_size), np.float32)
    for i in range(out_size):
        start = (i * in_size) // out_size
        end = math.ceil((i + 1) * in_size / out_size)
        m[i, start:end] = 1.0 / (end - start)
    return m


def _bilinear_matrix(out_size, in_size):
    """1-D bilinear (align_corners=True) interpolation matrix (out, in)."""
    m = np.zeros((out_size, in_size), np.float32)
    if in_size == 1:
        m[:, 0] = 1.0
        return m
    scale = (in_size - 1) / (out_size - 1) if out_size > 1 else 0.0
    for o in range(out_size):
        src = o * scale
        i0 = int(math.floor(src))
        i1 = min(i0 + 1, in_size - 1)
        f = src - i0
        m[o, i0] += 1.0 - f
        m[o, i1] += f
    return m


def _round_up(x, m):
    return -(-x // m) * m


# ----------------------------------------------------------------------------
# Kernel 1: fused PSP pyramid (all 4 stages).  Identity branch is NOT copied
# through this kernel (it feeds K2 directly).  Output is lane-dense.
# ----------------------------------------------------------------------------
def _psp_pyramid_kernel(x_ref, pool_ref, w_ref, bias_ref, mask_ref, up_ref,
                        o_ref):
    xn = x_ref[0]                                                # (HW, C) bf16
    # stacked adaptive average pooling for all 4 stages: one matmul
    pooled = jnp.dot(pool_ref[...], xn,
                     preferred_element_type=jnp.float32)         # (P, C)
    # stacked 1x1 convs (BN scale folded into weights) + beta + ReLU
    y = jnp.dot(pooled.astype(jnp.bfloat16), w_ref[...],
                preferred_element_type=jnp.float32)              # (P, c4pad)
    y = jnp.maximum(y + bias_ref[...], 0.0)
    # zero cross-stage blocks + sublane-pad rows (load-bearing: keeps the
    # stacked upsample exact)
    y = y * mask_ref[...]
    # stacked bilinear (align_corners=True) upsample back to (h, w): one matmul
    up = jnp.dot(up_ref[...], y.astype(jnp.bfloat16),
                 preferred_element_type=jnp.float32)             # (HW, c4pad)
    o_ref[0] = up.astype(o_ref.dtype)


def psp_pyramid(feats, pool_all, w_stage, bias, mask, up_all):
    n, hw, c = feats.shape
    c4pad = w_stage.shape[-1]
    p = pool_all.shape[0]
    return pl.pallas_call(
        _psp_pyramid_kernel,
        out_shape=jax.ShapeDtypeStruct((n, hw, c4pad), jnp.bfloat16),
        grid=(n,),
        in_specs=[
            pl.BlockSpec((1, hw, c), lambda i: (i, 0, 0)),
            pl.BlockSpec((p, hw), lambda i: (0, 0)),
            pl.BlockSpec((c, c4pad), lambda i: (0, 0)),
            pl.BlockSpec((1, c4pad), lambda i: (0, 0)),
            pl.BlockSpec((p, c4pad), lambda i: (0, 0)),
            pl.BlockSpec((hw, p), lambda i: (0, 0)),
        ],
        out_specs=pl.BlockSpec((1, hw, c4pad), lambda i: (i, 0, 0)),
        compiler_params=pltpu.CompilerParams(
            dimension_semantics=("parallel",),
            vmem_limit_bytes=32 * 1024 * 1024),
    )(feats, pool_all, w_stage, bias, mask, up_all)


# ----------------------------------------------------------------------------
# Kernel 2: bottleneck 3x3 conv (9-tap in-VMEM reduction, halo built in VMEM
# scratch — no host jnp.pad, no f32 slab) + BN + ReLU + classifier 1x1 (+bias).
# The conv weight is split per input branch (features / pyramid).
# ----------------------------------------------------------------------------
def _bottleneck_head_kernel(xf_ref, xp_ref, wf_ref, wp_ref, bb_ref, wc_ref,
                            cb_ref, o_ref, fpad_ref, ppad_ref):
    h, w, c = xf_ref.shape[1], xf_ref.shape[2], xf_ref.shape[3]
    c4 = xp_ref.shape[3]
    # Build halo-padded slabs in bf16 VMEM scratch.  Whole-scratch zeroing is
    # trivial at this size and megacore-safe; at real resolution only the
    # 1-pixel frame would be zeroed.
    fpad_ref[...] = jnp.zeros_like(fpad_ref)
    ppad_ref[...] = jnp.zeros_like(ppad_ref)
    fpad_ref[1:h + 1, 1:w + 1, :] = xf_ref[0]
    ppad_ref[1:h + 1, 1:w + 1, :] = xp_ref[0]
    fslab = fpad_ref[...]                                # (h+2, w+2, c)  bf16
    pslab = ppad_ref[...]                                # (h+2, w+2, c4) bf16

    acc = None
    for dy in range(3):
        for dx in range(3):
            t = dy * 3 + dx
            fwin = fslab[dy:dy + h, dx:dx + w, :].reshape(h * w, c)
            pwin = pslab[dy:dy + h, dx:dx + w, :].reshape(h * w, c4)
            part = (jnp.dot(fwin, wf_ref[t],
                            preferred_element_type=jnp.float32) +
                    jnp.dot(pwin, wp_ref[t],
                            preferred_element_type=jnp.float32))
            acc = part if acc is None else acc + part
    # bottleneck BN (scale folded into weights) + ReLU; Dropout2d(0.1) = identity (eval)
    y = jnp.maximum(acc + bb_ref[...], 0.0)              # (h*w, kpad) f32
    # classifier 1x1 conv with bias (lane-padded to 128 output columns)
    out = jnp.dot(y.astype(jnp.bfloat16), wc_ref[...],
                  preferred_element_type=jnp.float32) + cb_ref[...]
    o_ref[0] = out.astype(o_ref.dtype)                   # bf16 scores


def bottleneck_head(feats, pyr, wf, wp, bb, wc, cb):
    n, h, w, c = feats.shape
    c4pad = pyr.shape[-1]
    kpad = wf.shape[-1]
    return pl.pallas_call(
        _bottleneck_head_kernel,
        out_shape=jax.ShapeDtypeStruct((n, h * w, kpad), jnp.bfloat16),
        grid=(n,),
        in_specs=[
            pl.BlockSpec((1, h, w, c), lambda i: (i, 0, 0, 0)),
            pl.BlockSpec((1, h, w, c4pad), lambda i: (i, 0, 0, 0)),
            pl.BlockSpec((9, c, kpad), lambda i: (0, 0, 0)),
            pl.BlockSpec((9, c4pad, kpad), lambda i: (0, 0, 0)),
            pl.BlockSpec((1, kpad), lambda i: (0, 0)),
            pl.BlockSpec((kpad, kpad), lambda i: (0, 0)),
            pl.BlockSpec((1, kpad), lambda i: (0, 0)),
        ],
        out_specs=pl.BlockSpec((1, h * w, kpad), lambda i: (i, 0, 0)),
        scratch_shapes=[
            pltpu.VMEM((h + 2, w + 2, c), jnp.bfloat16),
            pltpu.VMEM((h + 2, w + 2, c4pad), jnp.bfloat16),
        ],
        compiler_params=pltpu.CompilerParams(
            dimension_semantics=("parallel",),
            vmem_limit_bytes=32 * 1024 * 1024),
    )(feats, pyr, wf, wp, bb, wc, cb)


# ----------------------------------------------------------------------------
# Kernel 3a/3b: separable final bilinear resize.  The intermediate is written
# once and re-read under a different BlockSpec view of the SAME contiguous
# buffer — no XLA transpose passes, no Kronecker matrix, lane dim stays 128+.
# ----------------------------------------------------------------------------
def _resize_rows_kernel(y_ref, rh_ref, o_ref):
    # (H_out, h) @ (h, w*kpad) -> (H_out, w*kpad)
    o_ref[0] = jnp.dot(rh_ref[...], y_ref[0],
                       preferred_element_type=jnp.float32).astype(o_ref.dtype)


def resize_rows(y, rh):
    n, h, wk = y.shape
    oh = rh.shape[0]
    return pl.pallas_call(
        _resize_rows_kernel,
        out_shape=jax.ShapeDtypeStruct((n, oh, wk), jnp.bfloat16),
        grid=(n,),
        in_specs=[pl.BlockSpec((1, h, wk), lambda i: (i, 0, 0)),
                  pl.BlockSpec((oh, h), lambda i: (0, 0))],
        out_specs=pl.BlockSpec((1, oh, wk), lambda i: (i, 0, 0)),
        compiler_params=pltpu.CompilerParams(
            dimension_semantics=("parallel",)),
    )(y, rh)


def _resize_cols_kernel(t_ref, rw_ref, o_ref):
    # per output row: (W_out, w) @ (w, kpad) -> (W_out, kpad), lane-dense
    o_ref[0, 0] = jnp.dot(rw_ref[...], t_ref[0, 0],
                          preferred_element_type=jnp.float32)


def resize_cols(t, rw):
    n, oh, w, kpad = t.shape
    ow = rw.shape[0]
    return pl.pallas_call(
        _resize_cols_kernel,
        out_shape=jax.ShapeDtypeStruct((n, oh, ow, kpad), jnp.float32),
        grid=(n, oh),
        in_specs=[pl.BlockSpec((1, 1, w, kpad), lambda i, r: (i, r, 0, 0)),
                  pl.BlockSpec((ow, w), lambda i, r: (0, 0))],
        out_specs=pl.BlockSpec((1, 1, ow, kpad), lambda i, r: (i, r, 0, 0)),
        compiler_params=pltpu.CompilerParams(
            dimension_semantics=("parallel", "parallel")),
    )(t, rw)


# ----------------------------------------------------------------------------
# Parameters (mirror PSPNet.initialize_weights; BatchNorm in eval mode)
# ----------------------------------------------------------------------------
def init_params(key, in_channels, num_classes, h, w, out_h, out_w):
    n_stages = len(POOL_SIZES)
    out_c = in_channels // n_stages                    # 16
    c4 = n_stages * out_c                              # 64
    c4pad = _round_up(c4, 128)                         # 128 (lane-dense)
    kpad = 128                                         # lane-padded out width
    assert out_c <= kpad and num_classes <= kpad

    k1, k2, k3, k4 = jax.random.split(key, 4)
    bn_scale = 1.0 / math.sqrt(1.0 + 1e-5)   # gamma=1, mean=0, var=1, eps=1e-5
    bn_beta = 1e-4                           # beta init from initialize_weights

    params = {}

    # stage 1x1 convs: kaiming_normal(relu), fan_in = in_channels.
    # Stacked into one (C, c4pad) matrix; each stage's BN scale folded in.
    std1 = math.sqrt(2.0 / in_channels)
    w_st = jax.random.normal(k1, (in_channels, c4), jnp.float32) * std1
    w_st = jnp.pad(w_st * bn_scale, ((0, 0), (0, c4pad - c4)))
    params["stage_w"] = w_st.astype(jnp.bfloat16)
    sb = np.zeros((1, c4pad), np.float32)
    sb[0, :c4] = bn_beta
    params["stage_bias"] = jnp.asarray(sb)

    # stacked pool / upsample matrices + block-diagonal validity mask
    sizes = [s * s for s in POOL_SIZES]
    offs = np.concatenate([[0], np.cumsum(sizes)])      # [0,1,5,14,50]
    p_rows = _round_up(int(offs[-1]), 16)               # 64 (bf16 sublane tile)
    pool_all = np.zeros((p_rows, h * w), np.float32)
    up_all = np.zeros((h * w, p_rows), np.float32)
    mask = np.zeros((p_rows, c4pad), np.float32)
    for k, s in enumerate(POOL_SIZES):
        o = int(offs[k])
        pool_all[o:o + s * s] = np.kron(_adaptive_pool_matrix(s, h),
                                        _adaptive_pool_matrix(s, w))
        up_all[:, o:o + s * s] = np.kron(_bilinear_matrix(h, s),
                                         _bilinear_matrix(w, s))
        mask[o:o + s * s, k * out_c:(k + 1) * out_c] = 1.0
    params["pool_all"] = jnp.asarray(pool_all, jnp.bfloat16)
    params["up_all"] = jnp.asarray(up_all, jnp.bfloat16)
    params["stage_mask"] = jnp.asarray(mask, jnp.float32)

    # bottleneck 3x3 conv (no bias), own BN (scale folded, own beta).
    # fan_in = (in_channels + c4) * 9; weight split per input branch.
    ccat = in_channels + c4
    stdb = math.sqrt(2.0 / (ccat * 9))
    wb = jax.random.normal(k2, (9, ccat, out_c), jnp.float32) * stdb * bn_scale
    wf = jnp.pad(wb[:, :in_channels, :], ((0, 0), (0, 0), (0, kpad - out_c)))
    wp = jnp.pad(wb[:, in_channels:, :],
                 ((0, 0), (0, c4pad - c4), (0, kpad - out_c)))
    params["bneck_w_feat"] = wf.astype(jnp.bfloat16)
    params["bneck_w_pyr"] = wp.astype(jnp.bfloat16)
    bbias = np.zeros((1, kpad), np.float32)
    bbias[0, :out_c] = bn_beta
    params["bneck_bias"] = jnp.asarray(bbias)

    # classifier 1x1 conv: weight gets kaiming_normal via initialize_weights
    # (it is inside master_branch); bias keeps PyTorch's default uniform init.
    stdc = math.sqrt(2.0 / out_c)
    wc = jax.random.normal(k3, (out_c, num_classes), jnp.float32) * stdc
    wc = jnp.pad(wc, ((0, kpad - out_c), (0, kpad - num_classes)))
    params["cls_w"] = wc.astype(jnp.bfloat16)
    bound = 1.0 / math.sqrt(out_c)
    cb = jax.random.uniform(k4, (num_classes,), jnp.float32, -bound, bound)
    params["cls_b"] = jnp.pad(cb, (0, kpad - num_classes)).reshape(1, kpad)

    # separable final-resize matrices (align_corners=True), bf16 MXU operands
    params["resize_h"] = jnp.asarray(_bilinear_matrix(out_h, h), jnp.bfloat16)
    params["resize_w"] = jnp.asarray(_bilinear_matrix(out_w, w), jnp.bfloat16)
    return params


# ----------------------------------------------------------------------------
# Forward pass
# ----------------------------------------------------------------------------
def pspnet_forward(x_nchw, params, num_classes):
    n, c, H, W = x_nchw.shape
    # TODO(synk): resnet50 pretrained backbone omitted (identity) — see header.
    h, w = H, W
    feats = jnp.transpose(x_nchw, (0, 2, 3, 1)).astype(jnp.bfloat16)  # NHWC

    # K1: fused PSP pyramid -> (N, h*w, c4pad) bf16 (pyramid branches only)
    pyr = psp_pyramid(feats.reshape(n, h * w, c), params["pool_all"],
                      params["stage_w"], params["stage_bias"],
                      params["stage_mask"], params["up_all"])
    c4pad = pyr.shape[-1]
    pyr = pyr.reshape(n, h, w, c4pad)

    # K2: bottleneck 3x3 (split weights, in-VMEM halo) + BN + ReLU + classifier
    scores = bottleneck_head(feats, pyr, params["bneck_w_feat"],
                             params["bneck_w_pyr"], params["bneck_bias"],
                             params["cls_w"], params["cls_b"])
    kpad = scores.shape[-1]                              # (N, h*w, kpad) bf16

    # K3: separable final bilinear resize (align_corners=True), class dim
    # stays lane-padded (128) all the way; contiguous reshapes only.
    t = resize_rows(scores.reshape(n, h, w * kpad), params["resize_h"])
    oh = t.shape[1]
    t = resize_cols(t.reshape(n, oh, w, kpad), params["resize_w"])

    # final slice to real classes + NCHW layout (spec output format)
    return jnp.transpose(t[..., :num_classes], (0, 3, 1, 2))


# ----------------------------------------------------------------------------
if __name__ == "__main__":
    key = jax.random.PRNGKey(0)
    k_x, k_p = jax.random.split(key)

    # synthetic shapes: out_channel 2048 -> 64, feature map 8x8, batch 2
    N, C, H, W = 2, 64, 8, 8
    num_classes = 5

    x = jax.random.normal(k_x, (N, C, H, W), jnp.float32)
    params = init_params(k_p, C, num_classes, H, W, H, W)

    fwd = jax.jit(functools.partial(pspnet_forward, num_classes=num_classes))
    out = jax.block_until_ready(fwd(x, params))

    assert out.shape == (N, num_classes, H, W), out.shape
    assert bool(jnp.all(jnp.isfinite(out)))
    print("KERNEL_OK")
</pallas_src>

<mosaic_0001>
module attributes {stable_mosaic.version = 11 : i64} {
  func.func @_psp_pyramid_kernel(%arg0: i32, %arg1: memref<1x64x64xbf16, #tpu.memory_space<vmem>>, %arg2: memref<64x64xbf16, #tpu.memory_space<vmem>>, %arg3: memref<64x128xbf16, #tpu.memory_space<vmem>>, %arg4: memref<1x128xf32, #tpu.memory_space<vmem>>, %arg5: memref<64x128xf32, #tpu.memory_space<vmem>>, %arg6: memref<64x64xbf16, #tpu.memory_space<vmem>>, %arg7: memref<1x64x128xbf16, #tpu.memory_space<vmem>>) attributes {dimension_semantics = [#tpu.dimension_semantics<parallel>], iteration_bounds = array<i64: 2>, scalar_prefetch = 0 : i64, scratch_operands = 0 : i64, tpu.core_type = #tpu.core_type<tc>, window_params = [{transform_indices = @transform_0, window_bounds = array<i64: 1, 64, 64>}, {pipeline_mode = #tpu.pipeline_mode<synchronous>, transform_indices = @transform_1, window_bounds = array<i64: 64, 64>}, {pipeline_mode = #tpu.pipeline_mode<synchronous>, transform_indices = @transform_2, window_bounds = array<i64: 64, 128>}, {pipeline_mode = #tpu.pipeline_mode<synchronous>, transform_indices = @transform_3, window_bounds = array<i64: 1, 128>}, {pipeline_mode = #tpu.pipeline_mode<synchronous>, transform_indices = @transform_4, window_bounds = array<i64: 64, 128>}, {pipeline_mode = #tpu.pipeline_mode<synchronous>, transform_indices = @transform_5, window_bounds = array<i64: 64, 64>}, {transform_indices = @transform_6, window_bounds = array<i64: 1, 64, 128>}]} {
    %c0 = arith.constant 0 : index
    %c0_0 = arith.constant 0 : index
    %c0_1 = arith.constant 0 : index
    %0 = vector.load %arg1[%c0, %c0_0, %c0_1] : memref<1x64x64xbf16, #tpu.memory_space<vmem>>, vector<1x64x64xbf16>
    %1 = vector.shape_cast %0 : vector<1x64x64xbf16> to vector<64x64xbf16>
    %c0_2 = arith.constant 0 : index
    %c0_3 = arith.constant 0 : index
    %2 = vector.load %arg2[%c0_2, %c0_3] : memref<64x64xbf16, #tpu.memory_space<vmem>>, vector<64x64xbf16>
    %cst = arith.constant dense<0.000000e+00> : vector<64x64xf32>
    %3 = tpu.matmul %2, %1, %cst {dimension_numbers = #tpu.dot_dimension_numbers<[1], [0], [0], [1], [0, 0, 1, 1], [], []>} : vector<64x64xbf16>, vector<64x64xbf16>, vector<64x64xf32> -> vector<64x64xf32>
    %4 = arith.truncf %3 : vector<64x64xf32> to vector<64x64xbf16>
    %c0_4 = arith.constant 0 : index
    %c0_5 = arith.constant 0 : index
    %5 = vector.load %arg3[%c0_4, %c0_5] : memref<64x128xbf16, #tpu.memory_space<vmem>>, vector<64x128xbf16>
    %cst_6 = arith.constant dense<0.000000e+00> : vector<64x128xf32>
    %6 = tpu.matmul %4, %5, %cst_6 {dimension_numbers = #tpu.dot_dimension_numbers<[1], [0], [0], [1], [0, 0, 1, 1], [], []>} : vector<64x64xbf16>, vector<64x128xbf16>, vector<64x128xf32> -> vector<64x128xf32>
    %c0_7 = arith.constant 0 : index
    %c0_8 = arith.constant 0 : index
    %7 = vector.load %arg4[%c0_7, %c0_8] : memref<1x128xf32, #tpu.memory_space<vmem>>, vector<1x128xf32>
    %8 = vector.broadcast %7 : vector<1x128xf32> to vector<64x128xf32>
    %9 = arith.addf %6, %8 : vector<64x128xf32>
    %cst_9 = arith.constant 0.000000e+00 : f32
    %10 = vector.broadcast %cst_9 : f32 to vector<64x128xf32>
    %11 = arith.maximumf %9, %10 : vector<64x128xf32>
    %c0_10 = arith.constant 0 : index
    %c0_11 = arith.constant 0 : index
    %12 = vector.load %arg5[%c0_10, %c0_11] : memref<64x128xf32, #tpu.memory_space<vmem>>, vector<64x128xf32>
    %13 = arith.mulf %11, %12 : vector<64x128xf32>
    %c0_12 = arith.constant 0 : index
    %c0_13 = arith.constant 0 : index
    %14 = vector.load %arg6[%c0_12, %c0_13] : memref<64x64xbf16, #tpu.memory_space<vmem>>, vector<64x64xbf16>
    %15 = arith.truncf %13 : vector<64x128xf32> to vector<64x128xbf16>
    %cst_14 = arith.constant dense<0.000000e+00> : vector<64x128xf32>
    %16 = tpu.matmul %14, %15, %cst_14 {dimension_numbers = #tpu.dot_dimension_numbers<[1], [0], [0], [1], [0, 0, 1, 1], [], []>} : vector<64x64xbf16>, vector<64x128xbf16>, vector<64x128xf32> -> vector<64x128xf32>
    %17 = arith.truncf %16 : vector<64x128xf32> to vector<64x128xbf16>
    %c0_15 = arith.constant 0 : index
    %c0_16 = arith.constant 0 : index
    %c0_17 = arith.constant 0 : index
    %18 = vector.load %arg7[%c0_15, %c0_16, %c0_17] : memref<1x64x128xbf16, #tpu.memory_space<vmem>>, vector<1x64x128xbf16>
    %19 = vector.shape_cast %18 : vector<1x64x128xbf16> to vector<64x128xbf16>
    %20 = vector.shape_cast %17 : vector<64x128xbf16> to vector<1x64x128xbf16>
    tpu.vector_store %arg7[%c0_15, %c0_16, %c0_17], %20 {strides = array<i32>} : memref<1x64x128xbf16, #tpu.memory_space<vmem>>, vector<1x64x128xbf16>,
    return
  }
  func.func @transform_0(%arg0: i32) -> (i32, i32, i32) {
    %c0_i32 = arith.constant 0 : i32
    %c0_i32_0 = arith.constant 0 : i32
    %c0_i32_1 = arith.constant 0 : i32
    return %arg0, %c0_i32, %c0_i32_0 : i32, i32, i32
  }
  func.func @transform_1(%arg0: i32) -> (i32, i32) {
    %c0_i32 = arith.constant 0 : i32
    %c0_i32_0 = arith.constant 0 : i32
    %c0_i32_1 = arith.constant 0 : i32
    return %c0_i32, %c0_i32_0 : i32, i32
  }
  func.func @transform_2(%arg0: i32) -> (i32, i32) {
    %c0_i32 = arith.constant 0 : i32
    %c0_i32_0 = arith.constant 0 : i32
    %c0_i32_1 = arith.constant 0 : i32
    return %c0_i32, %c0_i32_0 : i32, i32
  }
  func.func @transform_3(%arg0: i32) -> (i32, i32) {
    %c0_i32 = arith.constant 0 : i32
    %c0_i32_0 = arith.constant 0 : i32
    %c0_i32_1 = arith.constant 0 : i32
    return %c0_i32, %c0_i32_0 : i32, i32
  }
  func.func @transform_4(%arg0: i32) -> (i32, i32) {
    %c0_i32 = arith.constant 0 : i32
    %c0_i32_0 = arith.constant 0 : i32
    %c0_i32_1 = arith.constant 0 : i32
    return %c0_i32, %c0_i32_0 : i32, i32
  }
  func.func @transform_5(%arg0: i32) -> (i32, i32) {
    %c0_i32 = arith.constant 0 : i32
    %c0_i32_0 = arith.constant 0 : i32
    %c0_i32_1 = arith.constant 0 : i32
    return %c0_i32, %c0_i32_0 : i32, i32
  }
  func.func @transform_6(%arg0: i32) -> (i32, i32, i32) {
    %c0_i32 = arith.constant 0 : i32
    %c0_i32_0 = arith.constant 0 : i32
    %c0_i32_1 = arith.constant 0 : i32
    return %arg0, %c0_i32, %c0_i32_0 : i32, i32, i32
  }
}

module attributes {stable_mosaic.version = 11 : i64} {
  func.func @_bottleneck_head_kernel(%arg0: i32, %arg1: memref<1x8x8x64xbf16, #tpu.memory_space<vmem>>, %arg2: memref<1x8x8x128xbf16, #tpu.memory_space<vmem>>, %arg3: memref<9x64x128xbf16, #tpu.memory_space<vmem>>, %arg4: memref<9x128x128xbf16, #tpu.memory_space<vmem>>, %arg5: memref<1x128xf32, #tpu.memory_space<vmem>>, %arg6: memref<128x128xbf16, #tpu.memory_space<vmem>>, %arg7: memref<1x128xf32, #tpu.memory_space<vmem>>, %arg8: memref<1x64x128xbf16, #tpu.memory_space<vmem>>, %arg9: memref<10x10x64xbf16, #tpu.memory_space<vmem>>, %arg10: memref<10x10x128xbf16, #tpu.memory_space<vmem>>) attributes {dimension_semantics = [#tpu.dimension_semantics<parallel>], iteration_bounds = array<i64: 2>, scalar_prefetch = 0 : i64, scratch_operands = 2 : i64, tpu.core_type = #tpu.core_type<tc>, window_params = [{transform_indices = @transform_0, window_bounds = array<i64: 1, 8, 8, 64>}, {transform_indices = @transform_1, window_bounds = array<i64: 1, 8, 8, 128>}, {pipeline_mode = #tpu.pipeline_mode<synchronous>, transform_indices = @transform_2, window_bounds = array<i64: 9, 64, 128>}, {pipeline_mode = #tpu.pipeline_mode<synchronous>, transform_indices = @transform_3, window_bounds = array<i64: 9, 128, 128>}, {pipeline_mode = #tpu.pipeline_mode<synchronous>, transform_indices = @transform_4, window_bounds = array<i64: 1, 128>}, {pipeline_mode = #tpu.pipeline_mode<synchronous>, transform_indices = @transform_5, window_bounds = array<i64: 128, 128>}, {pipeline_mode = #tpu.pipeline_mode<synchronous>, transform_indices = @transform_6, window_bounds = array<i64: 1, 128>}, {transform_indices = @transform_7, window_bounds = array<i64: 1, 64, 128>}]} {
    %cst = arith.constant 0.000000e+00 : bf16
    %0 = vector.broadcast %cst : bf16 to vector<10x10x64xbf16>
    %c0 = arith.constant 0 : index
    %c0_0 = arith.constant 0 : index
    %c0_1 = arith.constant 0 : index
    %1 = vector.load %arg9[%c0, %c0_0, %c0_1] : memref<10x10x64xbf16, #tpu.memory_space<vmem>>, vector<10x10x64xbf16>
    tpu.vector_store %arg9[%c0, %c0_0, %c0_1], %0 {strides = array<i32>} : memref<10x10x64xbf16, #tpu.memory_space<vmem>>, vector<10x10x64xbf16>,
    %cst_2 = arith.constant 0.000000e+00 : bf16
    %2 = vector.broadcast %cst_2 : bf16 to vector<10x10x128xbf16>
    %c0_3 = arith.constant 0 : index
    %c0_4 = arith.constant 0 : index
    %c0_5 = arith.constant 0 : index
    %3 = vector.load %arg10[%c0_3, %c0_4, %c0_5] : memref<10x10x128xbf16, #tpu.memory_space<vmem>>, vector<10x10x128xbf16>
    tpu.vector_store %arg10[%c0_3, %c0_4, %c0_5], %2 {strides = array<i32>} : memref<10x10x128xbf16, #tpu.memory_space<vmem>>, vector<10x10x128xbf16>,
    %c0_6 = arith.constant 0 : index
    %c0_7 = arith.constant 0 : index
    %c0_8 = arith.constant 0 : index
    %c0_9 = arith.constant 0 : index
    %4 = vector.load %arg1[%c0_6, %c0_7, %c0_8, %c0_9] : memref<1x8x8x64xbf16, #tpu.memory_space<vmem>>, vector<1x8x8x64xbf16>
    %5 = vector.shape_cast %4 : vector<1x8x8x64xbf16> to vector<8x8x64xbf16>
    %c1 = arith.constant 1 : index
    %c1_10 = arith.constant 1 : index
    %c0_11 = arith.constant 0 : index
    %6 = vector.load %arg9[%c1, %c1_10, %c0_11] : memref<10x10x64xbf16, #tpu.memory_space<vmem>>, vector<8x8x64xbf16>
    tpu.vector_store %arg9[%c1, %c1_10, %c0_11], %5 {strides = array<i32>} : memref<10x10x64xbf16, #tpu.memory_space<vmem>>, vector<8x8x64xbf16>,
    %c0_12 = arith.constant 0 : index
    %c0_13 = arith.constant 0 : index
    %c0_14 = arith.constant 0 : index
    %c0_15 = arith.constant 0 : index
    %7 = vector.load %arg2[%c0_12, %c0_13, %c0_14, %c0_15] : memref<1x8x8x128xbf16, #tpu.memory_space<vmem>>, vector<1x8x8x128xbf16>
    %8 = vector.shape_cast %7 : vector<1x8x8x128xbf16> to vector<8x8x128xbf16>
    %c1_16 = arith.constant 1 : index
    %c1_17 = arith.constant 1 : index
    %c0_18 = arith.constant 0 : index
    %9 = vector.load %arg10[%c1_16, %c1_17, %c0_18] : memref<10x10x128xbf16, #tpu.memory_space<vmem>>, vector<8x8x128xbf16>
    tpu.vector_store %arg10[%c1_16, %c1_17, %c0_18], %8 {strides = array<i32>} : memref<10x10x128xbf16, #tpu.memory_space<vmem>>, vector<8x8x128xbf16>,
    %c0_19 = arith.constant 0 : index
    %c0_20 = arith.constant 0 : index
    %c0_21 = arith.constant 0 : index
    %10 = vector.load %arg9[%c0_19, %c0_20, %c0_21] : memref<10x10x64xbf16, #tpu.memory_space<vmem>>, vector<10x10x64xbf16>
    %c0_22 = arith.constant 0 : index
    %c0_23 = arith.constant 0 : index
    %c0_24 = arith.constant 0 : index
    %11 = vector.load %arg10[%c0_22, %c0_23, %c0_24] : memref<10x10x128xbf16, #tpu.memory_space<vmem>>, vector<10x10x128xbf16>
    %12 = vector.extract_strided_slice %10 {offsets = [0, 0, 0], sizes = [8, 8, 64], strides = [1, 1, 1]} : vector<10x10x64xbf16> to vector<8x8x64xbf16>
    %13 = vector.shape_cast %12 : vector<8x8x64xbf16> to vector<64x64xbf16>
    %14 = vector.extract_strided_slice %11 {offsets = [0, 0, 0], sizes = [8, 8, 128], strides = [1, 1, 1]} : vector<10x10x128xbf16> to vector<8x8x128xbf16>
    %15 = vector.shape_cast %14 : vector<8x8x128xbf16> to vector<64x128xbf16>
    %c0_25 = arith.constant 0 : index
    %c0_26 = arith.constant 0 : index
    %c0_27 = arith.constant 0 : index
    %16 = vector.load %arg3[%c0_25, %c0_26, %c0_27] : memref<9x64x128xbf16, #tpu.memory_space<vmem>>, vector<1x64x128xbf16>
    %17 = vector.shape_cast %16 : vector<1x64x128xbf16> to vector<64x128xbf16>
    %cst_28 = arith.constant dense<0.000000e+00> : vector<64x128xf32>
    %18 = tpu.matmul %13, %17, %cst_28 {dimension_numbers = #tpu.dot_dimension_numbers<[1], [0], [0], [1], [0, 0, 1, 1], [], []>} : vector<64x64xbf16>, vector<64x128xbf16>, vector<64x128xf32> -> vector<64x128xf32>
    %c0_29 = arith.constant 0 : index
    %c0_30 = arith.constant 0 : index
    %c0_31 = arith.constant 0 : index
    %19 = vector.load %arg4[%c0_29, %c0_30, %c0_31] : memref<9x128x128xbf16, #tpu.memory_space<vmem>>, vector<1x128x128xbf16>
    %20 = vector.shape_cast %19 : vector<1x128x128xbf16> to vector<128x128xbf16>
    %cst_32 = arith.constant dense<0.000000e+00> : vector<64x128xf32>
    %21 = tpu.matmul %15, %20, %cst_32 {dimension_numbers = #tpu.dot_dimension_numbers<[1], [0], [0], [1], [0, 0, 1, 1], [], []>} : vector<64x128xbf16>, vector<128x128xbf16>, vector<64x128xf32> -> vector<64x128xf32>
    %22 = arith.addf %18, %21 : vector<64x128xf32>
    %23 = vector.extract_strided_slice %10 {offsets = [0, 1, 0], sizes = [8, 8, 64], strides = [1, 1, 1]} : vector<10x10x64xbf16> to vector<8x8x64xbf16>
    %24 = vector.shape_cast %23 : vector<8x8x64xbf16> to vector<64x64xbf16>
    %25 = vector.extract_strided_slice %11 {offsets = [0, 1, 0], sizes = [8, 8, 128], strides = [1, 1, 1]} : vector<10x10x128xbf16> to vector<8x8x128xbf16>
    %26 = vector.shape_cast %25 : vector<8x8x128xbf16> to vector<64x128xbf16>
    %c1_33 = arith.constant 1 : index
    %c0_34 = arith.constant 0 : index
    %c0_35 = arith.constant 0 : index
    %27 = vector.load %arg3[%c1_33, %c0_34, %c0_35] : memref<9x64x128xbf16, #tpu.memory_space<vmem>>, vector<1x64x128xbf16>
    %28 = vector.shape_cast %27 : vector<1x64x128xbf16> to vector<64x128xbf16>
    %cst_36 = arith.constant dense<0.000000e+00> : vector<64x128xf32>
    %29 = tpu.matmul %24, %28, %cst_36 {dimension_numbers = #tpu.dot_dimension_numbers<[1], [0], [0], [1], [0, 0, 1, 1], [], []>} : vector<64x64xbf16>, vector<64x128xbf16>, vector<64x128xf32> -> vector<64x128xf32>
    %c1_37 = arith.constant 1 : index
    %c0_38 = arith.constant 0 : index
    %c0_39 = arith.constant 0 : index
    %30 = vector.load %arg4[%c1_37, %c0_38, %c0_39] : memref<9x128x128xbf16, #tpu.memory_space<vmem>>, vector<1x128x128xbf16>
    %31 = vector.shape_cast %30 : vector<1x128x128xbf16> to vector<128x128xbf16>
    %cst_40 = arith.constant dense<0.000000e+00> : vector<64x128xf32>
    %32 = tpu.matmul %26, %31, %cst_40 {dimension_numbers = #tpu.dot_dimension_numbers<[1], [0], [0], [1], [0, 0, 1, 1], [], []>} : vector<64x128xbf16>, vector<128x128xbf16>, vector<64x128xf32> -> vector<64x128xf32>
    %33 = arith.addf %29, %32 : vector<64x128xf32>
    %34 = arith.addf %22, %33 : vector<64x128xf32>
    %35 = vector.extract_strided_slice %10 {offsets = [0, 2, 0], sizes = [8, 8, 64], strides = [1, 1, 1]} : vector<10x10x64xbf16> to vector<8x8x64xbf16>
    %36 = vector.shape_cast %35 : vector<8x8x64xbf16> to vector<64x64xbf16>
    %37 = vector.extract_strided_slice %11 {offsets = [0, 2, 0], sizes = [8, 8, 128], strides = [1, 1, 1]} : vector<10x10x128xbf16> to vector<8x8x128xbf16>
    %38 = vector.shape_cast %37 : vector<8x8x128xbf16> to vector<64x128xbf16>
    %c2 = arith.constant 2 : index
    %c0_41 = arith.constant 0 : index
    %c0_42 = arith.constant 0 : index
    %39 = vector.load %arg3[%c2, %c0_41, %c0_42] : memref<9x64x128xbf16, #tpu.memory_space<vmem>>, vector<1x64x128xbf16>
    %40 = vector.shape_cast %39 : vector<1x64x128xbf16> to vector<64x128xbf16>
    %cst_43 = arith.constant dense<0.000000e+00> : vector<64x128xf32>
    %41 = tpu.matmul %36, %40, %cst_43 {dimension_numbers = #tpu.dot_dimension_numbers<[1], [0], [0], [1], [0, 0, 1, 1], [], []>} : vector<64x64xbf16>, vector<64x128xbf16>, vector<64x128xf32> -> vector<64x128xf32>
    %c2_44 = arith.constant 2 : index
    %c0_45 = arith.constant 0 : index
    %c0_46 = arith.constant 0 : index
    %42 = vector.load %arg4[%c2_44, %c0_45, %c0_46] : memref<9x128x128xbf16, #tpu.memory_space<vmem>>, vector<1x128x128xbf16>
    %43 = vector.shape_cast %42 : vector<1x128x128xbf16> to vector<128x128xbf16>
    %cst_47 = arith.constant dense<0.000000e+00> : vector<64x128xf32>
    %44 = tpu.matmul %38, %43, %cst_47 {dimension_numbers = #tpu.dot_dimension_numbers<[1], [0], [0], [1], [0, 0, 1, 1], [], []>} : vector<64x128xbf16>, vector<128x128xbf16>, vector<64x128xf32> -> vector<64x128xf32>
    %45 = arith.addf %41, %44 : vector<64x128xf32>
    %46 = arith.addf %34, %45 : vector<64x128xf32>
    %47 = vector.extract_strided_slice %10 {offsets = [1, 0, 0], sizes = [8, 8, 64], strides = [1, 1, 1]} : vector<10x10x64xbf16> to vector<8x8x64xbf16>
    %48 = vector.shape_cast %47 : vector<8x8x64xbf16> to vector<64x64xbf16>
    %49 = vector.extract_strided_slice %11 {offsets = [1, 0, 0], sizes = [8, 8, 128], strides = [1, 1, 1]} : vector<10x10x128xbf16> to vector<8x8x128xbf16>
    %50 = vector.shape_cast %49 : vector<8x8x128xbf16> to vector<64x128xbf16>
    %c3 = arith.constant 3 : index
    %c0_48 = arith.constant 0 : index
    %c0_49 = arith.constant 0 : index
    %51 = vector.load %arg3[%c3, %c0_48, %c0_49] : memref<9x64x128xbf16, #tpu.memory_space<vmem>>, vector<1x64x128xbf16>
    %52 = vector.shape_cast %51 : vector<1x64x128xbf16> to vector<64x128xbf16>
    %cst_50 = arith.constant dense<0.000000e+00> : vector<64x128xf32>
    %53 = tpu.matmul %48, %52, %cst_50 {dimension_numbers = #tpu.dot_dimension_numbers<[1], [0], [0], [1], [0, 0, 1, 1], [], []>} : vector<64x64xbf16>, vector<64x128xbf16>, vector<64x128xf32> -> vector<64x128xf32>
    %c3_51 = arith.constant 3 : index
    %c0_52 = arith.constant 0 : index
    %c0_53 = arith.constant 0 : index
    %54 = vector.load %arg4[%c3_51, %c0_52, %c0_53] : memref<9x128x128xbf16, #tpu.memory_space<vmem>>, vector<1x128x128xbf16>
    %55 = vector.shape_cast %54 : vector<1x128x128xbf16> to vector<128x128xbf16>
    %cst_54 = arith.constant dense<0.000000e+00> : vector<64x128xf32>
    %56 = tpu.matmul %50, %55, %cst_54 {dimension_numbers = #tpu.dot_dimension_numbers<[1], [0], [0], [1], [0, 0, 1, 1], [], []>} : vector<64x128xbf16>, vector<128x128xbf16>, vector<64x128xf32> -> vector<64x128xf32>
    %57 = arith.addf %53, %56 : vector<64x128xf32>
    %58 = arith.addf %46, %57 : vector<64x128xf32>
    %59 = vector.extract_strided_slice %10 {offsets = [1, 1, 0], sizes = [8, 8, 64], strides = [1, 1, 1]} : vector<10x10x64xbf16> to vector<8x8x64xbf16>
    %60 = vector.shape_cast %59 : vector<8x8x64xbf16> to vector<64x64xbf16>
    %61 = vector.extract_strided_slice %11 {offsets = [1, 1, 0], sizes = [8, 8, 128], strides = [1, 1, 1]} : vector<10x10x128xbf16> to vector<8x8x128xbf16>
    %62 = vector.shape_cast %61 : vector<8x8x128xbf16> to vector<64x128xbf16>
    %c4 = arith.constant 4 : index
    %c0_55 = arith.constant 0 : index
    %c0_56 = arith.constant 0 : index
    %63 = vector.load %arg3[%c4, %c0_55, %c0_56] : memref<9x64x128xbf16, #tpu.memory_space<vmem>>, vector<1x64x128xbf16>
    %64 = vector.shape_cast %63 : vector<1x64x128xbf16> to vector<64x128xbf16>
    %cst_57 = arith.constant dense<0.000000e+00> : vector<64x128xf32>
    %65 = tpu.matmul %60, %64, %cst_57 {dimension_numbers = #tpu.dot_dimension_numbers<[1], [0], [0], [1], [0, 0, 1, 1], [], []>} : vector<64x64xbf16>, vector<64x128xbf16>, vector<64x128xf32> -> vector<64x128xf32>
    %c4_58 = arith.constant 4 : index
    %c0_59 = arith.constant 0 : index
    %c0_60 = arith.constant 0 : index
    %66 = vector.load %arg4[%c4_58, %c0_59, %c0_60] : memref<9x128x128xbf16, #tpu.memory_space<vmem>>, vector<1x128x128xbf16>
    %67 = vector.shape_cast %66 : vector<1x128x128xbf16> to vector<128x128xbf16>
    %cst_61 = arith.constant dense<0.000000e+00> : vector<64x128xf32>
    %68 = tpu.matmul %62, %67, %cst_61 {dimension_numbers = #tpu.dot_dimension_numbers<[1], [0], [0], [1], [0, 0, 1, 1], [], []>} : vector<64x128xbf16>, vector<128x128xbf16>, vector<64x128xf32> -> vector<64x128xf32>
    %69 = arith.addf %65, %68 : vector<64x128xf32>
    %70 = arith.addf %58, %69 : vector<64x128xf32>
    %71 = vector.extract_strided_slice %10 {offsets = [1, 2, 0], sizes = [8, 8, 64], strides = [1, 1, 1]} : vector<10x10x64xbf16> to vector<8x8x64xbf16>
    %72 = vector.shape_cast %71 : vector<8x8x64xbf16> to vector<64x64xbf16>
    %73 = vector.extract_strided_slice %11 {offsets = [1, 2, 0], sizes = [8, 8, 128], strides = [1, 1, 1]} : vector<10x10x128xbf16> to vector<8x8x128xbf16>
    %74 = vector.shape_cast %73 : vector<8x8x128xbf16> to vector<64x128xbf16>
    %c5 = arith.constant 5 : index
    %c0_62 = arith.constant 0 : index
    %c0_63 = arith.constant 0 : index
    %75 = vector.load %arg3[%c5, %c0_62, %c0_63] : memref<9x64x128xbf16, #tpu.memory_space<vmem>>, vector<1x64x128xbf16>
    %76 = vector.shape_cast %75 : vector<1x64x128xbf16> to vector<64x128xbf16>
    %cst_64 = arith.constant dense<0.000000e+00> : vector<64x128xf32>
    %77 = tpu.matmul %72, %76, %cst_64 {dimension_numbers = #tpu.dot_dimension_numbers<[1], [0], [0], [1], [0, 0, 1, 1], [], []>} : vector<64x64xbf16>, vector<64x128xbf16>, vector<64x128xf32> -> vector<64x128xf32>
    %c5_65 = arith.constant 5 : index
    %c0_66 = arith.constant 0 : index
    %c0_67 = arith.constant 0 : index
    %78 = vector.load %arg4[%c5_65, %c0_66, %c0_67] : memref<9x128x128xbf16, #tpu.memory_space<vmem>>, vector<1x128x128xbf16>
    %79 = vector.shape_cast %78 : vector<1x128x128xbf16> to vector<128x128xbf16>
    %cst_68 = arith.constant dense<0.000000e+00> : vector<64x128xf32>
    %80 = tpu.matmul %74, %79, %cst_68 {dimension_numbers = #tpu.dot_dimension_numbers<[1], [0], [0], [1], [0, 0, 1, 1], [], []>} : vector<64x128xbf16>, vector<128x128xbf16>, vector<64x128xf32> -> vector<64x128xf32>
    %81 = arith.addf %77, %80 : vector<64x128xf32>
    %82 = arith.addf %70, %81 : vector<64x128xf32>
    %83 = vector.extract_strided_slice %10 {offsets = [2, 0, 0], sizes = [8, 8, 64], strides = [1, 1, 1]} : vector<10x10x64xbf16> to vector<8x8x64xbf16>
    %84 = vector.shape_cast %83 : vector<8x8x64xbf16> to vector<64x64xbf16>
    %85 = vector.extract_strided_slice %11 {offsets = [2, 0, 0], sizes = [8, 8, 128], strides = [1, 1, 1]} : vector<10x10x128xbf16> to vector<8x8x128xbf16>
    %86 = vector.shape_cast %85 : vector<8x8x128xbf16> to vector<64x128xbf16>
    %c6 = arith.constant 6 : index
    %c0_69 = arith.constant 0 : index
    %c0_70 = arith.constant 0 : index
    %87 = vector.load %arg3[%c6, %c0_69, %c0_70] : memref<9x64x128xbf16, #tpu.memory_space<vmem>>, vector<1x64x128xbf16>
    %88 = vector.shape_cast %87 : vector<1x64x128xbf16> to vector<64x128xbf16>
    %cst_71 = arith.constant dense<0.000000e+00> : vector<64x128xf32>
    %89 = tpu.matmul %84, %88, %cst_71 {dimension_numbers = #tpu.dot_dimension_numbers<[1], [0], [0], [1], [0, 0, 1, 1], [], []>} : vector<64x64xbf16>, vector<64x128xbf16>, vector<64x128xf32> -> vector<64x128xf32>
    %c6_72 = arith.constant 6 : index
    %c0_73 = arith.constant 0 : index
    %c0_74 = arith.constant 0 : index
    %90 = vector.load %arg4[%c6_72, %c0_73, %c0_74] : memref<9x128x128xbf16, #tpu.memory_space<vmem>>, vector<1x128x128xbf16>
    %91 = vector.shape_cast %90 : vector<1x128x128xbf16> to vector<128x128xbf16>
    %cst_75 = arith.constant dense<0.000000e+00> : vector<64x128xf32>
    %92 = tpu.matmul %86, %91, %cst_75 {dimension_numbers = #tpu.dot_dimension_numbers<[1], [0], [0], [1], [0, 0, 1, 1], [], []>} : vector<64x128xbf16>, vector<128x128xbf16>, vector<64x128xf32> -> vector<64x128xf32>
    %93 = arith.addf %89, %92 : vector<64x128xf32>
    %94 = arith.addf %82, %93 : vector<64x128xf32>
    %95 = vector.extract_strided_slice %10 {offsets = [2, 1, 0], sizes = [8, 8, 64], strides = [1, 1, 1]} : vector<10x10x64xbf16> to vector<8x8x64xbf16>
    %96 = vector.shape_cast %95 : vector<8x8x64xbf16> to vector<64x64xbf16>
    %97 = vector.extract_strided_slice %11 {offsets = [2, 1, 0], sizes = [8, 8, 128], strides = [1, 1, 1]} : vector<10x10x128xbf16> to vector<8x8x128xbf16>
    %98 = vector.shape_cast %97 : vector<8x8x128xbf16> to vector<64x128xbf16>
    %c7 = arith.constant 7 : index
    %c0_76 = arith.constant 0 : index
    %c0_77 = arith.constant 0 : index
    %99 = vector.load %arg3[%c7, %c0_76, %c0_77] : memref<9x64x128xbf16, #tpu.memory_space<vmem>>, vector<1x64x128xbf16>
    %100 = vector.shape_cast %99 : vector<1x64x128xbf16> to vector<64x128xbf16>
    %cst_78 = arith.constant dense<0.000000e+00> : vector<64x128xf32>
    %101 = tpu.matmul %96, %100, %cst_78 {dimension_numbers = #tpu.dot_dimension_numbers<[1], [0], [0], [1], [0, 0, 1, 1], [], []>} : vector<64x64xbf16>, vector<64x128xbf16>, vector<64x128xf32> -> vector<64x128xf32>
    %c7_79 = arith.constant 7 : index
    %c0_80 = arith.constant 0 : index
    %c0_81 = arith.constant 0 : index
    %102 = vector.load %arg4[%c7_79, %c0_80, %c0_81] : memref<9x128x128xbf16, #tpu.memory_space<vmem>>, vector<1x128x128xbf16>
    %103 = vector.shape_cast %102 : vector<1x128x128xbf16> to vector<128x128xbf16>
    %cst_82 = arith.constant dense<0.000000e+00> : vector<64x128xf32>
    %104 = tpu.matmul %98, %103, %cst_82 {dimension_numbers = #tpu.dot_dimension_numbers<[1], [0], [0], [1], [0, 0, 1, 1], [], []>} : vector<64x128xbf16>, vector<128x128xbf16>, vector<64x128xf32> -> vector<64x128xf32>
    %105 = arith.addf %101, %104 : vector<64x128xf32>
    %106 = arith.addf %94, %105 : vector<64x128xf32>
    %107 = vector.extract_strided_slice %10 {offsets = [2, 2, 0], sizes = [8, 8, 64], strides = [1, 1, 1]} : vector<10x10x64xbf16> to vector<8x8x64xbf16>
    %108 = vector.shape_cast %107 : vector<8x8x64xbf16> to vector<64x64xbf16>
    %109 = vector.extract_strided_slice %11 {offsets = [2, 2, 0], sizes = [8, 8, 128], strides = [1, 1, 1]} : vector<10x10x128xbf16> to vector<8x8x128xbf16>
    %110 = vector.shape_cast %109 : vector<8x8x128xbf16> to vector<64x128xbf16>
    %c8 = arith.constant 8 : index
    %c0_83 = arith.constant 0 : index
    %c0_84 = arith.constant 0 : index
    %111 = vector.load %arg3[%c8, %c0_83, %c0_84] : memref<9x64x128xbf16, #tpu.memory_space<vmem>>, vector<1x64x128xbf16>
    %112 = vector.shape_cast %111 : vector<1x64x128xbf16> to vector<64x128xbf16>
    %cst_85 = arith.constant dense<0.000000e+00> : vector<64x128xf32>
    %113 = tpu.matmul %108, %112, %cst_85 {dimension_numbers = #tpu.dot_dimension_numbers<[1], [0], [0], [1], [0, 0, 1, 1], [], []>} : vector<64x64xbf16>, vector<64x128xbf16>, vector<64x128xf32> -> vector<64x128xf32>
    %c8_86 = arith.constant 8 : index
    %c0_87 = arith.constant 0 : index
    %c0_88 = arith.constant 0 : index
    %114 = vector.load %arg4[%c8_86, %c0_87, %c0_88] : memref<9x128x128xbf16, #tpu.memory_space<vmem>>, vector<1x128x128xbf16>
    %115 = vector.shape_cast %114 : vector<1x128x128xbf16> to vector<128x128xbf16>
    %cst_89 = arith.constant dense<0.000000e+00> : vector<64x128xf32>
    %116 = tpu.matmul %110, %115, %cst_89 {dimension_numbers = #tpu.dot_dimension_numbers<[1], [0], [0], [1], [0, 0, 1, 1], [], []>} : vector<64x128xbf16>, vector<128x128xbf16>, vector<64x128xf32> -> vector<64x128xf32>
    %117 = arith.addf %113, %116 : vector<64x128xf32>
    %118 = arith.addf %106, %117 : vector<64x128xf32>
    %c0_90 = arith.constant 0 : index
    %c0_91 = arith.constant 0 : index
    %119 = vector.load %arg5[%c0_90, %c0_91] : memref<1x128xf32, #tpu.memory_space<vmem>>, vector<1x128xf32>
    %120 = vector.broadcast %119 : vector<1x128xf32> to vector<64x128xf32>
    %121 = arith.addf %118, %120 : vector<64x128xf32>
    %cst_92 = arith.constant 0.000000e+00 : f32
    %122 = vector.broadcast %cst_92 : f32 to vector<64x128xf32>
    %123 = arith.maximumf %121, %122 : vector<64x128xf32>
    %124 = arith.truncf %123 : vector<64x128xf32> to vector<64x128xbf16>
    %c0_93 = arith.constant 0 : index
    %c0_94 = arith.constant 0 : index
    %125 = vector.load %arg6[%c0_93, %c0_94] : memref<128x128xbf16, #tpu.memory_space<vmem>>, vector<128x128xbf16>
    %cst_95 = arith.constant dense<0.000000e+00> : vector<64x128xf32>
    %126 = tpu.matmul %124, %125, %cst_95 {dimension_numbers = #tpu.dot_dimension_numbers<[1], [0], [0], [1], [0, 0, 1, 1], [], []>} : vector<64x128xbf16>, vector<128x128xbf16>, vector<64x128xf32> -> vector<64x128xf32>
    %c0_96 = arith.constant 0 : index
    %c0_97 = arith.constant 0 : index
    %127 = vector.load %arg7[%c0_96, %c0_97] : memref<1x128xf32, #tpu.memory_space<vmem>>, vector<1x128xf32>
    %128 = vector.broadcast %127 : vector<1x128xf32> to vector<64x128xf32>
    %129 = arith.addf %126, %128 : vector<64x128xf32>
    %130 = arith.truncf %129 : vector<64x128xf32> to vector<64x128xbf16>
    %c0_98 = arith.constant 0 : index
    %c0_99 = arith.constant 0 : index
    %c0_100 = arith.constant 0 : index
    %131 = vector.load %arg8[%c0_98, %c0_99, %c0_100] : memref<1x64x128xbf16, #tpu.memory_space<vmem>>, vector<1x64x128xbf16>
    %132 = vector.shape_cast %131 : vector<1x64x128xbf16> to vector<64x128xbf16>
    %133 = vector.shape_cast %130 : vector<64x128xbf16> to vector<1x64x128xbf16>
    tpu.vector_store %arg8[%c0_98, %c0_99, %c0_100], %133 {strides = array<i32>} : memref<1x64x128xbf16, #tpu.memory_space<vmem>>, vector<1x64x128xbf16>,
    return
  }
  func.func @transform_0(%arg0: i32) -> (i32, i32, i32, i32) {
    %c0_i32 = arith.constant 0 : i32
    %c0_i32_0 = arith.constant 0 : i32
    %c0_i32_1 = arith.constant 0 : i32
    %c0_i32_2 = arith.constant 0 : i32
    return %arg0, %c0_i32, %c0_i32_0, %c0_i32_1 : i32, i32, i32, i32
  }
  func.func @transform_1(%arg0: i32) -> (i32, i32, i32, i32) {
    %c0_i32 = arith.constant 0 : i32
    %c0_i32_0 = arith.constant 0 : i32
    %c0_i32_1 = arith.constant 0 : i32
    %c0_i32_2 = arith.constant 0 : i32
    return %arg0, %c0_i32, %c0_i32_0, %c0_i32_1 : i32, i32, i32, i32
  }
  func.func @transform_2(%arg0: i32) -> (i32, i32, i32) {
    %c0_i32 = arith.constant 0 : i32
    %c0_i32_0 = arith.constant 0 : i32
    %c0_i32_1 = arith.constant 0 : i32
    %c0_i32_2 = arith.constant 0 : i32
    return %c0_i32, %c0_i32_0, %c0_i32_1 : i32, i32, i32
  }
  func.func @transform_3(%arg0: i32) -> (i32, i32, i32) {
    %c0_i32 = arith.constant 0 : i32
    %c0_i32_0 = arith.constant 0 : i32
    %c0_i32_1 = arith.constant 0 : i32
    %c0_i32_2 = arith.constant 0 : i32
    return %c0_i32, %c0_i32_0, %c0_i32_1 : i32, i32, i32
  }
  func.func @transform_4(%arg0: i32) -> (i32, i32) {
    %c0_i32 = arith.constant 0 : i32
    %c0_i32_0 = arith.constant 0 : i32
    %c0_i32_1 = arith.constant 0 : i32
    return %c0_i32, %c0_i32_0 : i32, i32
  }
  func.func @transform_5(%arg0: i32) -> (i32, i32) {
    %c0_i32 = arith.constant 0 : i32
    %c0_i32_0 = arith.constant 0 : i32
    %c0_i32_1 = arith.constant 0 : i32
    return %c0_i32, %c0_i32_0 : i32, i32
  }
  func.func @transform_6(%arg0: i32) -> (i32, i32) {
    %c0_i32 = arith.constant 0 : i32
    %c0_i32_0 = arith.constant 0 : i32
    %c0_i32_1 = arith.constant 0 : i32
    return %c0_i32, %c0_i32_0 : i32, i32
  }
  func.func @transform_7(%arg0: i32) -> (i32, i32, i32) {
    %c0_i32 = arith.constant 0 : i32
    %c0_i32_0 = arith.constant 0 : i32
    %c0_i32_1 = arith.constant 0 : i32
    return %arg0, %c0_i32, %c0_i32_0 : i32, i32, i32
  }
}

module attributes {stable_mosaic.version = 11 : i64} {
  func.func @_resize_rows_kernel(%arg0: i32, %arg1: memref<1x8x1024xbf16, #tpu.memory_space<vmem>>, %arg2: memref<8x8xbf16, #tpu.memory_space<vmem>>, %arg3: memref<1x8x1024xbf16, #tpu.memory_space<vmem>>) attributes {dimension_semantics = [#tpu.dimension_semantics<parallel>], iteration_bounds = array<i64: 2>, scalar_prefetch = 0 : i64, scratch_operands = 0 : i64, tpu.core_type = #tpu.core_type<tc>, window_params = [{transform_indices = @transform_0, window_bounds = array<i64: 1, 8, 1024>}, {pipeline_mode = #tpu.pipeline_mode<synchronous>, transform_indices = @transform_1, window_bounds = array<i64: 8, 8>}, {transform_indices = @transform_2, window_bounds = array<i64: 1, 8, 1024>}]} {
    %c0 = arith.constant 0 : index
    %c0_0 = arith.constant 0 : index
    %0 = vector.load %arg2[%c0, %c0_0] : memref<8x8xbf16, #tpu.memory_space<vmem>>, vector<8x8xbf16>
    %c0_1 = arith.constant 0 : index
    %c0_2 = arith.constant 0 : index
    %c0_3 = arith.constant 0 : index
    %1 = vector.load %arg1[%c0_1, %c0_2, %c0_3] : memref<1x8x1024xbf16, #tpu.memory_space<vmem>>, vector<1x8x1024xbf16>
    %2 = vector.shape_cast %1 : vector<1x8x1024xbf16> to vector<8x1024xbf16>
    %cst = arith.constant dense<0.000000e+00> : vector<8x1024xf32>
    %3 = tpu.matmul %0, %2, %cst {dimension_numbers = #tpu.dot_dimension_numbers<[1], [0], [0], [1], [0, 0, 1, 1], [], []>} : vector<8x8xbf16>, vector<8x1024xbf16>, vector<8x1024xf32> -> vector<8x1024xf32>
    %4 = arith.truncf %3 : vector<8x1024xf32> to vector<8x1024xbf16>
    %c0_4 = arith.constant 0 : index
    %c0_5 = arith.constant 0 : index
    %c0_6 = arith.constant 0 : index
    %5 = vector.load %arg3[%c0_4, %c0_5, %c0_6] : memref<1x8x1024xbf16, #tpu.memory_space<vmem>>, vector<1x8x1024xbf16>
    %6 = vector.shape_cast %5 : vector<1x8x1024xbf16> to vector<8x1024xbf16>
    %7 = vector.shape_cast %4 : vector<8x1024xbf16> to vector<1x8x1024xbf16>
    tpu.vector_store %arg3[%c0_4, %c0_5, %c0_6], %7 {strides = array<i32>} : memref<1x8x1024xbf16, #tpu.memory_space<vmem>>, vector<1x8x1024xbf16>,
    return
  }
  func.func @transform_0(%arg0: i32) -> (i32, i32, i32) {
    %c0_i32 = arith.constant 0 : i32
    %c0_i32_0 = arith.constant 0 : i32
    %c0_i32_1 = arith.constant 0 : i32
    return %arg0, %c0_i32, %c0_i32_0 : i32, i32, i32
  }
  func.func @transform_1(%arg0: i32) -> (i32, i32) {
    %c0_i32 = arith.constant 0 : i32
    %c0_i32_0 = arith.constant 0 : i32
    %c0_i32_1 = arith.constant 0 : i32
    return %c0_i32, %c0_i32_0 : i32, i32
  }
  func.func @transform_2(%arg0: i32) -> (i32, i32, i32) {
    %c0_i32 = arith.constant 0 : i32
    %c0_i32_0 = arith.constant 0 : i32
    %c0_i32_1 = arith.constant 0 : i32
    return %arg0, %c0_i32, %c0_i32_0 : i32, i32, i32
  }
}

module attributes {stable_mosaic.version = 11 : i64} {
  func.func @_resize_cols_kernel(%arg0: i32, %arg1: i32, %arg2: memref<1x1x8x128xbf16, #tpu.memory_space<vmem>>, %arg3: memref<8x8xbf16, #tpu.memory_space<vmem>>, %arg4: memref<1x1x8x128xf32, #tpu.memory_space<vmem>>) attributes {dimension_semantics = [#tpu.dimension_semantics<parallel>, #tpu.dimension_semantics<parallel>], iteration_bounds = array<i64: 2, 8>, scalar_prefetch = 0 : i64, scratch_operands = 0 : i64, tpu.core_type = #tpu.core_type<tc>, window_params = [{transform_indices = @transform_0, window_bounds = array<i64: 1, 1, 8, 128>}, {pipeline_mode = #tpu.pipeline_mode<synchronous>, transform_indices = @transform_1, window_bounds = array<i64: 8, 8>}, {transform_indices = @transform_2, window_bounds = array<i64: 1, 1, 8, 128>}]} {
    %c0 = arith.constant 0 : index
    %c0_0 = arith.constant 0 : index
    %0 = vector.load %arg3[%c0, %c0_0] : memref<8x8xbf16, #tpu.memory_space<vmem>>, vector<8x8xbf16>
    %c0_1 = arith.constant 0 : index
    %c0_2 = arith.constant 0 : index
    %c0_3 = arith.constant 0 : index
    %c0_4 = arith.constant 0 : index
    %1 = vector.load %arg2[%c0_1, %c0_2, %c0_3, %c0_4] : memref<1x1x8x128xbf16, #tpu.memory_space<vmem>>, vector<1x1x8x128xbf16>
    %2 = vector.shape_cast %1 : vector<1x1x8x128xbf16> to vector<8x128xbf16>
    %cst = arith.constant dense<0.000000e+00> : vector<8x128xf32>
    %3 = tpu.matmul %0, %2, %cst {dimension_numbers = #tpu.dot_dimension_numbers<[1], [0], [0], [1], [0, 0, 1, 1], [], []>} : vector<8x8xbf16>, vector<8x128xbf16>, vector<8x128xf32> -> vector<8x128xf32>
    %c0_5 = arith.constant 0 : index
    %c0_6 = arith.constant 0 : index
    %c0_7 = arith.constant 0 : index
    %c0_8 = arith.constant 0 : index
    %4 = vector.load %arg4[%c0_5, %c0_6, %c0_7, %c0_8] : memref<1x1x8x128xf32, #tpu.memory_space<vmem>>, vector<1x1x8x128xf32>
    %5 = vector.shape_cast %4 : vector<1x1x8x128xf32> to vector<8x128xf32>
    %6 = vector.shape_cast %3 : vector<8x128xf32> to vector<1x1x8x128xf32>
    tpu.vector_store %arg4[%c0_5, %c0_6, %c0_7, %c0_8], %6 {strides = array<i32>} : memref<1x1x8x128xf32, #tpu.memory_space<vmem>>, vector<1x1x8x128xf32>,
    return
  }
  func.func @transform_0(%arg0: i32, %arg1: i32) -> (i32, i32, i32, i32) {
    %c0_i32 = arith.constant 0 : i32
    %c0_i32_0 = arith.constant 0 : i32
    %c0_i32_1 = arith.constant 0 : i32
    return %arg0, %arg1, %c0_i32, %c0_i32_0 : i32, i32, i32, i32
  }
  func.func @transform_1(%arg0: i32, %arg1: i32) -> (i32, i32) {
    %c0_i32 = arith.constant 0 : i32
    %c0_i32_0 = arith.constant 0 : i32
    %c0_i32_1 = arith.constant 0 : i32
    return %c0_i32, %c0_i32_0 : i32, i32
  }
  func.func @transform_2(%arg0: i32, %arg1: i32) -> (i32, i32, i32, i32) {
    %c0_i32 = arith.constant 0 : i32
    %c0_i32_0 = arith.constant 0 : i32
    %c0_i32_1 = arith.constant 0 : i32
    return %arg0, %arg1, %c0_i32, %c0_i32_0 : i32, i32, i32, i32
  }
}

</mosaic_0001>

<bundles_post_ra>
// kernel: pspnet_forward.4
= control target key start
LH: loop header
LB: loop body
LE: loop exit
PB: predicated region body
PF: predicated region fallthrough
CT: control target
= control target key end

     0   :  { %s967_s21 = smov 0   ;;  %s1066_s0 = inlined_call_operand.vmem [shape: bf16[2,64,64], index: 0, kind: input, shape index: {}]   ;;  %s1067_s1 = inlined_call_operand.vmem [shape: bf16[64,64], index: 1, kind: input, shape index: {}]   ;;  %s1068_s2 = inlined_call_operand.vmem [shape: bf16[64,128], index: 2, kind: input, shape index: {}]   ;;  %s1069_s3 = inlined_call_operand.vmem [shape: f32[1,128], index: 3, kind: input, shape index: {}]   ;;  %s1070_s4 = inlined_call_operand.vmem [shape: f32[64,128], index: 4, kind: input, shape index: {}]   ;;  %s1071_s5 = inlined_call_operand.vmem [shape: bf16[64,64], index: 5, kind: input, shape index: {}]   ;;  %s1072_s6 = inlined_call_operand.vmem [shape: bf16[2,64,128], index: 6, kind: output, shape index: {}]  }
   0x1 LB: > { %s739_s22 = sadd.s32 4294967295, %s930_s21   ;;  %p743_p0 = scmp.ge.s32.totalorder %s930_s21, 1  ;;  %s930_s21 = sphi %s967_s21, %s16_s21  }
   0x2   : > { %p212_p1 = scmp.lt.s32.totalorder %s930_s21, 3 }
   0x4   : > { %p213_p2 = pnand %p743_p0, %p212_p1 }
   0x5   : > { %p242_p3 = scmp.lt.s32.totalorder (!%p213_p2), %s739_s22, 1 }
   0x6   : > { %216 = sbr.rel (%p213_p2) target bundleno = 664 (0x298), region = 44 }
   0xb   : > { %v912_v0 = vld [vmem:[%s1067_s1] sm:$0xff]   ;;  %vm313_vm0 = vcmask 523264   ;;  %s1074_s22 = smov (!%p242_p3, %s739_s22), 1  ;;  %v916_v1 = vld [vmem:[%s1068_s2 + $0x18] sm:$0xff]   ;;  %v917_v2 = vld [vmem:[%s1068_s2 + $0x10] sm:$0xff]  }
   0xc   : > { %852 = vmatprep.mubr.msk.bf16.mxu0 %vm313_vm0, %v912_v0  ;;  %s787_s25 = sshll.u32 %s1074_s22, 5  ;;  %860 = vmatprep.subr.bf16.mxu1 %v916_v1  ;;  %v913_v7 = vld [vmem:[%s1067_s1 + $0x8] sm:$0xff]   ;;  %v914_v8 = vld [vmem:[%s1067_s1 + $0x10] sm:$0xff]   ;;  %v915_v9 = vld [vmem:[%s1067_s1 + $0x18] sm:$0xff]  }
   0xd   : > { %s246_s30 = scalar_lea.vmem %s1066_s0, %s787_s25  ;;  %861 = vmatpush3.bf16.msra.mxu1 %v916_v1  ;;  %v918_v10 = vld [vmem:[%s1068_s2 + $0x8] sm:$0xff]   ;;  %v919_v11 = vld [vmem:[%s1068_s2] sm:$0xff]   ;;  %v921_v25 = vld [vmem:[%s1071_s5 + $0x10] sm:$0xff]   ;;  %s251_s29 = scalar_lea.vmem %s1072_s6, %s787_s25 }
   0xe   : > { %v908_v3 = vld [vmem:[%s246_s30 + $0x18] sm:$0xff]   ;;  %v909_v4 = vld [vmem:[%s246_s30 + $0x10] sm:$0xff]   ;;  %862 = vmatprep.subr.bf16.mxu1 %v917_v2  ;;  %v910_v5 = vld [vmem:[%s246_s30 + $0x8] sm:$0xff]  }
   0xf   : > { %844 = vmatprep.subr.bf16.mxu0 %v908_v3  ;;  %v911_v6 = vld [vmem:[%s246_s30] sm:$0xff]   ;;  %v525_v40 = vld [vmem:[%s1070_s4 + $0x30] sm:$0xff]  ;;  %v526_v41 = vld [vmem:[%s1070_s4 + $0x38] sm:$0xff] }
  0x10   : > { %845 = vmatpush3.bf16.msra.mxu0 %v908_v3  ;;  %v920_v24 = vld [vmem:[%s1071_s5] sm:$0xff]   ;;  %v524_v48 = vld [vmem:[%s1070_s4 + $0x28] sm:$0xff]  ;;  %v522_v54 = vld [vmem:[%s1070_s4 + $0x18] sm:$0xff] }
  0x11   : > { %846 = vmatprep.subr.bf16.mxu0 %v909_v4  ;;  %863 = vmatpush3.bf16.msra.mxu1 %v917_v2  ;;  %v760_v30 = vld [vmem:[%s1069_s3] ss:$0 sm:$0xff]  ;;  %v521_v59 = vld [vmem:[%s1070_s4 + $0x10] sm:$0xff]  ;;  %v520_v63 = vld [vmem:[%s1070_s4 + $0x8] sm:$0xff] }
  0x12   : > { %864 = vmatprep.subr.bf16.mxu1 %v918_v10  ;;  %v523_v47 = vld [vmem:[%s1070_s4 + $0x20] sm:$0xff] }
  0x13   : > { %v519_v2 = vld [vmem:[%s1070_s4] sm:$0xff] }
  0x14   : > { %847 = vmatpush3.bf16.msra.mxu0 %v909_v4 }
  0x15   : > { %848 = vmatprep.subr.bf16.mxu0 %v910_v5  ;;  %865 = vmatpush3.bf16.msra.mxu1 %v918_v10 }
  0x16   : > { %866 = vmatprep.subr.bf16.mxu1 %v919_v11 }
  0x18   : > { %849 = vmatpush3.bf16.msra.mxu0 %v910_v5 }
  0x19   : > { %850 = vmatprep.subr.bf16.mxu0 %v911_v6  ;;  %867 = vmatpush3.bf16.msra.mxu1 %v919_v11 }
  0x1c   : > { %851 = vmatpush3.bf16.msra.mxu0 %v911_v6 }
  0x1f   : > { %853 = vmatmul.mubr.msk.bf16.vlgmr.msra.gmra.mxu0 %vm313_vm0, %v913_v7  ;;  %v922_v7 = vld [vmem:[%s1071_s5 + $0x8] sm:$0xff]  }
  0x20   : > { %856 = vmatprep.mubr.msk.bf16.mxu0 %vm313_vm0, %v914_v8  ;;  %v923_v8 = vld [vmem:[%s1071_s5 + $0x18] sm:$0xff]  }
  0x27   : > { %857 = vmatmul.mubr.msk.bf16.gmra.mxu0 %vm313_vm0, %v915_v9 }
  0x28   : > { %884 = vmatprep.mubr.msk.bf16.mxu0 %vm313_vm0, %v920_v24 }
  0xdf   : > { %v854_v12 = vpop.f32.mrf.mxu0 }
  0xe1   : > { %v360_v13 = vpop.f32.mrf.mxu0 }
  0xe3   : > { %v855_v14 = vpop.f32.mrf.mxu0 }
  0xe4   : > { %v392_v17 = vpack.c.bf16 %v855_v14, %v854_v12 }
  0xe5   : > { %v363_v15 = vpop.f32.mrf.mxu0 }
  0xe6   : > { %v391_v16 = vpack.c.bf16 %v363_v15, %v360_v13 }
  0xe7   : > { %v858_v18 = vpop.f32.mrf.mxu0 }
  0xe8   : > { %868 = vmatprep.mubr.msk.bf16.mxu1 %vm313_vm0, %v391_v16 }
  0xe9   : > { %v376_v19 = vpop.f32.mrf.mxu0  ;;  %869 = vmatmul.mubr.msk.bf16.vlgmr.msra.gmra.mxu1 %vm313_vm0, %v392_v17 }
  0xeb   : > { %v859_v20 = vpop.f32.mrf.mxu0 }
  0xec   : > { %v394_v23 = vpack.c.bf16 %v859_v20, %v858_v18 }
  0xed   : > { %v379_v21 = vpop.f32.mrf.mxu0 }
  0xee   : > { %v393_v22 = vpack.c.bf16 %v379_v21, %v376_v19 }
  0xf0   : > { %872 = vmatprep.mubr.msk.bf16.mxu1 %vm313_vm0, %v393_v22 }
  0xf1   : > { %873 = vmatmul.mubr.msk.bf16.gmra.mxu1 %vm313_vm0, %v394_v23 }
  0xf2   : > { %888 = vmatprep.mubr.msk.bf16.mxu1 %vm313_vm0, %v921_v25 }
 0x1a9   : > { %v870_v26 = vpop.f32.mrf.mxu1 }
 0x1aa   : > { %v489_v39 = vadd.f32 %v870_v26, %v760_v30 }
 0x1ab   : > { %v480_v27 = vpop.f32.mrf.mxu1 }
 0x1ac   : > { %v513_v53 = vmax.f32 %v489_v39, 0.0  ;;  %v481_v55 = vadd.f32 %v760_v30, %v480_v27 }
 0x1ad   : > { %v871_v28 = vpop.f32.mrf.mxu1 }
 0x1ae   : > { %v492_v35 = vadd.f32 %v871_v28, %v760_v30  ;;  %v529_v0 = vmul.f32 %v521_v59, %v513_v53  ;;  %v511_v1 = vmax.f32 %v481_v55, 0.0 }
 0x1af   : > { %v483_v29 = vpop.f32.mrf.mxu1 }
 0x1b0   : > { %v514_v46 = vmax.f32 %v492_v35, 0.0  ;;  %v484_v49 = vadd.f32 %v760_v30, %v483_v29  ;;  %v527_v5 = vmul.f32 %v519_v2, %v511_v1 }
 0x1b1   : > { %v874_v31 = vpop.f32.mrf.mxu1 }
 0x1b2   : > { %v505_v32 = vadd.f32 %v874_v31, %v760_v30  ;;  %v530_v60 = vmul.f32 %v522_v54, %v514_v46  ;;  %v512_v61 = vmax.f32 %v484_v49, 0.0 }
 0x1b3   : > { %v496_v33 = vpop.f32.mrf.mxu1 }
 0x1b4   : > { %v497_v34 = vadd.f32 %v760_v30, %v496_v33  ;;  %v517_v37 = vmax.f32 %v505_v32, 0.0  ;;  %v544_v3 = vpack.c.bf16 %v530_v60, %v529_v0  ;;  %v528_v4 = vmul.f32 %v520_v63, %v512_v61 }
 0x1b5   : > { %v875_v36 = vpop.f32.mrf.mxu1 }
 0x1b6   : > { %v508_v38 = vadd.f32 %v875_v36, %v760_v30  ;;  %v515_v43 = vmax.f32 %v497_v34, 0.0  ;;  %v533_v50 = vmul.f32 %v525_v40, %v517_v37  ;;  %v543_v6 = vpack.c.bf16 %v528_v4, %v527_v5 }
 0x1b7   : > { %v499_v42 = vpop.f32.mrf.mxu1 }
 0x1b8   : > { %v518_v44 = vmax.f32 %v508_v38, 0.0  ;;  %v500_v45 = vadd.f32 %v760_v30, %v499_v42  ;;  %v531_v56 = vmul.f32 %v523_v47, %v515_v43 }
 0x1ba   : > { %v534_v51 = vmul.f32 %v526_v41, %v518_v44  ;;  %v516_v52 = vmax.f32 %v500_v45, 0.0 }
 0x1bc   : > { %v546_v57 = vpack.c.bf16 %v534_v51, %v533_v50  ;;  %v532_v58 = vmul.f32 %v524_v48, %v516_v52 }
 0x1be   : > { %v545_v62 = vpack.c.bf16 %v532_v58, %v531_v56  ;;  %876 = vmatprep.subr.bf16.mxu0 %v546_v57  ;;  %892 = vmatprep.subr.bf16.mxu1 %v546_v57 }
 0x1bf   : > { %877 = vmatpush3.bf16.msra.mxu0 %v546_v57  ;;  %896 = vmatpush3.bf16.msra.mxu1 %v546_v57 }
 0x1c0   : > { %878 = vmatprep.subr.bf16.mxu0 %v545_v62  ;;  %893 = vmatprep.subr.bf16.mxu1 %v545_v62 }
 0x1c3   : > { %879 = vmatpush3.bf16.msra.mxu0 %v545_v62  ;;  %897 = vmatpush3.bf16.msra.mxu1 %v545_v62 }
 0x1c4   : > { %880 = vmatprep.subr.bf16.mxu0 %v544_v3  ;;  %894 = vmatprep.subr.bf16.mxu1 %v544_v3 }
 0x1c7   : > { %881 = vmatpush3.bf16.msra.mxu0 %v544_v3  ;;  %898 = vmatpush3.bf16.msra.mxu1 %v544_v3 }
 0x1c8   : > { %882 = vmatprep.subr.bf16.mxu0 %v543_v6  ;;  %895 = vmatprep.subr.bf16.mxu1 %v543_v6 }
 0x1cb   : > { %883 = vmatpush3.bf16.msra.mxu0 %v543_v6  ;;  %899 = vmatpush3.bf16.msra.mxu1 %v543_v6 }
 0x1ce   : > { %885 = vmatmul.mubr.msk.bf16.vlgmr.msra.gmra.mxu0 %vm313_vm0, %v922_v7  ;;  %889 = vmatmul.mubr.msk.bf16.vlgmr.msra.gmra.mxu1 %vm313_vm0, %v923_v8 }
 0x28e   : > { %v886_v9 = vpop.f32.mrf.mxu0  ;;  %v890_v10 = vpop.f32.mrf.mxu1 }
 0x290   : > { %v613_v11 = vpop.f32.mrf.mxu0  ;;  %v629_v12 = vpop.f32.mrf.mxu1 }
 0x292   : > { %v887_v13 = vpop.f32.mrf.mxu0  ;;  %v891_v14 = vpop.f32.mrf.mxu1 }
 0x293   : > { %v805_v15 = vpack.c.bf16 %v887_v13, %v886_v9  ;;  %v815_v16 = vpack.c.bf16 %v891_v14, %v890_v10 }
 0x294   : > { %v616_v17 = vpop.f32.mrf.mxu0  ;;  %v632_v18 = vpop.f32.mrf.mxu1 }
 0x295   : > { %817 = vst [vmem:[%s251_s29 + $0x8] sm:$0xff] %v805_v15   ;;  %819 = vst [vmem:[%s251_s29 + $0x18] sm:$0xff] %v815_v16   ;;  %v800_v19 = vpack.c.bf16 %v616_v17, %v613_v11  ;;  %v810_v20 = vpack.c.bf16 %v632_v18, %v629_v12 }
 0x297   : > { %801 = vst [vmem:[%s251_s29] sm:$0xff] %v800_v19   ;;  %818 = vst [vmem:[%s251_s29 + $0x10] sm:$0xff] %v810_v20  }
 0x298 PF: > { %s16_s21 = sadd.s32 1, %s930_s21  }
 0x299   : > { %p13_p4 = scmp.ge.s32.totalorder %s16_s21, 4  }
 0x29b   :  { %15 = sbr.rel (!%p13_p4) target bundleno = 1 (0x1), region = 74 }

// kernel: pspnet_forward.6
= control target key start
LH: loop header
LB: loop body
LE: loop exit
PB: predicated region body
PF: predicated region fallthrough
CT: control target
= control target key end

     0   :  { %s532_s9 = smov 0   ;;  %s567_s0 = inlined_call_operand.vmem [shape: bf16[2,8,1024], index: 0, kind: input, shape index: {}]   ;;  %s568_s1 = inlined_call_operand.vmem [shape: bf16[8,8], index: 1, kind: input, shape index: {}]   ;;  %s569_s2 = inlined_call_operand.vmem [shape: bf16[2,8,1024], index: 2, kind: output, shape index: {}]  }
   0x1 LB: > { %s454_s10 = sadd.s32 4294967295, %s514_s9   ;;  %p458_p0 = scmp.ge.s32.totalorder %s514_s9, 1  ;;  %s514_s9 = sphi %s532_s9, %s12_s9  }
   0x2   : > { %p112_p1 = scmp.lt.s32.totalorder %s514_s9, 3 }
   0x4   : > { %p113_p2 = pnand %p458_p0, %p112_p1 }
   0x5   : > { %p134_p3 = scmp.lt.s32.totalorder (!%p113_p2), %s454_s10, 1 }
   0x6   : > { %116 = sbr.rel (%p113_p2) target bundleno = 228 (0xe4), region = 28 }
   0xb   : > { %v516_v0 = vmov 0   ;;  %s571_s10 = smov (!%p134_p3, %s454_s10), 1  ;;  %vm174_vm0 = vcmask 1043456   ;;  %v145_v15 = vld [vmem:[%s568_s1] sm:$0xf]  ;;  %vm170_vm1 = vcmask 64512  }
   0xc   : > { %231 = vmatprep.mubr.bf16.mxu0 %v516_v0  ;;  %272 = vmatprep.mubr.bf16.mxu1 %v516_v0  ;;  %s485_s11 = sshll.u32 %s571_s10, 5 }
   0xd   : > { %s138_s14 = scalar_lea.vmem %s567_s0, %s485_s11  ;;  %s143_s19 = scalar_lea.vmem %s569_s2, %s485_s11 }
   0xe   : > { %v146_v1 = vld [vmem:[%s138_s14] sm:$0xff]  ;;  %v147_v2 = vld [vmem:[%s138_s14 + $0x8] sm:$0xff]  ;;  %v148_v3 = vld [vmem:[%s138_s14 + $0x10] sm:$0xff] }
   0xf   : > { %v464_v4 = vcombine.high %v146_v1, %v146_v1  ;;  %v466_v5 = vcombine.high %v147_v2, %v147_v2  ;;  %v463_v6 = vcombine.low %v146_v1, %v146_v1  ;;  %v465_v7 = vcombine.low %v147_v2, %v147_v2  ;;  %v149_v8 = vld [vmem:[%s138_s14 + $0x18] sm:$0xff] }
  0x10   : > { %v468_v9 = vcombine.high %v148_v3, %v148_v3  ;;  %v470_v10 = vcombine.high %v149_v8, %v149_v8  ;;  %v467_v11 = vcombine.low %v148_v3, %v148_v3  ;;  %v469_v12 = vcombine.low %v149_v8, %v149_v8 }
  0x11   : > { %471 = vmatprep.subr.msk.bf16.mxu0 %vm174_vm0, %v464_v4  ;;  %473 = vmatprep.subr.msk.bf16.mxu1 %vm174_vm0, %v466_v5  ;;  %v176_v13 = vsel %vm174_vm0, %v463_v6, 0  ;;  %v182_v14 = vsel %vm174_vm0, %v465_v7, 0 }
  0x12   : > { %214 = vmatpush1.bf16.msra.mxu0 %v176_v13  ;;  %255 = vmatpush1.bf16.msra.mxu1 %v182_v14  ;;  %v188_v16 = vsel %vm174_vm0, %v467_v11, 0  ;;  %v194_v17 = vsel %vm174_vm0, %v469_v12, 0 }
  0x13   : > { %475 = vmatprep.subr.msk.bf16.mxu0 %vm174_vm0, %v468_v9  ;;  %477 = vmatprep.subr.msk.bf16.mxu1 %vm174_vm0, %v470_v10 }
  0x15   : > { %472 = vmatmul.mubr.msk.bf16.vlgmr.msra.gmra.mxu0 %vm170_vm1, %v145_v15  ;;  %474 = vmatmul.mubr.msk.bf16.vlgmr.msra.gmra.mxu1 %vm170_vm1, %v145_v15 }
  0x16   : > { %296 = vmatpush1.bf16.msra.mxu0 %v188_v16  ;;  %337 = vmatpush1.bf16.msra.mxu1 %v194_v17 }
  0x17   : > { %313 = vmatprep.mubr.bf16.mxu0 %v516_v0  ;;  %354 = vmatprep.mubr.bf16.mxu1 %v516_v0 }
  0x1d   : > { %476 = vmatmul.mubr.msk.bf16.vlgmr.msra.gmra.mxu0 %vm170_vm1, %v145_v15  ;;  %478 = vmatmul.mubr.msk.bf16.vlgmr.msra.gmra.mxu1 %vm170_vm1, %v145_v15 }
  0xd5   : > { %v233_v18 = vpop.f32.mrf.mxu0  ;;  %v274_v19 = vpop.f32.mrf.mxu1 }
  0xd7   : > { %v235_v20 = vpop.f32.mrf.mxu0  ;;  %v276_v21 = vpop.f32.mrf.mxu1 }
  0xd8   : > { %v487_v22 = vpack.c.bf16 %v235_v20, %v233_v18  ;;  %v488_v23 = vpack.c.bf16 %v276_v21, %v274_v19 }
  0xd9   : > { %v237_v24 = vpop.f32.mrf.mxu0  ;;  %v278_v25 = vpop.f32.mrf.mxu1 }
  0xda   : > { %395 = vst [vmem:[%s143_s19] sm:$0xff] %v487_v22  ;;  %396 = vst [vmem:[%s143_s19 + $0x8] sm:$0xff] %v488_v23 }
  0xdb   : > { %v238_v26 = vpop.f32.mrf.mxu0  ;;  %v279_v27 = vpop.f32.mrf.mxu1 }
  0xdd   : > { %v315_v28 = vpop.f32.mrf.mxu0  ;;  %v356_v29 = vpop.f32.mrf.mxu1 }
  0xdf   : > { %v317_v30 = vpop.f32.mrf.mxu0  ;;  %v358_v31 = vpop.f32.mrf.mxu1 }
  0xe0   : > { %v489_v32 = vpack.c.bf16 %v317_v30, %v315_v28  ;;  %v490_v33 = vpack.c.bf16 %v358_v31, %v356_v29 }
  0xe1   : > { %v319_v34 = vpop.f32.mrf.mxu0  ;;  %v360_v35 = vpop.f32.mrf.mxu1 }
  0xe2   : > { %397 = vst [vmem:[%s143_s19 + $0x10] sm:$0xff] %v489_v32  ;;  %398 = vst [vmem:[%s143_s19 + $0x18] sm:$0xff] %v490_v33 }
  0xe3   : > { %v320_v36 = vpop.f32.mrf.mxu0  ;;  %v361_v37 = vpop.f32.mrf.mxu1 }
  0xe4 PF: > { %s12_s9 = sadd.s32 1, %s514_s9  }
  0xe5   : > { %p9_p4 = scmp.ge.s32.totalorder %s12_s9, 4  }
  0xe7   :  { %11 = sbr.rel (!%p9_p4) target bundleno = 1 (0x1), region = 58 }

// kernel: pspnet_forward.7
= control target key start
LH: loop header
LB: loop body
LE: loop exit
PB: predicated region body
PF: predicated region fallthrough
CT: control target
= control target key end

     0   :  { %s432_s9 = smov 0   ;;  %s434_s10 = smov 0   ;;  %s486_s0 = inlined_call_operand.vmem [shape: bf16[2,8,8,128], index: 0, kind: input, shape index: {}]   ;;  %s487_s1 = inlined_call_operand.vmem [shape: bf16[8,8], index: 1, kind: input, shape index: {}]   ;;  %s488_s2 = inlined_call_operand.vmem [shape: f32[2,8,8,128], index: 2, kind: output, shape index: {}]  }
   0x1   :  { %s436_s11 = smov 0   ;;  %s438_s12 = smov 0  }
   0x2   :  { %s440_s13 = smov 0  }
   0x3 LB: > { %s21_s14 = sadd.s32 1, %s405_s11  ;;  %s24_s15 = sadd.s32 1, %s409_s12  ;;  %s413_s13 = sphi %s440_s13, %s12_s13   ;;  %s409_s12 = sphi %s438_s12, %s492_s12   ;;  %s405_s11 = sphi %s436_s11, %s491_s11   ;;  %s401_s10 = sphi %s434_s10, %s490_s10   ;;  %s397_s9 = sphi %s432_s9, %s489_s9  }
   0x4   : > { %p22_p0 = scmp.ge.s32.totalorder %s21_s14, 8  ;;  %p317_p1 = scmp.ge.s32.totalorder %s413_s13, 1 }
   0x5   : > { %p131_p2 = scmp.lt.s32.totalorder %s413_s13, 17 }
   0x6   : > { %s494_s14 = smov (%p22_p0, %s21_s14), 0  ;;  %s496_s15 = smov (!%p22_p0, %s24_s15), %s409_s12 }
   0x7   : > { %p132_p3 = pnand %p317_p1, %p131_p2  ;;  %p26_p4 = scmp.ge.s32.totalorder %s496_s15, 2 }
   0x8   : > { %p159_p5 = scmp.lt.s32.totalorder (!%p132_p3), %s401_s10, 1  ;;  %p161_p6 = scmp.lt.s32.totalorder (!%p132_p3), %s397_s9, 7 }
   0x9   : > { %s498_s15 = smov (%p26_p4, %s496_s15), 0  ;;  %135 = sbr.rel (%p132_p3) target bundleno = 223 (0xdf), region = 28 }
   0xe   : > { %v415_v0 = vmov 0.0   ;;  %vm416_vm0 = vmmov 0   ;;  %s500_s10 = smov (!%p159_p5, %s401_s10), 1  ;;  %s502_s9 = smov (!%p161_p6, %s397_s9), 7  ;;  %vm182_vm1 = vcmask 1043456   ;;  %vm178_vm2 = vcmask 64512  }
   0xf   : > { %327 = vmatprep.subr.bf16.mxu0 %v415_v0  ;;  %329 = vmatprep.mubr.msk.bf16.mxu0 %vm416_vm0, %v415_v0  ;;  %s318_s16 = sshll.u32 %s500_s10, 3  ;;  %v176_v3 = vld [vmem:[%s487_s1] sm:$0xf] }
  0x10   : > { %s164_s17 = sadd.s32 %s318_s16, %s502_s9 }
  0x11   : > { %s319_s18 = sshll.u32 %s164_s17, 2  ;;  %s321_s24 = sshll.u32 %s164_s17, 3 }
  0x12   : > { %s166_s21 = scalar_lea.vmem %s486_s0, %s319_s18  ;;  %s174_s27 = scalar_lea.vmem %s488_s2, %s321_s24 }
  0x13   : > { %v177_v1 = vld [vmem:[%s166_s21] sm:$0xf] }
  0x14   : > { %v184_v2 = vsel %vm182_vm1, %v177_v1, 0 }
  0x15   : > { %328 = vmatpush3.bf16.msra.mxu0 %v184_v2 }
  0x18   : > { %330 = vmatmul.mubr.msk.bf16.vlgmr.msra.gmra.mxu0 %vm178_vm2, %v176_v3 }
  0xd8   : > { %v220_v4 = vpop.f32.mrf.mxu0 }
  0xd9   : > { %226 = vst [vmem:[%s174_s27] sm:$0xff] %v220_v4 }
  0xda   : > { %v331_v5 = vpop.f32.mrf.mxu0 }
  0xdc   : > { %v223_v6 = vpop.f32.mrf.mxu0 }
  0xde   : > { %v332_v7 = vpop.f32.mrf.mxu0 }
  0xdf PF: > { %s12_s13 = sadd.s32 1, %s413_s13   ;;  %s489_s9 = smov %s405_s11 }
  0xe0   : > { %p9_p7 = scmp.ge.s32.totalorder %s12_s13, 18   ;;  %s490_s10 = smov %s409_s12 }
  0xe1   : > { %s491_s11 = smov %s494_s14  ;;  %s492_s12 = smov %s498_s15 }
  0xe2   :  { %11 = sbr.rel (!%p9_p7) target bundleno = 3 (0x3), region = 58 }

// kernel: pspnet_forward.5
= control target key start
LH: loop header
LB: loop body
LE: loop exit
PB: predicated region body
PF: predicated region fallthrough
CT: control target
= control target key end

     0   :  { %12 = vsyncpa [#allocation5], 0  ;;  %s4859_s24 = smov 0   ;;  %s6031_s0 = inlined_call_operand.vmem [shape: bf16[2,8,8,64], index: 0, kind: input, shape index: {}]   ;;  %s6032_s1 = inlined_call_operand.vmem [shape: bf16[2,8,8,128], index: 1, kind: input, shape index: {}]   ;;  %s6033_s2 = inlined_call_operand.vmem [shape: bf16[9,64,128], index: 2, kind: input, shape index: {}]   ;;  %s6034_s3 = inlined_call_operand.hbm [shape: bf16[9,128,128], index: 3, kind: input, shape index: {}]   ;;  %s6035_s4 = inlined_call_operand.vmem [shape: f32[1,128], index: 4, kind: input, shape index: {}]   ;;  %s6036_s5 = inlined_call_operand.vmem [shape: bf16[128,128], index: 5, kind: input, shape index: {}]   ;;  %s6037_s6 = inlined_call_operand.vmem [shape: f32[1,128], index: 6, kind: input, shape index: {}]   ;;  %s6038_s7 = inlined_call_operand.vmem [shape: bf16[2,64,128], index: 7, kind: output, shape index: {}]  }
   0x1 LB: > { %s4865_s25 = sadd.s32 4294967295, %s4813_s24   ;;  %p3708_p0 = scmp.ge.s32.totalorder %s4813_s24, 1  ;;  %s4813_s24 = sphi %s4859_s24, %s18_s24  }
   0x2   : > { %p206_p1 = scmp.lt.s32.totalorder %s4813_s24, 3  ;;  %s4815_s26 = smov [#allocation4]  }
   0x3   : > { %s221_s27 = sshll.u32 %s4815_s26, 4  ;;  %p4639_p3 = scmp.eq.s32.totalorder %s4865_s25, 0  ;;  %s222_s27 = int_to_ptr.vmem [resolvable:$true] %s221_s27 }
   0x4   : > { %p4869_p2 = pnand %p3708_p0, %p206_p1  ;;  %s4788_s29 = scalar_lea.vmem %s222_s27, 9216 }
   0x5   : > { %p4789_p7 = scmp.ne.s32.totalorder %s222_s27, %s4788_s29  ;;  %p4796_p10 = scmp.lt.s32.totalorder %s222_s27, %s222_s27 }
   0x6   : > { %p4635_p4 = pneg %p4869_p2  ;;  %p4797_p11 = scmp.lt.s32.totalorder %s4788_s29, %s4788_s29 }
   0x8   : > { %p4636_p5 = pnand %p4639_p3, %p4635_p4  ;;  %p4798_p12 = por %p4797_p11, %p4796_p10 }
   0xa   : > { %p4779_p6 = pneg %p4636_p5 }
   0xc   : > { %p4791_p8 = pnand %p4789_p7, %p4779_p6 }
   0xe   : > { %p4792_p9 = pneg %p4791_p8 }
  0x10   : > { %p4799_p13 = pnand %p4798_p12, %p4792_p9 }
  0x12   : > { %4802 = shalt.err (!%p4799_p13)
}
  0x13   : > { %s4816_s30 = smov 64   ;;  %s4817_s8 = smov 4  }
  0x14   : > { %4638 = dma.hbm_to_vmem [thread:$0]  (!%p4636_p5), %s6034_s3, 9216, %s222_s27, [#allocation5], %s4816_s30, %s4816_s30, %s4817_s8  }
  0x15   : > { %262 = sbr.rel (%p4869_p2) target bundleno = 703 (0x2bf), region = 48 }
  0x1a   : > { %4808 = dma.done.wait (%p4639_p3), [#allocation5], 9216  }
  0x1b   : > { %4810 = vsyncadd (%p4639_p3), [#allocation5], 4294958080  ;;  %vm315_vm0 = vcmask 519168   ;;  %v4818_v0 = vmov 0   ;;  %vm317_vm1 = vcmask 516096   ;;  %p299_p0 = scmp.lt.s32.totalorder %s4865_s25, 1 }
  0x1c   : > { %316 = vst.msk [vmem:[#allocation2] sm:$0xf] %vm315_vm0, %v4818_v0  ;;  %319 = vst.msk [vmem:[#allocation2 + $0x8] sm:$0xf] %vm315_vm0, %v4818_v0  ;;  %v4653_v1 = vld [vmem:[#allocation4 + $0x38] sm:$0xff]   ;;  %v4655_v3 = vld [vmem:[#allocation4 + $0x30] sm:$0xff]  }
  0x1d   : > { %321 = vst.msk [vmem:[#allocation2 + $0x10] sm:$0xf] %vm315_vm0, %v4818_v0  ;;  %323 = vst.msk [vmem:[#allocation2 + $0x18] sm:$0xf] %vm315_vm0, %v4818_v0  ;;  %s6168_s25 = smov (!%p299_p0, %s4865_s25), 1  ;;  %v4654_v2 = vld [vmem:[%s6033_s2 + $0x18] sm:$0xff]   ;;  %4247 = vmatprep.subr.bf16.mxu0 %v4653_v1 }
  0x1e   : > { %325 = vst.msk [vmem:[#allocation2 + $0x20] sm:$0xf] %vm315_vm0, %v4818_v0  ;;  %327 = vst.msk [vmem:[#allocation2 + $0x28] sm:$0xf] %vm315_vm0, %v4818_v0  ;;  %4271 = vmatprep.subr.bf16.mxu1 %v4654_v2  ;;  %4248 = vmatpush3.bf16.msra.mxu0 %v4653_v1  ;;  %v4656_v4 = vld [vmem:[%s6033_s2 + $0x10] sm:$0xff]   ;;  %s4915_s15 = sshll.u32 %s6168_s25, 5 }
  0x1f   : > { %329 = vst.msk [vmem:[#allocation2 + $0x30] sm:$0xf] %vm315_vm0, %v4818_v0  ;;  %331 = vst.msk [vmem:[#allocation2 + $0x38] sm:$0xf] %vm315_vm0, %v4818_v0  ;;  %4272 = vmatpush3.bf16.msra.mxu1 %v4654_v2  ;;  %4249 = vmatprep.subr.bf16.mxu0 %v4655_v3  ;;  %v4657_v5 = vld [vmem:[#allocation4 + $0x28] sm:$0xff]   ;;  %s4924_s20 = scalar_lea.vmem %s6031_s0, %s4915_s15  ;;  %v4659_v7 = vld [vmem:[#allocation4 + $0x20] sm:$0xff]   ;;  %s4960_s26 = scalar_lea.vmem %s6032_s1, %s4915_s15 }
  0x20   : > { %333 = vst.msk [vmem:[#allocation2 + $0x40] sm:$0xf] %vm315_vm0, %v4818_v0  ;;  %335 = vst.msk [vmem:[#allocation2 + $0x48] sm:$0xf] %vm315_vm0, %v4818_v0  ;;  %4273 = vmatprep.subr.bf16.mxu1 %v4656_v4  ;;  %v4658_v6 = vld [vmem:[%s6033_s2 + $0x8] sm:$0xff]   ;;  %v4660_v8 = vld [vmem:[%s6033_s2] sm:$0xff]   ;;  %s313_s29 = scalar_lea.vmem %s6038_s7, %s4915_s15 }
  0x21   : > { %337 = vst [vmem:[#allocation3] sm:$0xf] %v4818_v0  ;;  %338 = vst [vmem:[#allocation3 + $0x4] sm:$0x1] %v4818_v0  ;;  %vm447_vm2 = vsmask.f32 7938 }
  0x22   : > { %339 = vst [vmem:[#allocation3 + $0x8] sm:$0xf] %v4818_v0  ;;  %340 = vst [vmem:[#allocation3 + $0xc] sm:$0x1] %v4818_v0  ;;  %4250 = vmatpush3.bf16.msra.mxu0 %v4655_v3  ;;  %v357_v9 = vld [vmem:[%s4924_s20] sm:$0xf] }
  0x23   : > { %341 = vst [vmem:[#allocation3 + $0x10] sm:$0xf] %v4818_v0  ;;  %342 = vst [vmem:[#allocation3 + $0x14] sm:$0x1] %v4818_v0  ;;  %4274 = vmatpush3.bf16.msra.mxu1 %v4656_v4  ;;  %4251 = vmatprep.subr.bf16.mxu0 %v4657_v5  ;;  %v4930_v10 = vld [vmem:[#allocation2] sm:$0xf] }
  0x24   : > { %343 = vst [vmem:[#allocation3 + $0x18] sm:$0xf] %v4818_v0  ;;  %344 = vst [vmem:[#allocation3 + $0x1c] sm:$0x1] %v4818_v0  ;;  %4275 = vmatprep.subr.bf16.mxu1 %v4658_v6  ;;  %v366_v11 = vshrl.u32 %v357_v9, 16  ;;  %v369_v12 = vshll.u32 %v357_v9, 16 }
  0x25   : > { %345 = vst [vmem:[#allocation3 + $0x20] sm:$0xf] %v4818_v0  ;;  %346 = vst [vmem:[#allocation3 + $0x24] sm:$0x1] %v4818_v0  ;;  %v968_v13 = vshrl.u32 %v4930_v10, 16  ;;  %v971_v14 = vshll.u32 %v4930_v10, 16 }
  0x26   : > { %347 = vst [vmem:[#allocation3 + $0x28] sm:$0xf] %v4818_v0  ;;  %348 = vst [vmem:[#allocation3 + $0x2c] sm:$0x1] %v4818_v0  ;;  %4252 = vmatpush3.bf16.msra.mxu0 %v4657_v5  ;;  %v4661_v15 = vld [vmem:[#allocation4 + $0x18] sm:$0xff]   ;;  %v4935_v17 = vrot.slane %v366_v11, 7 }
  0x27   : > { %349 = vst [vmem:[#allocation3 + $0x30] sm:$0xf] %v4818_v0  ;;  %350 = vst [vmem:[#allocation3 + $0x34] sm:$0x1] %v4818_v0  ;;  %v358_v16 = vld [vmem:[%s4924_s20 + $0x4] sm:$0xf]  ;;  %4276 = vmatpush3.bf16.msra.mxu1 %v4658_v6  ;;  %4253 = vmatprep.subr.bf16.mxu0 %v4659_v7 }
  0x28   : > { %351 = vst [vmem:[#allocation3 + $0x38] sm:$0xf] %v4818_v0  ;;  %352 = vst [vmem:[#allocation3 + $0x3c] sm:$0x1] %v4818_v0  ;;  %v449_v18 = vld [vmem:[#allocation2 + $0x8] sm:$0xf]  ;;  %4277 = vmatprep.subr.bf16.mxu1 %v4660_v8  ;;  %v371_v27 = vor.u32 %v369_v12, %v4935_v17 }
  0x29   : > { %353 = vst [vmem:[#allocation3 + $0x40] sm:$0xf] %v4818_v0  ;;  %354 = vst [vmem:[#allocation3 + $0x44] sm:$0x1] %v4818_v0  ;;  %v359_v19 = vld [vmem:[%s4924_s20 + $0x8] sm:$0xf] }
  0x2a   : > { %355 = vst [vmem:[#allocation3 + $0x48] sm:$0xf] %v4818_v0  ;;  %356 = vst [vmem:[#allocation3 + $0x4c] sm:$0x1] %v4818_v0  ;;  %v374_v20 = vshrl.u32 %v358_v16, 16  ;;  %v970_v22 = vrot.slane %v968_v13, 4  ;;  %4254 = vmatpush3.bf16.msra.mxu0 %v4659_v7 }
  0x2b   : > { %318 = vst.msk [vmem:[#allocation2 + $0x4] sm:$0x1] %vm317_vm1, %v4818_v0  ;;  %320 = vst.msk [vmem:[#allocation2 + $0xc] sm:$0x1] %vm317_vm1, %v4818_v0  ;;  %v4944_v23 = vld [vmem:[#allocation4 + $0x78] sm:$0xff]   ;;  %v377_v24 = vshll.u32 %v358_v16, 16  ;;  %4278 = vmatpush3.bf16.msra.mxu1 %v4660_v8  ;;  %4255 = vmatprep.subr.bf16.mxu0 %v4661_v15 }
  0x2c   : > { %322 = vst.msk [vmem:[#allocation2 + $0x14] sm:$0x1] %vm317_vm1, %v4818_v0  ;;  %324 = vst.msk [vmem:[#allocation2 + $0x1c] sm:$0x1] %vm317_vm1, %v4818_v0  ;;  %v382_v25 = vshrl.u32 %v359_v19, 16  ;;  %v385_v26 = vshll.u32 %v359_v19, 16  ;;  %4287 = vmatprep.subr.bf16.mxu1 %v4944_v23 }
  0x2d   : > { %326 = vst.msk [vmem:[#allocation2 + $0x24] sm:$0x1] %vm317_vm1, %v4818_v0  ;;  %328 = vst.msk [vmem:[#allocation2 + $0x2c] sm:$0x1] %vm317_vm1, %v4818_v0  ;;  %v973_v28 = vrot.slane %v971_v14, 5  ;;  %v4947_v29 = vrot.slane %v374_v20, 7 }
  0x2e   : > { %330 = vst.msk [vmem:[#allocation2 + $0x34] sm:$0x1] %vm317_vm1, %v4818_v0  ;;  %332 = vst.msk [vmem:[#allocation2 + $0x3c] sm:$0x1] %vm317_vm1, %v4818_v0  ;;  %v458_v30 = vld [vmem:[#allocation2 + $0x10] sm:$0xf]  ;;  %4256 = vmatpush3.bf16.msra.mxu0 %v4661_v15 }
  0x2f   : > { %334 = vst.msk [vmem:[#allocation2 + $0x44] sm:$0x1] %vm317_vm1, %v4818_v0  ;;  %336 = vst.msk [vmem:[#allocation2 + $0x4c] sm:$0x1] %vm317_vm1, %v4818_v0  ;;  %v4949_v31 = vrot.slane %v382_v25, 7  ;;  %v4665_v32 = vld [vmem:[#allocation4 + $0x10] sm:$0xff]   ;;  %v379_v34 = vor.u32 %v377_v24, %v4947_v29  ;;  %v974_v38 = vor.u32 %v973_v28, %v970_v22 }
  0x30   : > { %vm4940_vm3 = vmand %vm315_vm0, %vm447_vm2  ;;  %v464_v35 = vld [vmem:[#allocation2 + $0x18] sm:$0xf]  ;;  %4257 = vmatprep.subr.bf16.mxu0 %v4665_v32  ;;  %v4667_v40 = vld [vmem:[#allocation4 + $0x8] sm:$0xff]   ;;  %vm886_vm4 = vcmask 523264   ;;  %vm589_vm5 = vcmask 1043456   ;;  %v372_v45 = vrot.slane %v4935_v17, 4 }
  0x31   : > { %v450_v33 = vsel %vm4940_vm3, %v371_v27, %v449_v18  ;;  %v387_v36 = vor.u32 %v385_v26, %v4949_v31  ;;  %v459_v37 = vsel %vm4940_vm3, %v379_v34, %v458_v30  ;;  %v500_v41 = vld [vmem:[%s4960_s26] sm:$0xf]  ;;  %v4967_v44 = vld [vmem:[#allocation3] sm:$0xf]  ;;  %v501_v49 = vld [vmem:[%s4960_s26 + $0x4] sm:$0xf] }
  0x32   : > { %451 = vst [vmem:[#allocation2 + $0x8] sm:$0xf] %v450_v33  ;;  %460 = vst [vmem:[#allocation2 + $0x10] sm:$0xf] %v459_v37  ;;  %v509_v42 = vshrl.u32 %v500_v41, 16  ;;  %v512_v43 = vshll.u32 %v500_v41, 16  ;;  %4258 = vmatpush3.bf16.msra.mxu0 %v4665_v32 }
  0x33   : > { %v465_v39 = vsel %vm4940_vm3, %v387_v36, %v464_v35  ;;  %v1080_v47 = vshrl.u32 %v4967_v44, 16  ;;  %v1083_v48 = vshll.u32 %v4967_v44, 16  ;;  %v4974_v50 = vrot.slane %v974_v38, 4  ;;  %v502_v53 = vld [vmem:[%s4960_s26 + $0x8] sm:$0xf]  ;;  %4259 = vmatprep.subr.bf16.mxu0 %v4667_v40  ;;  %v4669_v57 = vld [vmem:[#allocation4] sm:$0xff]   ;;  %vm4993_vm6 = vmand %vm589_vm5, %vm447_vm2 }
  0x34   : > { %466 = vst [vmem:[#allocation2 + $0x18] sm:$0xf] %v465_v39  ;;  %v4977_v52 = vrot.slane %v509_v42, 7  ;;  %v517_v54 = vshrl.u32 %v501_v49, 16  ;;  %v525_v59 = vshrl.u32 %v502_v53, 16  ;;  %v4666_v2 = vld [vmem:[#allocation4 + $0x70] sm:$0xff]  }
  0x35   : > { %v591_v0 = vld [vmem:[#allocation3 + $0x8] sm:$0xf]  ;;  %v4997_v4 = vrot.slane %v1080_v47, 4  ;;  %v4999_v5 = vrot.slane %v1083_v48, 5  ;;  %v520_v7 = vshll.u32 %v501_v49, 16  ;;  %v528_v13 = vshll.u32 %v502_v53, 16 }
  0x36   : > { %v514_v63 = vor.u32 %v512_v43, %v4977_v52  ;;  %v5001_v6 = vrot.slane %v517_v54, 7  ;;  %4260 = vmatpush3.bf16.msra.mxu0 %v4667_v40  ;;  %v5008_v12 = vrot.slane %v525_v59, 7  ;;  %v599_v14 = vld [vmem:[#allocation3 + $0x10] sm:$0xf]  ;;  %v515_v19 = vrot.slane %v4977_v52, 4  ;;  %v5020_v22 = vld [vmem:[%s6033_s2 + $0x38] sm:$0xff]  }
  0x37   : > { %4261 = vmatprep.subr.bf16.mxu0 %v4669_v57  ;;  %v605_v20 = vld [vmem:[#allocation3 + $0x18] sm:$0xf]  ;;  %v503_v42 = vld [vmem:[%s4960_s26 + $0xc] sm:$0xf]  ;;  %v504_v43 = vld [vmem:[%s4960_s26 + $0x10] sm:$0xf] }
  0x38   : > { %v592_v27 = vsel %vm4993_vm6, %v514_v63, %v591_v0  ;;  %v4668_v33 = vld [vmem:[#allocation4 + $0x68] sm:$0xff]   ;;  %v522_v34 = vor.u32 %v520_v7, %v5001_v6  ;;  %v530_v37 = vor.u32 %v528_v13, %v5008_v12  ;;  %v523_v40 = vrot.slane %v5001_v6, 4  ;;  %v4670_v47 = vld [vmem:[#allocation4 + $0x60] sm:$0xff]   ;;  %v617_v63 = vld [vmem:[#allocation3 + $0x28] sm:$0xf] }
  0x39   : > { %v4980_v55 = vld [vmem:[#allocation2 + $0x8] sm:$0xf]  ;;  %v4989_v1 = vld [vmem:[#allocation2 + $0x10] sm:$0xf]  ;;  %593 = vst [vmem:[#allocation3 + $0x8] sm:$0xf] %v592_v27 }
  0x3a   : > { %v3731_v60 = vcombine.low %v4930_v10, %v4980_v55  ;;  %v982_v61 = vshrl.u32 %v4980_v55, 16  ;;  %v985_v62 = vshll.u32 %v4980_v55, 16  ;;  %v996_v9 = vshrl.u32 %v4989_v1, 16  ;;  %4262 = vmatpush3.bf16.msra.mxu0 %v4669_v57  ;;  %v611_v57 = vld [vmem:[#allocation3 + $0x20] sm:$0xf] }
  0x3b   : > { %v5004_v8 = vld [vmem:[#allocation2 + $0x18] sm:$0xf]  ;;  %v999_v11 = vshll.u32 %v4989_v1, 16  ;;  %v600_v38 = vsel %vm4993_vm6, %v522_v34, %v599_v14  ;;  %4311 = vmatprep.subr.bf16.mxu0 %v5020_v22  ;;  %v533_v48 = vshrl.u32 %v503_v42, 16  ;;  %v536_v49 = vshll.u32 %v503_v42, 16  ;;  %v4676_v39 = vld [vmem:[%s6033_s2 + $0x30] sm:$0xff]  }
  0x3c   : > { %4279 = vmatprep.mubr.msk.bf16.mxu1 %vm886_vm4, %v3731_v60  ;;  %v5012_v15 = vcombine.low %v4989_v1, %v5004_v8  ;;  %v1010_v16 = vshrl.u32 %v5004_v8, 16  ;;  %v1013_v18 = vshll.u32 %v5004_v8, 16  ;;  %v5022_v24 = vrot.slane %v982_v61, 4  ;;  %601 = vst [vmem:[#allocation3 + $0x10] sm:$0xf] %v600_v38 }
  0x3d   : > { %v5024_v25 = vrot.slane %v985_v62, 5  ;;  %v5031_v28 = vrot.slane %v996_v9, 4  ;;  %v5033_v30 = vrot.slane %v999_v11, 5  ;;  %v541_v53 = vshrl.u32 %v504_v43, 16  ;;  %v360_v59 = vld [vmem:[%s4924_s20 + $0xc] sm:$0xf] }
  0x3e   : > { %6062 = vst [vmem:[#allocation7_spill] sm:$0xff] %v5012_v15  ;;  %4280 = vmatmul.mubr.msk.bf16.vlgmr.msra.gmra.mxu1 %vm886_vm4, %v5012_v15  ;;  %v5037_v35 = vrot.slane %v1010_v16, 4  ;;  %v5039_v36 = vrot.slane %v1013_v18, 5  ;;  %v544_v54 = vshll.u32 %v504_v43, 16  ;;  %vm453_vm7 = vsmask.f32 256 }
  0x3f   : > { %4288 = vmatpush3.bf16.msra.mxu1 %v4944_v23  ;;  %v606_v23 = vsel %vm4993_vm6, %v530_v37, %v605_v20  ;;  %v361_v60 = vld [vmem:[%s4924_s20 + $0x10] sm:$0xf]  ;;  %v5056_v61 = vrot.slane %v533_v48, 7  ;;  %v5058_v62 = vrot.slane %v541_v53, 7  ;;  %v390_v0 = vshrl.u32 %v360_v59, 16  ;;  %vm5132_vm9 = vmand %vm317_vm1, %vm453_vm7  ;;  %v4689_v15 = vld [vmem:[#allocation4 + $0xa8] sm:$0xff]  }
  0x40   : > { %4289 = vmatprep.subr.bf16.mxu1 %v4666_v2  ;;  %607 = vst [vmem:[#allocation3 + $0x18] sm:$0xf] %v606_v23  ;;  %v393_v7 = vshll.u32 %v360_v59, 16  ;;  %vm594_vm8 = vcmask 1040384   ;;  %v5060_v9 = vld [vmem:[#allocation3 + $0x8] sm:$0xf]  ;;  %v6100_v3 = vcombine.low %v4980_v55, %v4989_v1 }
  0x41   : > { %v398_v11 = vshrl.u32 %v361_v60, 16  ;;  %v401_v13 = vshll.u32 %v361_v60, 16  ;;  %v5063_v14 = vld [vmem:[%s4960_s26 + $0x14] sm:$0xf]  ;;  %v538_v16 = vor.u32 %v536_v49, %v5056_v61  ;;  %v546_v18 = vor.u32 %v544_v54, %v5058_v62  ;;  %v470_v27 = vld [vmem:[#allocation2 + $0x20] sm:$0xf]  ;;  %vm5150_vm12 = vmand %vm594_vm8, %vm453_vm7 }
  0x42   : > { %v5069_v20 = vrot.slane %v390_v0, 7  ;;  %v506_v34 = vld [vmem:[%s4960_s26 + $0x18] sm:$0xf]  ;;  %v476_v38 = vld [vmem:[#allocation2 + $0x28] sm:$0xf]  ;;  %v549_v23 = vshrl.u32 %v5063_v14, 16 }
  0x43   : > { %4290 = vmatpush3.bf16.msra.mxu1 %v4666_v2  ;;  %v3719_v2 = vcombine.low %v4967_v44, %v5060_v9  ;;  %v5072_v37 = vrot.slane %v398_v11, 7  ;;  %v552_v42 = vshll.u32 %v5063_v14, 16  ;;  %v557_v43 = vshrl.u32 %v506_v34, 16  ;;  %v5076_v48 = vld [vmem:[#allocation3 + $0x10] sm:$0xf]  ;;  %v4673_v49 = vld [vmem:[#allocation4 + $0x58] sm:$0xff]  }
  0x44   : > { %4291 = vmatprep.subr.bf16.mxu1 %v4668_v33  ;;  %v612_v53 = vsel %vm4993_vm6, %v538_v16, %v611_v57  ;;  %v618_v54 = vsel %vm4993_vm6, %v546_v18, %v617_v63  ;;  %v560_v59 = vshll.u32 %v506_v34, 16  ;;  %v5084_v60 = vld [vmem:[%s4924_s20 + $0x14] sm:$0xf]  ;;  %v1108_v11 = vshrl.u32 %v5076_v48, 16  ;;  %v623_v32 = vld [vmem:[#allocation3 + $0x30] sm:$0xf] }
  0x45   : > { %4263 = vmatprep.mubr.bf16.mxu0 %v3719_v2  ;;  %v1111_v14 = vshll.u32 %v5076_v48, 16  ;;  %613 = vst [vmem:[#allocation3 + $0x20] sm:$0xf] %v612_v53  ;;  %619 = vst [vmem:[#allocation3 + $0x28] sm:$0xf] %v618_v54  ;;  %v403_v57 = vor.u32 %v401_v13, %v5072_v37  ;;  %v5099_v34 = vld [vmem:[#allocation4 + $0x50] sm:$0xff]  }
  0x46   : > { %v363_v53 = vld [vmem:[%s4924_s20 + $0x18] sm:$0xf]  ;;  %v5105_v54 = vrot.slane %v1108_v11, 4  ;;  %v629_v18 = vld [vmem:[#allocation3 + $0x38] sm:$0xf]  ;;  %v5120_v11 = vrot.slane %v557_v43, 7 }
  0x47   : > { %4292 = vmatpush3.bf16.msra.mxu1 %v4668_v33  ;;  %v395_v33 = vor.u32 %v393_v7, %v5069_v20  ;;  %v5086_v0 = vld [vmem:[#allocation3 + $0x18] sm:$0xf]  ;;  %v5107_v13 = vrot.slane %v1111_v14, 5  ;;  %v477_v58 = vsel %vm4940_vm3, %v403_v57, %v476_v38  ;;  %v406_v38 = vshrl.u32 %v5084_v60, 16  ;;  %v596_v51 = vld [vmem:[#allocation3 + $0xc] sm:$0x1] }
  0x48   : > { %4293 = vmatprep.subr.bf16.mxu1 %v4670_v47  ;;  %v5094_v63 = vcombine.low %v5076_v48, %v5086_v0  ;;  %v1122_v7 = vshrl.u32 %v5086_v0, 16  ;;  %v1125_v16 = vshll.u32 %v5086_v0, 16  ;;  %478 = vst [vmem:[#allocation2 + $0x28] sm:$0xf] %v477_v58  ;;  %v414_v14 = vshrl.u32 %v363_v53, 16  ;;  %v4712_v58 = vld [vmem:[%s6033_s2 + $0x90] sm:$0xff]  }
  0x49   : > { %v471_v2 = vsel %vm4940_vm3, %v395_v33, %v470_v27  ;;  %v5125_v27 = vld [vmem:[%s6033_s2 + $0x28] sm:$0xff]   ;;  %v409_v33 = vshll.u32 %v5084_v60, 16  ;;  %v417_v57 = vshll.u32 %v363_v53, 16  ;;  %vm964_vm10 = vsmask.f32 3328 }
  0x4a   : > { %6063 = vst [vmem:[#allocation8_spill] sm:$0xff] %v5094_v63  ;;  %4264 = vmatmul.mubr.bf16.vlgmr.msra.gmra.mxu0 %v5094_v63  ;;  %v5114_v26 = vrot.slane %v1122_v7, 4  ;;  %v5116_v46 = vrot.slane %v1125_v16, 5  ;;  %472 = vst [vmem:[#allocation2 + $0x20] sm:$0xf] %v471_v2  ;;  %v562_v43 = vor.u32 %v560_v59, %v5120_v11  ;;  %v5140_v7 = vld [vmem:[#allocation4 + $0x48] sm:$0xff]   ;;  %v1086_v16 = vor.u32 %v4999_v5, %v4997_v4 }
  0x4b   : > { %4294 = vmatpush3.bf16.msra.mxu1 %v4670_v47  ;;  %v5118_v47 = vrot.slane %v549_v23, 7  ;;  %4312 = vmatpush3.bf16.msra.mxu0 %v5020_v22  ;;  %vm965_vm11 = vsmask.f32 7440  ;;  %v482_v2 = vld [vmem:[#allocation2 + $0x30] sm:$0xf]  ;;  %v5144_v53 = vrot.slane %v406_v38, 7 }
  0x4c   : > { %4295 = vmatprep.subr.bf16.mxu1 %v4673_v49  ;;  %4313 = vmatprep.subr.bf16.mxu0 %v4676_v39  ;;  %v488_v60 = vld [vmem:[#allocation2 + $0x38] sm:$0xf]  ;;  %v5146_v56 = vrot.slane %v414_v14, 7  ;;  %v5161_v5 = vld [vmem:[#allocation3 + $0x20] sm:$0xf]  ;;  %v630_v14 = vsel %vm4993_vm6, %v562_v43, %v629_v18  ;;  %v597_v18 = vsel %vm5150_vm12, %v515_v19, %v596_v51  ;;  %v4683_v43 = vld [vmem:[#allocation4 + $0x40] sm:$0xff]  }
  0x4d   : > { %v554_v22 = vor.u32 %v552_v42, %v5118_v47  ;;  %v988_v42 = vor.u32 %v5024_v25, %v5022_v24  ;;  %v1114_v24 = vor.u32 %v5107_v13, %v5105_v54  ;;  %631 = vst [vmem:[#allocation3 + $0x38] sm:$0xf] %v630_v14  ;;  %v411_v59 = vor.u32 %v409_v33, %v5144_v53  ;;  %v5177_v41 = vld [vmem:[#allocation3 + $0x4] sm:$0x1]  ;;  %v602_v17 = vld [vmem:[#allocation3 + $0x14] sm:$0x1]  ;;  %vm5262_vm13 = vmor %vm964_vm10, %vm965_vm11 }
  0x4e   : > { %v419_v4 = vor.u32 %v417_v57, %v5146_v56  ;;  %v1089_v54 = vshll.u32 %v5177_v41, 16  ;;  %v1094_v13 = vshrl.u32 %v5060_v9, 16  ;;  %v1097_v33 = vshll.u32 %v5060_v9, 16  ;;  %v455_v57 = vld [vmem:[#allocation2 + $0xc] sm:$0x1]  ;;  %v4715_v23 = vld [vmem:[#allocation4 + $0x120] sm:$0xff]  }
  0x4f   : > { %4296 = vmatpush3.bf16.msra.mxu1 %v4673_v49  ;;  %v5163_v49 = vld [vmem:[#allocation3 + $0x28] sm:$0xf]  ;;  %v624_v38 = vsel %vm4993_vm6, %v554_v22, %v623_v32  ;;  %4314 = vmatpush3.bf16.msra.mxu0 %v4676_v39  ;;  %v1128_v32 = vor.u32 %v5116_v46, %v5114_v26  ;;  %v4684_v39 = vld [vmem:[%s6033_s2 + $0x20] sm:$0xff]   ;;  %v5196_v26 = vld [vmem:[#allocation2 + $0x28] sm:$0xf]  ;;  %v483_v52 = vsel %vm4940_vm3, %v411_v59, %v482_v2  ;;  %v5213_v2 = vrot.slane %v1086_v16, 4 }
  0x50   : > { %4297 = vmatprep.subr.bf16.mxu1 %v5099_v34  ;;  %v5173_v25 = vcombine.low %v5161_v5, %v5163_v49  ;;  %625 = vst [vmem:[#allocation3 + $0x30] sm:$0xf] %v624_v38  ;;  %4315 = vmatprep.subr.bf16.mxu0 %v5125_v27  ;;  %v489_v51 = vsel %vm4940_vm3, %v419_v4, %v488_v60  ;;  %598 = vst [vmem:[#allocation3 + $0xc] sm:$0x1] %v597_v18  ;;  %v5206_v22 = vld [vmem:[#allocation2 + $0x4] sm:$0x1] }
  0x51   : > { %v5194_v46 = vld [vmem:[#allocation2 + $0x20] sm:$0xf]  ;;  %v456_v19 = vsel %vm5132_vm9, %v372_v45, %v455_v57  ;;  %484 = vst [vmem:[#allocation2 + $0x30] sm:$0xf] %v483_v52  ;;  %490 = vst [vmem:[#allocation2 + $0x38] sm:$0xf] %v489_v51  ;;  %v603_v14 = vsel %vm5150_vm12, %v523_v40, %v602_v17  ;;  %v6076_v17 = vor.u32 %v5039_v36, %v5037_v35 }
  0x52   : > { %6068 = vst [vmem:[#allocation9_spill] sm:$0xff] %v5173_v25  ;;  %4267 = vmatprep.mubr.bf16.mxu0 %v5173_v25  ;;  %v1096_v60 = vrot.slane %v1094_v13, 4  ;;  %v1099_v59 = vrot.slane %v1097_v33, 5  ;;  %457 = vst [vmem:[#allocation2 + $0xc] sm:$0x1] %v456_v19  ;;  %v5216_v45 = vrot.slane %v1089_v54, 5  ;;  %v6073_v19 = vor.u32 %v5033_v30, %v5031_v28 }
  0x53   : > { %4298 = vmatpush3.bf16.msra.mxu1 %v5099_v34  ;;  %v5210_v34 = vcombine.low %v5194_v46, %v5196_v26  ;;  %4316 = vmatpush3.bf16.msra.mxu0 %v5125_v27  ;;  %v977_v4 = vshll.u32 %v5206_v22, 16  ;;  %v5219_v38 = vrot.slane %v988_v42, 4  ;;  %v608_v18 = vld [vmem:[#allocation3 + $0x1c] sm:$0x1]  ;;  %v5225_v16 = vld [vmem:[#allocation4 + $0xb8] sm:$0xff]   ;;  %v6070_v27 = vrot.slane %v5008_v12, 4 }
  0x54   : > { %4299 = vmatprep.subr.bf16.mxu1 %v5140_v7  ;;  %4317 = vmatprep.subr.bf16.mxu0 %v4684_v39  ;;  %v1100_v13 = vor.u32 %v1099_v59, %v1096_v60  ;;  %604 = vst [vmem:[#allocation3 + $0x14] sm:$0x1] %v603_v14  ;;  %v5233_v54 = vrot.slane %v1114_v24, 4  ;;  %v5235_v6 = vrot.slane %v1128_v32, 4  ;;  %v461_v33 = vld [vmem:[#allocation2 + $0x14] sm:$0x1] }
  0x55   : > { %6069 = vst [vmem:[#allocation10_spill] sm:$0xff] %v5210_v34  ;;  %4283 = vmatprep.mubr.msk.bf16.mxu1 %vm886_vm4, %v5210_v34  ;;  %v609_v42 = vsel %vm5150_vm12, %v6070_v27, %v608_v18  ;;  %v467_v40 = vld [vmem:[#allocation2 + $0x1c] sm:$0x1]  ;;  %v979_v52 = vrot.slane %v977_v4, 5  ;;  %v6071_v12 = vrot.slane %v4947_v29, 4  ;;  %v6072_v24 = vrot.slane %v4949_v31, 4 }
  0x56   : > { %v5240_v57 = vld [vmem:[%s6033_s2 + $0x58] sm:$0xff]   ;;  %610 = vst [vmem:[#allocation3 + $0x1c] sm:$0x1] %v609_v42  ;;  %v5254_v60 = vrot.slane %v6073_v19, 4  ;;  %v1101_v31 = vrot.slane %v1100_v13, 4  ;;  %v1017_v28 = vrot.slane %v6076_v17, 4 }
  0x57   : > { %4300 = vmatpush3.bf16.msra.mxu1 %v5140_v7  ;;  %v462_v51 = vsel %vm5132_vm9, %v6071_v12, %v461_v33  ;;  %v468_v32 = vsel %vm5132_vm9, %v6072_v24, %v467_v40  ;;  %v5256_v59 = vld [vmem:[#allocation3 + $0x30] sm:$0xf]  ;;  %v5258_v7 = vld [vmem:[#allocation3 + $0x38] sm:$0xf]  ;;  %4318 = vmatpush3.bf16.msra.mxu0 %v4684_v39  ;;  %v5279_v13 = vld [vmem:[#allocation3 + $0xc] sm:$0x1] }
  0x58   : > { %4301 = vmatprep.subr.bf16.mxu1 %v4683_v43  ;;  %463 = vst [vmem:[#allocation2 + $0x14] sm:$0x1] %v462_v51  ;;  %469 = vst [vmem:[#allocation2 + $0x1c] sm:$0x1] %v468_v32  ;;  %v5275_v14 = vcombine.low %v5256_v59, %v5258_v7  ;;  %4327 = vmatprep.subr.bf16.mxu0 %v5225_v16  ;;  %v5283_v35 = vld [vmem:[#allocation2 + $0x30] sm:$0xf] }
  0x59   : > { %v5285_v36 = vld [vmem:[#allocation2 + $0x38] sm:$0xf]  ;;  %v1103_v27 = vshll.u32 %v5279_v13, 16  ;;  %v539_v42 = vrot.slane %v5056_v61, 4  ;;  %v5293_v33 = vld [vmem:[#allocation2 + $0xc] sm:$0x1] }
  0x5a   : > { %6077 = vst [vmem:[#allocation11_spill] sm:$0xff] %v5275_v14  ;;  %4268 = vmatmul.mubr.bf16.gmra.mxu0 %v5275_v14  ;;  %v5291_v39 = vcombine.low %v5283_v35, %v5285_v36  ;;  %v547_v40 = vrot.slane %v5058_v62, 4  ;;  %v1136_v12 = vshrl.u32 %v5161_v5, 16  ;;  %v991_v61 = vshll.u32 %v5293_v33, 16  ;;  %v614_v32 = vld [vmem:[#allocation3 + $0x24] sm:$0x1] }
  0x5b   : > { %4302 = vmatpush3.bf16.msra.mxu1 %v4683_v43  ;;  %v1092_v43 = vsel %vm5262_vm13, %v5213_v2, %v5216_v45  ;;  %v1105_v51 = vrot.slane %v1103_v27, 5  ;;  %v5303_v24 = vld [vmem:[#allocation3 + $0x14] sm:$0x1]  ;;  %v980_v62 = vsel %vm5262_vm13, %v4974_v50, %v979_v52  ;;  %v615_v2 = vsel %vm5150_vm12, %v539_v42, %v614_v32  ;;  %v620_v45 = vld [vmem:[#allocation3 + $0x2c] sm:$0x1] }
  0x5c   : > { %6078 = vst [vmem:[#allocation12_spill] sm:$0xff] %v5291_v39  ;;  %4351 = vmatprep.subr.bf16.mxu1 %v5240_v57  ;;  %4284 = vmatmul.mubr.msk.bf16.gmra.mxu1 %vm886_vm4, %v5291_v39  ;;  %v1117_v17 = vshll.u32 %v5303_v24, 16  ;;  %v1138_v27 = vrot.slane %v1136_v12, 4  ;;  %v993_v30 = vrot.slane %v991_v61, 5  ;;  %616 = vst [vmem:[#allocation3 + $0x24] sm:$0x1] %v615_v2  ;;  %v621_v50 = vsel %vm5150_vm12, %v547_v40, %v620_v45 }
  0x5d   : > { %v5310_v19 = vld [vmem:[#allocation3 + $0x1c] sm:$0x1]  ;;  %v5317_v18 = vsel %vm5262_vm13, %v1101_v31, %v1105_v51  ;;  %622 = vst [vmem:[#allocation3 + $0x2c] sm:$0x1] %v621_v50  ;;  %v1139_v61 = vshll.u32 %v5161_v5, 16  ;;  %v1150_v2 = vshrl.u32 %v5163_v49, 16 }
  0x5e   : > { %6079 = vst [vmem:[#allocation13_spill] sm:$0xff] %v5317_v18  ;;  %v1131_v4 = vshll.u32 %v5310_v19, 16  ;;  %v3751_v52 = vcombine.low %v1092_v43, %v5317_v18  ;;  %v1119_v42 = vrot.slane %v1117_v17, 5  ;;  %v5332_v31 = vsel %vm5262_vm13, %v5219_v38, %v993_v30  ;;  %v4687_v30 = vld [vmem:[#allocation4 + $0xb0] sm:$0xff]   ;;  %v626_v34 = vld [vmem:[#allocation3 + $0x34] sm:$0x1] }
  0x5f   : > { %v5320_v14 = vld [vmem:[#allocation2 + $0x14] sm:$0x1]  ;;  %v5322_v25 = vld [vmem:[#allocation2 + $0x1c] sm:$0x1]  ;;  %v3763_v40 = vcombine.low %v980_v62, %v5332_v31  ;;  %v1152_v50 = vrot.slane %v1150_v2, 4  ;;  %v1153_v39 = vshll.u32 %v5163_v49, 16 }
  0x60   : > { %v1005_v12 = vshll.u32 %v5320_v14, 16  ;;  %v1019_v32 = vshll.u32 %v5322_v25, 16  ;;  %v1133_v51 = vrot.slane %v1131_v4, 5  ;;  %4303 = vmatprep.mubr.bf16.mxu1 %v3751_v52  ;;  %v5340_v43 = vsel %vm5262_vm13, %v5233_v54, %v1119_v42  ;;  %v473_v52 = vld [vmem:[#allocation2 + $0x24] sm:$0x1]  ;;  %v4688_v42 = vld [vmem:[%s6033_s2 + $0x50] sm:$0xff]  }
  0x61   : > { %v1141_v4 = vrot.slane %v1139_v61, 5  ;;  %4319 = vmatprep.mubr.msk.bf16.mxu0 %vm886_vm4, %v3763_v40  ;;  %v1155_v2 = vrot.slane %v1153_v39, 5  ;;  %v4690_v39 = vld [vmem:[%s6033_s2 + $0x48] sm:$0xff]   ;;  %vm1475_vm14 = vcmask 1042432   ;;  %vm1476_vm15 = vcmask 1046532   ;;  %v4766_v29 = vld [vmem:[%s6033_s2 + $0x100] sm:$0xff]  }
  0x62   : > { %v1007_v17 = vrot.slane %v1005_v12, 5  ;;  %v1021_v45 = vrot.slane %v1019_v32, 5  ;;  %v5345_v38 = vsel %vm5262_vm13, %v5235_v6, %v1133_v51  ;;  %v396_v12 = vrot.slane %v5069_v20, 4  ;;  %v479_v32 = vld [vmem:[#allocation2 + $0x2c] sm:$0x1]  ;;  %vm5447_vm0 = vmor %vm1475_vm14, %vm1476_vm15 }
  0x63   : > { %6080 = vst [vmem:[#allocation14_spill] sm:$0xff] %v5345_v38  ;;  %v5351_v62 = vcombine.low %v5340_v43, %v5345_v38  ;;  %v1142_v61 = vor.u32 %v1141_v4, %v1138_v27  ;;  %v5372_v40 = vld [vmem:[#allocation3 + $0x24] sm:$0x1]  ;;  %v1027_v20 = vshll.u32 %v5194_v46, 16  ;;  %v1164_v18 = vshrl.u32 %v5256_v59, 16 }
  0x64   : > { %v5356_v54 = vsel %vm5262_vm13, %v5254_v60, %v1007_v17  ;;  %v5360_v6 = vsel %vm5262_vm13, %v1017_v28, %v1021_v45  ;;  %v404_v60 = vrot.slane %v5072_v37, 4  ;;  %v474_v28 = vsel %vm5132_vm9, %v396_v12, %v473_v52  ;;  %v5385_v37 = vld [vmem:[#allocation3 + $0x2c] sm:$0x1] }
  0x65   : > { %6081 = vst [vmem:[#allocation15_spill] sm:$0xff] %v5351_v62  ;;  %6082 = vst [vmem:[#allocation16_spill] sm:$0xff] %v5360_v6  ;;  %v5368_v51 = vcombine.low %v5356_v54, %v5360_v6  ;;  %4304 = vmatmul.mubr.bf16.vlgmr.msra.gmra.mxu1 %v5351_v62  ;;  %v1024_v17 = vshrl.u32 %v5194_v46, 16  ;;  %v1038_v45 = vshrl.u32 %v5196_v26, 16  ;;  %v1143_v27 = vrot.slane %v1142_v61, 4 }
  0x66   : > { %4352 = vmatpush3.bf16.msra.mxu1 %v5240_v57  ;;  %v1145_v4 = vshll.u32 %v5372_v40, 16  ;;  %v1156_v52 = vor.u32 %v1155_v2, %v1152_v50  ;;  %475 = vst [vmem:[#allocation2 + $0x24] sm:$0x1] %v474_v28  ;;  %v480_v12 = vsel %vm5132_vm9, %v404_v60, %v479_v32  ;;  %v632_v62 = vld [vmem:[#allocation3 + $0x3c] sm:$0x1]  ;;  %v1159_v63 = vshll.u32 %v5385_v37, 16 }
  0x67   : > { %6083 = vst [vmem:[#allocation17_spill] sm:$0xff] %v5368_v51  ;;  %4320 = vmatmul.mubr.msk.bf16.vlgmr.msra.gmra.mxu0 %vm886_vm4, %v5368_v51  ;;  %4353 = vmatprep.subr.bf16.mxu1 %v4688_v42  ;;  %481 = vst [vmem:[#allocation2 + $0x2c] sm:$0x1] %v480_v12  ;;  %v1026_v51 = vrot.slane %v1024_v17, 4  ;;  %v1029_v57 = vrot.slane %v1027_v20, 5  ;;  %v1040_v6 = vrot.slane %v1038_v45, 4 }
  0x68   : > { %4328 = vmatpush3.bf16.msra.mxu0 %v5225_v16  ;;  %v1147_v61 = vrot.slane %v1145_v4, 5  ;;  %v1157_v50 = vrot.slane %v1156_v52, 4  ;;  %v1041_v2 = vshll.u32 %v5196_v26, 16  ;;  %v555_v32 = vrot.slane %v5118_v47, 4  ;;  %v485_v52 = vld [vmem:[#allocation2 + $0x34] sm:$0x1] }
  0x69   : > { %4329 = vmatprep.subr.bf16.mxu0 %v4687_v30  ;;  %v1161_v60 = vrot.slane %v1159_v63, 5  ;;  %v1030_v28 = vor.u32 %v1029_v57, %v1026_v51  ;;  %v563_v16 = vrot.slane %v5120_v11, 4  ;;  %v1167_v4 = vshll.u32 %v5256_v59, 16  ;;  %v4691_v12 = vld [vmem:[#allocation4 + $0xa0] sm:$0xff]   ;;  %v491_v51 = vld [vmem:[#allocation2 + $0x3c] sm:$0x1] }
  0x6a   : > { %4354 = vmatpush3.bf16.msra.mxu1 %v4688_v42  ;;  %v5398_v17 = vsel %vm5262_vm13, %v1143_v27, %v1147_v61  ;;  %v1043_v20 = vrot.slane %v1041_v2, 5  ;;  %v627_v45 = vsel %vm5150_vm12, %v555_v32, %v626_v34  ;;  %v4692_v34 = vld [vmem:[%s6033_s2 + $0x40] sm:$0xff]   ;;  %v1166_v57 = vrot.slane %v1164_v18, 4 }
  0x6b   : > { %6084 = vst [vmem:[#allocation18_spill] sm:$0xff] %v5398_v17  ;;  %v5405_v63 = vsel %vm5262_vm13, %v1157_v50, %v1161_v60  ;;  %v1031_v11 = vrot.slane %v1030_v28, 4  ;;  %628 = vst [vmem:[#allocation3 + $0x34] sm:$0x1] %v627_v45  ;;  %v633_v42 = vsel %vm5150_vm12, %v563_v16, %v632_v62  ;;  %4355 = vmatprep.subr.bf16.mxu1 %v4690_v39  ;;  %v1169_v61 = vrot.slane %v1167_v4, 5 }
  0x6c   : > { %4330 = vmatpush3.bf16.msra.mxu0 %v4687_v30  ;;  %6085 = vst [vmem:[#allocation19_spill] sm:$0xff] %v5405_v63  ;;  %v5416_v30 = vcombine.low %v5398_v17, %v5405_v63  ;;  %v1044_v27 = vor.u32 %v1043_v20, %v1040_v6  ;;  %634 = vst [vmem:[#allocation3 + $0x3c] sm:$0x1] %v633_v42  ;;  %v1178_v2 = vshrl.u32 %v5258_v7, 16  ;;  %v1181_v62 = vshll.u32 %v5258_v7, 16 }
  0x6d   : > { %4331 = vmatprep.subr.bf16.mxu0 %v4689_v15  ;;  %v5418_v50 = vld [vmem:[#allocation2 + $0x24] sm:$0x1]  ;;  %v412_v32 = vrot.slane %v5144_v53, 4  ;;  %v420_v60 = vrot.slane %v5146_v56, 4  ;;  %v1170_v18 = vor.u32 %v1169_v61, %v1166_v57  ;;  %v1052_v20 = vshrl.u32 %v5283_v35, 16  ;;  %v5432_v56 = vld [vmem:[#allocation4 + $0xf8] sm:$0xff]  }
  0x6e   : > { %6086 = vst [vmem:[#allocation20_spill] sm:$0xff] %v5416_v30  ;;  %4307 = vmatprep.mubr.bf16.mxu1 %v5416_v30  ;;  %v5425_v28 = vld [vmem:[#allocation2 + $0x2c] sm:$0x1]  ;;  %v1033_v6 = vshll.u32 %v5418_v50, 16  ;;  %v1045_v16 = vrot.slane %v1044_v27, 4  ;;  %4356 = vmatpush3.bf16.msra.mxu1 %v4690_v39  ;;  %v1180_v4 = vrot.slane %v1178_v2, 4 }
  0x6f   : > { %v1047_v45 = vshll.u32 %v5425_v28, 16  ;;  %v1183_v42 = vrot.slane %v1181_v62, 5  ;;  %v486_v53 = vsel %vm5132_vm9, %v412_v32, %v485_v52  ;;  %4357 = vmatprep.subr.bf16.mxu1 %v4692_v34  ;;  %v1171_v30 = vrot.slane %v1170_v18, 4  ;;  %v4693_v39 = vld [vmem:[#allocation4 + $0x98] sm:$0xff]  }
  0x70   : > { %4332 = vmatpush3.bf16.msra.mxu0 %v4689_v15  ;;  %v1035_v47 = vrot.slane %v1033_v6, 5  ;;  %487 = vst [vmem:[#allocation2 + $0x34] sm:$0x1] %v486_v53  ;;  %v492_v27 = vsel %vm5132_vm9, %v420_v60, %v491_v51  ;;  %v1054_v57 = vrot.slane %v1052_v20, 4  ;;  %v1055_v2 = vshll.u32 %v5283_v35, 16 }
  0x71   : > { %4333 = vmatprep.subr.bf16.mxu0 %v4691_v12  ;;  %v1049_v61 = vrot.slane %v1047_v45, 5  ;;  %v1184_v17 = vor.u32 %v1183_v42, %v1180_v4  ;;  %493 = vst [vmem:[#allocation2 + $0x3c] sm:$0x1] %v492_v27  ;;  %v1066_v52 = vshrl.u32 %v5285_v36, 16  ;;  %v1069_v32 = vshll.u32 %v5285_v36, 16  ;;  %v4695_v42 = vld [vmem:[#allocation4 + $0x90] sm:$0xff]  }
  0x72   : > { %v5440_v15 = vsel %vm5262_vm13, %v1031_v11, %v1035_v47  ;;  %v5442_v62 = vld [vmem:[#allocation3 + $0x34] sm:$0x1]  ;;  %4358 = vmatpush3.bf16.msra.mxu1 %v4692_v34  ;;  %v1480_v60 = vrot.slane %v5206_v22, 5  ;;  %v3776_v6 = vrot.slane %v4980_v55, 9  ;;  %v1057_v45 = vrot.slane %v1055_v2, 5 }
  0x73   : > { %v5455_v18 = vsel %vm5262_vm13, %v1045_v16, %v1049_v61  ;;  %v5457_v47 = vld [vmem:[#allocation3 + $0x3c] sm:$0x1]  ;;  %v1173_v11 = vshll.u32 %v5442_v62, 16  ;;  %v1185_v20 = vrot.slane %v1184_v17, 4  ;;  %4367 = vmatprep.subr.bf16.mxu1 %v5432_v56  ;;  %v1068_v4 = vrot.slane %v1066_v52, 4 }
  0x74   : > { %4334 = vmatpush3.bf16.msra.mxu0 %v4691_v12  ;;  %v5463_v34 = vcombine.low %v5440_v15, %v5455_v18  ;;  %v1187_v22 = vshll.u32 %v5457_v47, 16  ;;  %v1071_v53 = vrot.slane %v1069_v32, 5  ;;  %v6089_v27 = vrot.slane %v4930_v10, 9  ;;  %v4697_v52 = vld [vmem:[#allocation4 + $0x88] sm:$0xff]   ;;  %v638_v55 = vld [vmem:[#allocation3 + $0x44] sm:$0x1] }
  0x75   : > { %4335 = vmatprep.subr.bf16.mxu0 %v4693_v39  ;;  %v1175_v16 = vrot.slane %v1173_v11, 5  ;;  %v1484_v12 = vrot.slane %v5293_v33, 5  ;;  %v1058_v38 = vor.u32 %v1057_v45, %v1054_v57  ;;  %v1488_v63 = vrot.slane %v5320_v14, 5 }
  0x76   : > { %v1481_v17 = vsel %vm5447_vm0, %v6089_v27, %v1480_v60  ;;  %4323 = vmatprep.mubr.msk.bf16.mxu0 %vm886_vm4, %v5463_v34  ;;  %v1189_v61 = vrot.slane %v1187_v22, 5  ;;  %v1492_v2 = vrot.slane %v5322_v25, 5  ;;  %v1072_v11 = vor.u32 %v1071_v53, %v1068_v4 }
  0x77   : > { %v5477_v32 = vsel %vm5262_vm13, %v1171_v30, %v1175_v16  ;;  %v5479_v10 = vld [vmem:[#allocation2 + $0x34] sm:$0x1]  ;;  %v5483_v33 = vsel %vm5447_vm0, %v3776_v6, %v1484_v12  ;;  %v1059_v60 = vrot.slane %v1058_v38, 4  ;;  %v6091_v4 = vrot.slane %v4989_v1, 9 }
  0x78   : > { %4336 = vmatpush3.bf16.msra.mxu0 %v4693_v39  ;;  %v5489_v14 = vsel %vm5262_vm13, %v1185_v20, %v1189_v61  ;;  %v5491_v25 = vld [vmem:[#allocation2 + $0x3c] sm:$0x1]  ;;  %v1061_v30 = vshll.u32 %v5479_v10, 16  ;;  %v3811_v22 = vcombine.low %v1481_v17, %v5483_v33  ;;  %v1073_v39 = vrot.slane %v1072_v11, 4 }
  0x79   : > { %4337 = vmatprep.subr.bf16.mxu0 %v4695_v42  ;;  %v5497_v6 = vcombine.low %v5477_v32, %v5489_v14  ;;  %v1075_v45 = vshll.u32 %v5491_v25, 16  ;;  %v5504_v20 = vsel %vm5447_vm0, %v6091_v4, %v1488_v63  ;;  %v6092_v38 = vrot.slane %v5004_v8, 9  ;;  %v4699_v63 = vld [vmem:[#allocation4 + $0x80] sm:$0xff]  }
  0x7a   : > { %v1063_v16 = vrot.slane %v1061_v30, 5  ;;  %v1520_v27 = vrot.slane %v5177_v41, 5  ;;  %v3784_v17 = vrot.slane %v5060_v9, 9  ;;  %v1524_v11 = vrot.slane %v5279_v13, 5 }
  0x7b   : > { %6090 = vst [vmem:[#allocation21_spill] sm:$0xff] %v5497_v6  ;;  %v5510_v53 = vsel %vm5447_vm0, %v6092_v38, %v1492_v2  ;;  %4308 = vmatmul.mubr.bf16.gmra.mxu1 %v5497_v6  ;;  %v1077_v12 = vrot.slane %v1075_v45, 5  ;;  %v1528_v30 = vrot.slane %v5303_v24, 5  ;;  %v6094_v41 = vrot.slane %v4967_v44, 9 }
  0x7c   : > { %v5517_v61 = vcombine.low %v5504_v20, %v5510_v53  ;;  %4338 = vmatpush3.bf16.msra.mxu0 %v4695_v42  ;;  %v5523_v2 = vsel %vm5262_vm13, %v1059_v60, %v1063_v16  ;;  %4359 = vmatprep.mubr.msk.bf16.mxu1 %vm886_vm4, %v3811_v22  ;;  %v1532_v4 = vrot.slane %v5310_v19, 5  ;;  %v3787_v42 = vrot.slane %v5161_v5, 9 }
  0x7d   : > { %4339 = vmatprep.subr.bf16.mxu0 %v4697_v52  ;;  %v1521_v45 = vsel %vm5447_vm0, %v6094_v41, %v1520_v27  ;;  %v5534_v13 = vsel %vm5262_vm13, %v1073_v39, %v1077_v12  ;;  %v5538_v24 = vsel %vm5447_vm0, %v3784_v17, %v1524_v11  ;;  %v6095_v60 = vrot.slane %v5076_v48, 9  ;;  %v4702_v11 = vld [vmem:[%s6033_s2 + $0x78] sm:$0xff]   ;;  %v4696_v41 = vld [vmem:[#allocation4 + $0xf0] sm:$0xff]  }
  0x7e   : > { %6093 = vst [vmem:[#allocation22_spill] sm:$0xff] %v5517_v61  ;;  %v5548_v22 = vcombine.low %v5523_v2, %v5534_v13  ;;  %v3799_v19 = vcombine.low %v1521_v45, %v5538_v24  ;;  %v6097_v16 = vrot.slane %v5086_v0, 9  ;;  %v1536_v38 = vrot.slane %v5372_v40, 5 }
  0x7f   : > { %v5544_v44 = vsel %vm5447_vm0, %v6095_v60, %v1528_v30  ;;  %v3788_v27 = vrot.slane %v5163_v49, 9  ;;  %v1540_v17 = vrot.slane %v5385_v37, 5  ;;  %v3779_v12 = vrot.slane %v5194_v46, 9 }
  0x80   : > { %6096 = vst [vmem:[#allocation23_spill] sm:$0xff] %v5548_v22  ;;  %v5555_v39 = vsel %vm5447_vm0, %v6097_v16, %v1532_v4  ;;  %4340 = vmatpush3.bf16.msra.mxu0 %v4697_v52  ;;  %v5568_v30 = vsel %vm5447_vm0, %v3787_v42, %v1536_v38  ;;  %v1496_v40 = vrot.slane %v5418_v50, 5  ;;  %v3780_v52 = vrot.slane %v5196_v26, 9  ;;  %v4698_v16 = vld [vmem:[#allocation4 + $0xe8] sm:$0xff]  }
  0x81   : > { %4324 = vmatmul.mubr.msk.bf16.gmra.mxu0 %vm886_vm4, %v5548_v22  ;;  %4341 = vmatprep.subr.bf16.mxu0 %v4699_v63  ;;  %v1500_v37 = vrot.slane %v5425_v28, 5  ;;  %v5575_v45 = vcombine.low %v5544_v44, %v5555_v39  ;;  %v5579_v4 = vsel %vm5447_vm0, %v3788_v27, %v1540_v17  ;;  %v3789_v60 = vrot.slane %v5256_v59, 9  ;;  %v494_v22 = vld [vmem:[#allocation2 + $0x40] sm:$0xf] }
  0x82   : > { %4343 = vmatprep.mubr.bf16.mxu0 %v3799_v19  ;;  %v5585_v50 = vsel %vm5447_vm0, %v3779_v12, %v1496_v40  ;;  %v1544_v19 = vrot.slane %v5442_v62, 5  ;;  %v3790_v17 = vrot.slane %v5258_v7, 9  ;;  %v1548_v12 = vrot.slane %v5457_v47, 5  ;;  %v4704_v62 = vld [vmem:[%s6033_s2 + $0x70] sm:$0xff]  }
  0x83   : > { %v5589_v28 = vsel %vm5447_vm0, %v3780_v52, %v1500_v37  ;;  %4360 = vmatmul.mubr.msk.bf16.vlgmr.msra.gmra.mxu1 %vm886_vm4, %v5517_v61  ;;  %v1504_v40 = vrot.slane %v5479_v10, 5  ;;  %v3782_v52 = vrot.slane %v5285_v36, 9  ;;  %v1508_v37 = vrot.slane %v5491_v25, 5  ;;  %v507_v25 = vld [vmem:[%s4960_s26 + $0x1c] sm:$0xf] }
  0x84   : > { %4342 = vmatpush3.bf16.msra.mxu0 %v4699_v63  ;;  %v5597_v38 = vcombine.low %v5585_v50, %v5589_v28  ;;  %4368 = vmatpush3.bf16.msra.mxu1 %v5432_v56  ;;  %v3781_v63 = vrot.slane %v5283_v35, 9  ;;  %v5615_v56 = vcombine.low %v5568_v30, %v5579_v4  ;;  %v5619_v47 = vsel %vm5447_vm0, %v3789_v60, %v1544_v19  ;;  %v364_v61 = vld [vmem:[%s4924_s20 + $0x1c] sm:$0xf]  ;;  %v635_v19 = vld [vmem:[#allocation3 + $0x40] sm:$0xf] }
  0x85   : > { %4391 = vmatprep.subr.bf16.mxu0 %v4702_v11  ;;  %4369 = vmatprep.subr.bf16.mxu1 %v4696_v41  ;;  %v5627_v10 = vsel %vm5447_vm0, %v3782_v52, %v1508_v37  ;;  %v565_v57 = vshrl.u32 %v507_v25, 16  ;;  %v3909_v60 = vcombine.low %v5483_v33, %v5504_v20  ;;  %v4700_v37 = vld [vmem:[#allocation4 + $0xe0] sm:$0xff]   ;;  %v5642_v6 = vsel %vm5447_vm0, %v3790_v17, %v1548_v12  ;;  %v4701_v12 = vld [vmem:[#allocation4 + $0xd8] sm:$0xff]  }
  0x86   : > { %6098 = vst [vmem:[#allocation24_spill] sm:$0xff] %v5597_v38  ;;  %4363 = vmatprep.mubr.msk.bf16.mxu1 %vm886_vm4, %v5597_v38  ;;  %v5623_v42 = vsel %vm5447_vm0, %v3781_v63, %v1504_v40  ;;  %v568_v38 = vshll.u32 %v507_v25, 16  ;;  %v422_v63 = vshrl.u32 %v364_v61, 16  ;;  %v425_v40 = vshll.u32 %v364_v61, 16 }
  0x87   : > { %v5632_v27 = vcombine.low %v5623_v42, %v5627_v10  ;;  %v567_v25 = vrot.slane %v565_v57, 7  ;;  %v6099_v57 = vcombine.low %v5060_v9, %v5076_v48  ;;  %v4703_v9 = vld [vmem:[#allocation4 + $0xd0] sm:$0xff]   ;;  %v4709_v48 = vld [vmem:[#allocation4 + $0x138] sm:$0xff]   ;;  %v6111_v33 = vcombine.low %v5510_v53, %v5585_v50  ;;  %v4739_v50 = vld [vmem:[#allocation4 + $0x1a0] sm:$0xff]  }
  0x88   : > { %4370 = vmatpush3.bf16.msra.mxu1 %v4696_v41  ;;  %v4706_v41 = vld [vmem:[%s6033_s2 + $0x68] sm:$0xff]   ;;  %v424_v61 = vrot.slane %v422_v63, 7  ;;  %v4734_v53 = vld [vmem:[%s6033_s2 + $0xd8] sm:$0xff]  }
  0x89   : > { %4344 = vmatmul.mubr.bf16.vlgmr.msra.gmra.mxu0 %v5575_v45  ;;  %4371 = vmatprep.subr.bf16.mxu1 %v4698_v16  ;;  %v570_v52 = vor.u32 %v568_v38, %v567_v25  ;;  %v571_v21 = vrot.slane %v567_v25, 4 }
  0x8a   : > { %4392 = vmatpush3.bf16.msra.mxu0 %v4702_v11  ;;  %4347 = vmatprep.mubr.bf16.mxu0 %v5615_v56  ;;  %v5652_v11 = vcombine.low %v5619_v47, %v5642_v6  ;;  %v427_v17 = vor.u32 %v425_v40, %v424_v61  ;;  %v428_v40 = vrot.slane %v424_v61, 4 }
  0x8b   : > { %4393 = vmatprep.subr.bf16.mxu0 %v4704_v62  ;;  %4364 = vmatmul.mubr.msk.bf16.gmra.mxu1 %vm886_vm4, %v5632_v27  ;;  %v636_v63 = vsel %vm4993_vm6, %v570_v52, %v635_v19  ;;  %v3845_v19 = vcombine.low %v5196_v26, %v5283_v35  ;;  %v4707_v52 = vld [vmem:[#allocation4 + $0xc0] sm:$0xff]   ;;  %v639_v25 = vsel %vm5150_vm12, %v571_v21, %v638_v55  ;;  %v6102_v35 = vld [vmem:[#allocation13_spill] sm:$0xff]  ;;  %v4721_v21 = vld [vmem:[#allocation4 + $0x108] sm:$0xff]  }
  0x8c   : > { %4372 = vmatpush3.bf16.msra.mxu1 %v4698_v16  ;;  %4383 = vmatprep.mubr.bf16.mxu1 %v6099_v57  ;;  %v4708_v16 = vld [vmem:[%s6033_s2 + $0x60] sm:$0xff]   ;;  %637 = vst [vmem:[#allocation3 + $0x40] sm:$0xf] %v636_v63  ;;  %v495_v38 = vsel %vm4940_vm3, %v427_v17, %v494_v22  ;;  %v4711_v22 = vld [vmem:[#allocation4 + $0x130] sm:$0xff]   ;;  %640 = vst [vmem:[#allocation3 + $0x44] sm:$0x1] %v639_v25  ;;  %v3863_v61 = vcombine.low %v6102_v35, %v5340_v43 }
  0x8d   : > { %4373 = vmatprep.subr.bf16.mxu1 %v4700_v37  ;;  %496 = vst [vmem:[#allocation2 + $0x40] sm:$0xf] %v495_v38  ;;  %v497_v57 = vld [vmem:[#allocation2 + $0x44] sm:$0x1]  ;;  %v6103_v17 = vcombine.low %v5086_v0, %v5161_v5  ;;  %v4714_v43 = vld [vmem:[%s6033_s2 + $0x88] sm:$0xff]   ;;  %v4726_v35 = vld [vmem:[%s6033_s2 + $0xb8] sm:$0xff]  }
  0x8e   : > { %4394 = vmatpush3.bf16.msra.mxu0 %v4704_v62  ;;  %v4705_v62 = vld [vmem:[#allocation4 + $0xc8] sm:$0xff]   ;;  %v498_v26 = vsel %vm5132_vm9, %v428_v40, %v497_v57 }
  0x8f   : > { %4395 = vmatprep.subr.bf16.mxu0 %v4706_v41  ;;  %499 = vst [vmem:[#allocation2 + $0x44] sm:$0x1] %v498_v26  ;;  %v6106_v25 = vld [vmem:[#allocation16_spill] sm:$0xff] }
  0x90   : > { %4374 = vmatpush3.bf16.msra.mxu1 %v4700_v37  ;;  %v6101_v37 = vcombine.low %v5004_v8, %v5194_v46  ;;  %v4710_v46 = vld [vmem:[%s6033_s2 + $0x98] sm:$0xff]   ;;  %v3876_v57 = vcombine.low %v6106_v25, %v5440_v15  ;;  %v4722_v15 = vld [vmem:[#allocation4 + $0x168] sm:$0xff]   ;;  %v4743_v25 = vld [vmem:[#allocation4 + $0x190] sm:$0xff]  }
  0x91   : > { %4348 = vmatmul.mubr.bf16.gmra.mxu0 %v5652_v11  ;;  %4375 = vmatprep.subr.bf16.mxu1 %v4701_v12 }
  0x92   : > { %4396 = vmatpush3.bf16.msra.mxu0 %v4706_v41  ;;  %4399 = vmatprep.mubr.msk.bf16.mxu0 %vm886_vm4, %v6100_v3  ;;  %v4713_v41 = vld [vmem:[#allocation4 + $0x128] sm:$0xff]  }
  0x93   : > { %4397 = vmatprep.subr.bf16.mxu0 %v4708_v16  ;;  %v5704_v38 = vld [vmem:[#allocation3 + $0x40] sm:$0xf]  ;;  %v5720_v55 = vld [vmem:[#allocation3 + $0x44] sm:$0x1] }
  0x94   : > { %4376 = vmatpush3.bf16.msra.mxu1 %v4701_v12  ;;  %v5675_v1 = vld [vmem:[#allocation2 + $0x40] sm:$0xf]  ;;  %v2105_v0 = vshrl.u32 %v5704_v38, 16  ;;  %v3834_v5 = vcombine.low %v5258_v7, %v5704_v38  ;;  %v6105_v7 = vcombine.low %v5332_v31, %v5356_v54  ;;  %v2114_v54 = vshll.u32 %v5720_v55, 16 }
  0x95   : > { %4377 = vmatprep.subr.bf16.mxu1 %v4703_v9  ;;  %v3846_v8 = vcombine.low %v5285_v36, %v5675_v1  ;;  %v4717_v36 = vld [vmem:[#allocation4 + $0x118] sm:$0xff]   ;;  %v2091_v12 = vshrl.u32 %v5675_v1, 16  ;;  %v2094_v63 = vshll.u32 %v5675_v1, 16 }
  0x96   : > { %4398 = vmatpush3.bf16.msra.mxu0 %v4708_v16  ;;  %v6104_v16 = vcombine.low %v5163_v49, %v5256_v59  ;;  %v2108_v49 = vshll.u32 %v5704_v38, 16  ;;  %v5713_v59 = vld [vmem:[#allocation2 + $0x44] sm:$0x1] }
  0x97   : > { %4407 = vmatprep.subr.bf16.mxu0 %v4709_v48  ;;  %v2093_v3 = vrot.slane %v2091_v12, 4  ;;  %v6108_v12 = vld [vmem:[#allocation14_spill] sm:$0xff] }
  0x98   : > { %4378 = vmatpush3.bf16.msra.mxu1 %v4703_v9  ;;  %v4719_v9 = vld [vmem:[#allocation4 + $0x110] sm:$0xff]  }
  0x99   : > { %4400 = vmatmul.mubr.msk.bf16.vlgmr.msra.gmra.mxu0 %vm886_vm4, %v6101_v37  ;;  %4379 = vmatprep.subr.bf16.mxu1 %v4705_v62  ;;  %v2100_v37 = vshll.u32 %v5713_v59, 16 }
  0x9a   : > { %4408 = vmatpush3.bf16.msra.mxu0 %v4709_v48  ;;  %4403 = vmatprep.mubr.msk.bf16.mxu0 %vm886_vm4, %v3845_v19  ;;  %v2096_v48 = vrot.slane %v2094_v63, 5  ;;  %v2107_v19 = vrot.slane %v2105_v0, 4  ;;  %v6109_v63 = vld [vmem:[#allocation18_spill] sm:$0xff]  ;;  %v4724_v0 = vld [vmem:[#allocation4 + $0x160] sm:$0xff]  }
  0x9b   : > { %4409 = vmatprep.subr.bf16.mxu0 %v4711_v22 }
  0x9c   : > { %4380 = vmatpush3.bf16.msra.mxu1 %v4705_v62  ;;  %v4716_v62 = vld [vmem:[%s6033_s2 + $0x80] sm:$0xff]   ;;  %v2097_v40 = vor.u32 %v2096_v48, %v2093_v3  ;;  %v4727_v3 = vld [vmem:[#allocation4 + $0x150] sm:$0xff]   ;;  %v4729_v48 = vld [vmem:[#allocation4 + $0x148] sm:$0xff]  }
  0x9d   : > { %4381 = vmatprep.subr.bf16.mxu1 %v4707_v52 }
  0x9e   : > { %4410 = vmatpush3.bf16.msra.mxu0 %v4711_v22  ;;  %v4718_v22 = vld [vmem:[#allocation4 + $0x178] sm:$0xff]   ;;  %v2098_v26 = vrot.slane %v2097_v40, 4 }
  0x9f   : > { %4411 = vmatprep.subr.bf16.mxu0 %v4713_v41  ;;  %v4741_v40 = vld [vmem:[#allocation4 + $0x198] sm:$0xff]  }
  0xa0   : > { %4382 = vmatpush3.bf16.msra.mxu1 %v4707_v52  ;;  %v2110_v52 = vrot.slane %v2108_v49, 5  ;;  %v3887_v49 = vrot.slane %v5675_v1, 9 }
  0xa1   : > { %4404 = vmatmul.mubr.msk.bf16.gmra.mxu0 %vm886_vm4, %v3846_v8  ;;  %4431 = vmatprep.subr.bf16.mxu1 %v4710_v46  ;;  %v3877_v8 = vcombine.low %v5455_v18, %v5523_v2  ;;  %v2116_v18 = vrot.slane %v2114_v54, 5  ;;  %v6117_v54 = vld [vmem:[#allocation12_spill] sm:$0xff] }
  0xa2   : > { %4412 = vmatpush3.bf16.msra.mxu0 %v4713_v41  ;;  %4423 = vmatprep.mubr.bf16.mxu0 %v3863_v61  ;;  %v4723_v41 = vld [vmem:[#allocation4 + $0x100] sm:$0xff]   ;;  %v2111_v31 = vor.u32 %v2110_v52, %v2107_v19  ;;  %v6113_v52 = vcombine.low %v5555_v39, %v5568_v30 }
  0xa3   : > { %4413 = vmatprep.subr.bf16.mxu0 %v4715_v23  ;;  %4384 = vmatmul.mubr.bf16.vlgmr.msra.gmra.mxu1 %v6103_v17  ;;  %v4731_v19 = vld [vmem:[#allocation4 + $0x140] sm:$0xff]  }
  0xa4   : > { %4432 = vmatpush3.bf16.msra.mxu1 %v4710_v46  ;;  %4387 = vmatprep.mubr.bf16.mxu1 %v6104_v16  ;;  %v2102_v46 = vrot.slane %v2100_v37, 5  ;;  %v2112_v61 = vrot.slane %v2111_v31, 4  ;;  %v6110_v16 = vcombine.low %v6108_v12, %v6109_v63  ;;  %v6114_v37 = vcombine.low %v5579_v4, %v5619_v47  ;;  %v4740_v30 = vld [vmem:[%s6033_s2 + $0xc0] sm:$0xff]   ;;  %v4745_v4 = vld [vmem:[#allocation4 + $0x188] sm:$0xff]   ;;  %v6116_v31 = vld [vmem:[#allocation10_spill] sm:$0xff] }
  0xa5   : > { %4433 = vmatprep.subr.bf16.mxu1 %v4712_v58  ;;  %v6115_v47 = vld [vmem:[#allocation7_spill] sm:$0xff]  ;;  %v4754_v12 = vld [vmem:[%s6033_s2 + $0xe8] sm:$0xff]  }
  0xa6   : > { %4414 = vmatpush3.bf16.msra.mxu0 %v4715_v23  ;;  %v4720_v23 = vld [vmem:[#allocation4 + $0x170] sm:$0xff]   ;;  %v5734_v2 = vsel %vm5262_vm13, %v2098_v26, %v2102_v46  ;;  %v4747_v26 = vld [vmem:[#allocation4 + $0x180] sm:$0xff]   ;;  %v5817_v46 = vld [vmem:[#allocation2 + $0x48] sm:$0xf] }
  0xa7   : > { %4415 = vmatprep.subr.bf16.mxu0 %v4717_v36  ;;  %v6120_v63 = vld [vmem:[#allocation15_spill] sm:$0xff] }
  0xa8   : > { %4434 = vmatpush3.bf16.msra.mxu1 %v4712_v58  ;;  %v4728_v58 = vld [vmem:[%s6033_s2 + $0xb0] sm:$0xff]  }
  0xa9   : > { %4435 = vmatprep.subr.bf16.mxu1 %v4714_v43 }
  0xaa   : > { %4416 = vmatpush3.bf16.msra.mxu0 %v4717_v36  ;;  %v6107_v36 = vld [vmem:[#allocation19_spill] sm:$0xff] }
  0xab   : > { %4417 = vmatprep.subr.bf16.mxu0 %v4719_v9  ;;  %4388 = vmatmul.mubr.bf16.gmra.mxu1 %v3834_v5  ;;  %v3865_v17 = vcombine.low %v6107_v36, %v5477_v32  ;;  %v5750_v5 = vsel %vm5262_vm13, %v2112_v61, %v2116_v18  ;;  %v4730_v32 = vld [vmem:[%s6033_s2 + $0xa8] sm:$0xff]   ;;  %v6118_v61 = vld [vmem:[#allocation9_spill] sm:$0xff]  ;;  %v4748_v18 = vld [vmem:[#allocation4 + $0x1e0] sm:$0xff]   ;;  %v2899_v36 = vshrl.u32 %v5817_v46, 16 }
  0xac   : > { %4436 = vmatpush3.bf16.msra.mxu1 %v4714_v43  ;;  %4439 = vmatprep.mubr.msk.bf16.mxu1 %vm886_vm4, %v6105_v7  ;;  %v3878_v43 = vcombine.low %v5534_v13, %v5734_v2  ;;  %v3866_v13 = vcombine.low %v5489_v14, %v5750_v5  ;;  %v4733_v14 = vld [vmem:[#allocation4 + $0x1b8] sm:$0xff]   ;;  %v6112_v7 = vld [vmem:[#allocation8_spill] sm:$0xff] }
  0xad   : > { %4437 = vmatprep.subr.bf16.mxu1 %v4716_v62 }
  0xae   : > { %4418 = vmatpush3.bf16.msra.mxu0 %v4719_v9  ;;  %v3897_v9 = vcombine.low %v5538_v24, %v5544_v44  ;;  %v4725_v24 = vld [vmem:[#allocation4 + $0x158] sm:$0xff]   ;;  %v4732_v44 = vld [vmem:[%s6033_s2 + $0xa0] sm:$0xff]  }
  0xaf   : > { %4419 = vmatprep.subr.bf16.mxu0 %v4721_v21 }
  0xb0   : > { %4438 = vmatpush3.bf16.msra.mxu1 %v4716_v62  ;;  %v4735_v62 = vld [vmem:[#allocation4 + $0x1b0] sm:$0xff]  }
  0xb1   : > { %4447 = vmatprep.subr.bf16.mxu1 %v4718_v22 }
  0xb2   : > { %4420 = vmatpush3.bf16.msra.mxu0 %v4721_v21  ;;  %v2383_v21 = vrot.slane %v5713_v59, 5  ;;  %v2388_v59 = vrot.slane %v5720_v55, 5 }
  0xb3   : > { %4421 = vmatprep.subr.bf16.mxu0 %v4723_v41  ;;  %4440 = vmatmul.mubr.msk.bf16.vlgmr.msra.gmra.mxu1 %vm886_vm4, %v3876_v57  ;;  %v4742_v57 = vld [vmem:[#allocation4 + $0x1f8] sm:$0xff]  }
  0xb4   : > { %4448 = vmatpush3.bf16.msra.mxu1 %v4718_v22  ;;  %4443 = vmatprep.mubr.msk.bf16.mxu1 %vm886_vm4, %v3877_v8  ;;  %v3911_v22 = vcombine.low %v5589_v28, %v5623_v42  ;;  %v5775_v20 = vsel %vm5447_vm0, %v3887_v49, %v2383_v21  ;;  %v3888_v28 = vrot.slane %v5704_v38, 9  ;;  %v4750_v8 = vld [vmem:[%s6033_s2 + $0xf8] sm:$0xff]   ;;  %v4753_v49 = vld [vmem:[#allocation4 + $0x1c8] sm:$0xff]  }
  0xb5   : > { %4449 = vmatprep.subr.bf16.mxu1 %v4720_v23  ;;  %v3912_v42 = vcombine.low %v5627_v10, %v5775_v20  ;;  %v4736_v10 = vld [vmem:[%s6033_s2 + $0xd0] sm:$0xff]  }
  0xb6   : > { %4422 = vmatpush3.bf16.msra.mxu0 %v4723_v41  ;;  %v5798_v55 = vsel %vm5447_vm0, %v3888_v28, %v2388_v59  ;;  %v4738_v41 = vld [vmem:[%s6033_s2 + $0xc8] sm:$0xff]   ;;  %v6122_v28 = vld [vmem:[#allocation23_spill] sm:$0xff] }
  0xb7   : > { %4471 = vmatprep.subr.bf16.mxu0 %v4726_v35  ;;  %v3900_v39 = vcombine.low %v5642_v6, %v5798_v55  ;;  %v4744_v6 = vld [vmem:[#allocation4 + $0x1f0] sm:$0xff]   ;;  %v4759_v59 = vld [vmem:[#allocation4 + $0x228] sm:$0xff]  }
  0xb8   : > { %4450 = vmatpush3.bf16.msra.mxu1 %v4720_v23  ;;  %v4746_v23 = vld [vmem:[#allocation4 + $0x1e8] sm:$0xff]  }
  0xb9   : > { %4424 = vmatmul.mubr.bf16.vlgmr.msra.gmra.mxu0 %v6110_v16  ;;  %4451 = vmatprep.subr.bf16.mxu1 %v4722_v15  ;;  %v4749_v16 = vld [vmem:[#allocation4 + $0x1d8] sm:$0xff]  }
  0xba   : > { %4472 = vmatpush3.bf16.msra.mxu0 %v4726_v35  ;;  %4427 = vmatprep.mubr.bf16.mxu0 %v3865_v17  ;;  %v4752_v35 = vld [vmem:[%s6033_s2 + $0xf0] sm:$0xff]   ;;  %v2902_v17 = vshll.u32 %v5817_v46, 16 }
  0xbb   : > { %4473 = vmatprep.subr.bf16.mxu0 %v4728_v58  ;;  %4444 = vmatmul.mubr.msk.bf16.gmra.mxu1 %vm886_vm4, %v3878_v43  ;;  %v6119_v43 = vld [vmem:[#allocation11_spill] sm:$0xff] }
  0xbc   : > { %4452 = vmatpush3.bf16.msra.mxu1 %v4722_v15  ;;  %4463 = vmatprep.mubr.bf16.mxu1 %v3897_v9  ;;  %v3938_v15 = vcombine.low %v5675_v1, %v5817_v46  ;;  %v2901_v9 = vrot.slane %v2899_v36, 4  ;;  %v3973_v36 = vrot.slane %v5817_v46, 9 }
  0xbd   : > { %4453 = vmatprep.subr.bf16.mxu1 %v4724_v0 }
  0xbe   : > { %4474 = vmatpush3.bf16.msra.mxu0 %v4728_v58  ;;  %v5825_v58 = vld [vmem:[#allocation3 + $0x48] sm:$0xf] }
  0xbf   : > { %4475 = vmatprep.subr.bf16.mxu0 %v4730_v32  ;;  %v3929_v1 = vcombine.low %v5704_v38, %v5825_v58  ;;  %v3974_v46 = vrot.slane %v5825_v58, 9 }
  0xc0   : > { %4454 = vmatpush3.bf16.msra.mxu1 %v4724_v0  ;;  %v2904_v0 = vrot.slane %v2902_v17, 5 }
  0xc1   : > { %4428 = vmatmul.mubr.bf16.gmra.mxu0 %v3866_v13  ;;  %4455 = vmatprep.subr.bf16.mxu1 %v4725_v24  ;;  %v5840_v13 = vld [vmem:[#allocation2 + $0x4c] sm:$0x1] }
  0xc2   : > { %4476 = vmatpush3.bf16.msra.mxu0 %v4730_v32  ;;  %4479 = vmatprep.mubr.msk.bf16.mxu0 %vm886_vm4, %v3909_v60  ;;  %v4737_v60 = vld [vmem:[#allocation4 + $0x1a8] sm:$0xff]   ;;  %v4756_v32 = vld [vmem:[%s6033_s2 + $0xe0] sm:$0xff]   ;;  %v2905_v38 = vor.u32 %v2904_v0, %v2901_v9  ;;  %v3173_v17 = vrot.slane %v5840_v13, 5 }
  0xc3   : > { %4477 = vmatprep.subr.bf16.mxu0 %v4732_v44 }
  0xc4   : > { %4456 = vmatpush3.bf16.msra.mxu1 %v4725_v24  ;;  %v4751_v24 = vld [vmem:[#allocation4 + $0x1d0] sm:$0xff]   ;;  %v2906_v21 = vrot.slane %v2905_v38, 4  ;;  %v3174_v9 = vsel %vm5447_vm0, %v3973_v36, %v3173_v17 }
  0xc5   : > { %4457 = vmatprep.subr.bf16.mxu1 %v4727_v3 }
  0xc6   : > { %4478 = vmatpush3.bf16.msra.mxu0 %v4732_v44  ;;  %v2908_v44 = vshll.u32 %v5840_v13, 16 }
  0xc7   : > { %4487 = vmatprep.subr.bf16.mxu0 %v4733_v14 }
  0xc8   : > { %4458 = vmatpush3.bf16.msra.mxu1 %v4727_v3  ;;  %v6121_v3 = vld [vmem:[#allocation17_spill] sm:$0xff] }
  0xc9   : > { %4480 = vmatmul.mubr.msk.bf16.vlgmr.msra.gmra.mxu0 %vm886_vm4, %v6111_v33  ;;  %4459 = vmatprep.subr.bf16.mxu1 %v4729_v48 }
  0xca   : > { %4488 = vmatpush3.bf16.msra.mxu0 %v4733_v14  ;;  %4483 = vmatprep.mubr.msk.bf16.mxu0 %vm886_vm4, %v3911_v22  ;;  %v4757_v14 = vld [vmem:[#allocation4 + $0x238] sm:$0xff]   ;;  %v2910_v22 = vrot.slane %v2908_v44, 5 }
  0xcb   : > { %4489 = vmatprep.subr.bf16.mxu0 %v4735_v62 }
  0xcc   : > { %4460 = vmatpush3.bf16.msra.mxu1 %v4729_v48  ;;  %v2913_v48 = vshrl.u32 %v5825_v58, 16 }
  0xcd   : > { %4461 = vmatprep.subr.bf16.mxu1 %v4731_v19 }
  0xce   : > { %4490 = vmatpush3.bf16.msra.mxu0 %v4735_v62  ;;  %v2916_v62 = vshll.u32 %v5825_v58, 16  ;;  %v2915_v33 = vrot.slane %v2913_v48, 4 }
  0xcf   : > { %4491 = vmatprep.subr.bf16.mxu0 %v4737_v60 }
  0xd0   : > { %4462 = vmatpush3.bf16.msra.mxu1 %v4731_v19  ;;  %v4758_v19 = vld [vmem:[#allocation4 + $0x230] sm:$0xff]  }
  0xd1   : > { %4484 = vmatmul.mubr.msk.bf16.gmra.mxu0 %vm886_vm4, %v3912_v42  ;;  %4511 = vmatprep.subr.bf16.mxu1 %v4734_v53  ;;  %v4755_v42 = vld [vmem:[#allocation4 + $0x1c0] sm:$0xff]  }
  0xd2   : > { %4492 = vmatpush3.bf16.msra.mxu0 %v4737_v60  ;;  %4503 = vmatprep.mubr.bf16.mxu0 %v6112_v7  ;;  %v2918_v60 = vrot.slane %v2916_v62, 5  ;;  %v4760_v7 = vld [vmem:[%s6033_s2 + $0x118] sm:$0xff]  }
  0xd3   : > { %4493 = vmatprep.subr.bf16.mxu0 %v4739_v50  ;;  %4464 = vmatmul.mubr.bf16.vlgmr.msra.gmra.mxu1 %v6113_v52  ;;  %v4761_v52 = vld [vmem:[#allocation4 + $0x220] sm:$0xff]  }
  0xd4   : > { %4512 = vmatpush3.bf16.msra.mxu1 %v4734_v53  ;;  %4467 = vmatprep.mubr.bf16.mxu1 %v6114_v37  ;;  %v5849_v53 = vld [vmem:[#allocation3 + $0x4c] sm:$0x1] }
  0xd5   : > { %4513 = vmatprep.subr.bf16.mxu1 %v4736_v10  ;;  %v3178_v0 = vrot.slane %v5849_v53, 5 }
  0xd6   : > { %4494 = vmatpush3.bf16.msra.mxu0 %v4739_v50  ;;  %v2911_v50 = vsel %vm5262_vm13, %v2906_v21, %v2910_v22 }
  0xd7   : > { %4495 = vmatprep.subr.bf16.mxu0 %v4741_v40  ;;  %v3179_v13 = vsel %vm5447_vm0, %v3974_v46, %v3178_v0 }
  0xd8   : > { %4514 = vmatpush3.bf16.msra.mxu1 %v4736_v10  ;;  %v2919_v10 = vor.u32 %v2918_v60, %v2915_v33 }
  0xd9   : > { %4515 = vmatprep.subr.bf16.mxu1 %v4738_v41 }
  0xda   : > { %4496 = vmatpush3.bf16.msra.mxu0 %v4741_v40  ;;  %v2922_v40 = vshll.u32 %v5849_v53, 16  ;;  %v2920_v37 = vrot.slane %v2919_v10, 4 }
  0xdb   : > { %4497 = vmatprep.subr.bf16.mxu0 %v4743_v25  ;;  %4468 = vmatmul.mubr.bf16.gmra.mxu1 %v3900_v39  ;;  %v6123_v39 = vld [vmem:[#allocation20_spill] sm:$0xff] }
  0xdc   : > { %4516 = vmatpush3.bf16.msra.mxu1 %v4738_v41  ;;  %4519 = vmatprep.mubr.msk.bf16.mxu1 %vm886_vm4, %v6115_v47  ;;  %v2924_v41 = vrot.slane %v2922_v40, 5  ;;  %v4764_v47 = vld [vmem:[%s6033_s2 + $0x108] sm:$0xff]  }
  0xdd   : > { %4517 = vmatprep.subr.bf16.mxu1 %v4740_v30 }
  0xde   : > { %4498 = vmatpush3.bf16.msra.mxu0 %v4743_v25  ;;  %v4762_v25 = vld [vmem:[%s6033_s2 + $0x110] sm:$0xff]  }
  0xdf   : > { %4499 = vmatprep.subr.bf16.mxu0 %v4745_v4 }
  0xe0   : > { %4518 = vmatpush3.bf16.msra.mxu1 %v4740_v30  ;;  %v6124_v30 = vld [vmem:[#allocation21_spill] sm:$0xff] }
  0xe1   : > { %4527 = vmatprep.subr.bf16.mxu1 %v4742_v57 }
  0xe2   : > { %4500 = vmatpush3.bf16.msra.mxu0 %v4745_v4  ;;  %v2925_v4 = vsel %vm5262_vm13, %v2920_v37, %v2924_v41 }
  0xe3   : > { %4501 = vmatprep.subr.bf16.mxu0 %v4747_v26  ;;  %4520 = vmatmul.mubr.msk.bf16.vlgmr.msra.gmra.mxu1 %vm886_vm4, %v6116_v31 }
  0xe4   : > { %4528 = vmatpush3.bf16.msra.mxu1 %v4742_v57  ;;  %4523 = vmatprep.mubr.msk.bf16.mxu1 %vm886_vm4, %v6117_v54  ;;  %v6125_v54 = vld [vmem:[#allocation22_spill] sm:$0xff] }
  0xe5   : > { %4529 = vmatprep.subr.bf16.mxu1 %v4744_v6 }
  0xe6   : > { %4502 = vmatpush3.bf16.msra.mxu0 %v4747_v26  ;;  %v4765_v26 = vld [vmem:[#allocation4 + $0x210] sm:$0xff]  }
  0xe7   : > { %4551 = vmatprep.subr.bf16.mxu0 %v4750_v8 }
  0xe8   : > { %4530 = vmatpush3.bf16.msra.mxu1 %v4744_v6  ;;  %v3955_v6 = vcombine.low %v5750_v5, %v2925_v4 }
  0xe9   : > { %4504 = vmatmul.mubr.bf16.vlgmr.msra.gmra.mxu0 %v6118_v61  ;;  %4531 = vmatprep.subr.bf16.mxu1 %v4746_v23 }
  0xea   : > { %4552 = vmatpush3.bf16.msra.mxu0 %v4750_v8  ;;  %4507 = vmatprep.mubr.bf16.mxu0 %v6119_v43  ;;  %v4767_v8 = vld [vmem:[#allocation4 + $0x208] sm:$0xff]  }
  0xeb   : > { %4553 = vmatprep.subr.bf16.mxu0 %v4752_v35  ;;  %4524 = vmatmul.mubr.msk.bf16.gmra.mxu1 %vm886_vm4, %v3938_v15  ;;  %v4768_v15 = vld [vmem:[#allocation4 + $0x200] sm:$0xff]  }
  0xec   : > { %4532 = vmatpush3.bf16.msra.mxu1 %v4746_v23  ;;  %4543 = vmatprep.mubr.bf16.mxu1 %v6120_v63 }
  0xed   : > { %4533 = vmatprep.subr.bf16.mxu1 %v4748_v18 }
  0xee   : > { %4554 = vmatpush3.bf16.msra.mxu0 %v4752_v35 }
  0xef   : > { %4555 = vmatprep.subr.bf16.mxu0 %v4754_v12 }
  0xf0   : > { %4534 = vmatpush3.bf16.msra.mxu1 %v4748_v18 }
  0xf1   : > { %4508 = vmatmul.mubr.bf16.gmra.mxu0 %v3929_v1  ;;  %4535 = vmatprep.subr.bf16.mxu1 %v4749_v16 }
  0xf2   : > { %4556 = vmatpush3.bf16.msra.mxu0 %v4754_v12  ;;  %4559 = vmatprep.mubr.msk.bf16.mxu0 %vm886_vm4, %v6121_v3 }
  0xf3   : > { %4557 = vmatprep.subr.bf16.mxu0 %v4756_v32 }
  0xf4   : > { %4536 = vmatpush3.bf16.msra.mxu1 %v4749_v16  ;;  %v6126_v16 = vld [vmem:[#allocation24_spill] sm:$0xff] }
  0xf5   : > { %4537 = vmatprep.subr.bf16.mxu1 %v4751_v24 }
  0xf6   : > { %4558 = vmatpush3.bf16.msra.mxu0 %v4756_v32  ;;  %v3992_v32 = vcombine.low %v5775_v20, %v3174_v9 }
  0xf7   : > { %4567 = vmatprep.subr.bf16.mxu0 %v4757_v14 }
  0xf8   : > { %4538 = vmatpush3.bf16.msra.mxu1 %v4751_v24 }
  0xf9   : > { %4560 = vmatmul.mubr.msk.bf16.vlgmr.msra.gmra.mxu0 %vm886_vm4, %v5463_v34  ;;  %4539 = vmatprep.subr.bf16.mxu1 %v4753_v49  ;;  %v3964_v34 = vcombine.low %v5734_v2, %v2911_v50  ;;  %v4763_v2 = vld [vmem:[#allocation4 + $0x218] sm:$0xff]  }
  0xfa   : > { %4568 = vmatpush3.bf16.msra.mxu0 %v4757_v14  ;;  %4563 = vmatprep.mubr.msk.bf16.mxu0 %vm886_vm4, %v6122_v28 }
  0xfb   : > { %4569 = vmatprep.subr.bf16.mxu0 %v4758_v19 }
  0xfc   : > { %4540 = vmatpush3.bf16.msra.mxu1 %v4753_v49 }
  0xfd   : > { %4541 = vmatprep.subr.bf16.mxu1 %v4755_v42 }
  0xfe   : > { %4570 = vmatpush3.bf16.msra.mxu0 %v4758_v19  ;;  %v4281_v57 = vpop.f32.mrf.mxu1 }
  0xff   : > { %4571 = vmatprep.subr.bf16.mxu0 %v4759_v59 }
 0x100   : > { %4542 = vmatpush3.bf16.msra.mxu1 %v4755_v42 }
 0x101   : > { %4564 = vmatmul.mubr.msk.bf16.gmra.mxu0 %vm886_vm4, %v3964_v34  ;;  %4591 = vmatprep.subr.bf16.mxu1 %v4760_v7 }
 0x102   : > { %4572 = vmatpush3.bf16.msra.mxu0 %v4759_v59  ;;  %4583 = vmatprep.mubr.bf16.mxu0 %v5575_v45  ;;  %v933_v45 = vpop.f32.mrf.mxu1 }
 0x103   : > { %4573 = vmatprep.subr.bf16.mxu0 %v4761_v52  ;;  %4544 = vmatmul.mubr.bf16.vlgmr.msra.gmra.mxu1 %v6123_v39 }
 0x104   : > { %4547 = vmatprep.mubr.bf16.mxu1 %v6124_v30  ;;  %4592 = vmatpush3.bf16.msra.mxu1 %v4760_v7  ;;  %v4282_v5 = vpop.f32.mrf.mxu1 }
 0x105   : > { %4593 = vmatprep.subr.bf16.mxu1 %v4762_v25 }
 0x106   : > { %4574 = vmatpush3.bf16.msra.mxu0 %v4761_v52  ;;  %v936_v12 = vpop.f32.mrf.mxu1 }
 0x107   : > { %4575 = vmatprep.subr.bf16.mxu0 %v4763_v2 }
 0x108   : > { %4594 = vmatpush3.bf16.msra.mxu1 %v4762_v25 }
 0x109   : > { %4595 = vmatprep.subr.bf16.mxu1 %v4764_v47 }
 0x10a   : > { %4576 = vmatpush3.bf16.msra.mxu0 %v4763_v2  ;;  %v4265_v31 = vpop.f32.mrf.mxu0 }
 0x10b   : > { %4577 = vmatprep.subr.bf16.mxu0 %v4765_v26  ;;  %4548 = vmatmul.mubr.bf16.gmra.mxu1 %v3955_v6  ;;  %v942_v23 = vadd.f32 %v4281_v57, %v4265_v31 }
 0x10c   : > { %4596 = vmatpush3.bf16.msra.mxu1 %v4764_v47  ;;  %4599 = vmatprep.mubr.msk.bf16.mxu1 %vm886_vm4, %v6125_v54  ;;  %v811_v35 = vpop.f32.mrf.mxu0 }
 0x10d   : > { %4597 = vmatprep.subr.bf16.mxu1 %v4766_v29  ;;  %v934_v61 = vadd.f32 %v933_v45, %v811_v35 }
 0x10e   : > { %4578 = vmatpush3.bf16.msra.mxu0 %v4765_v26  ;;  %v4266_v18 = vpop.f32.mrf.mxu0 }
 0x10f   : > { %4579 = vmatprep.subr.bf16.mxu0 %v4767_v8  ;;  %v945_v43 = vadd.f32 %v4282_v5, %v4266_v18 }
 0x110   : > { %4598 = vmatpush3.bf16.msra.mxu1 %v4766_v29  ;;  %v814_v1 = vpop.f32.mrf.mxu0 }
 0x111   : > { %v937_v63 = vadd.f32 %v936_v12, %v814_v1 }
 0x112   : > { %4580 = vmatpush3.bf16.msra.mxu0 %v4767_v8 }
 0x113   : > { %4581 = vmatprep.subr.bf16.mxu0 %v4768_v15  ;;  %4600 = vmatmul.mubr.msk.bf16.vlgmr.msra.gmra.mxu1 %vm886_vm4, %v6126_v16 }
 0x114   : > { %4603 = vmatprep.mubr.msk.bf16.mxu1 %vm886_vm4, %v5632_v27  ;;  %v3983_v27 = vcombine.low %v5798_v55, %v3179_v13 }
 0x116   : > { %4582 = vmatpush3.bf16.msra.mxu0 %v4768_v15 }
 0x119   : > { %4584 = vmatmul.mubr.bf16.vlgmr.msra.gmra.mxu0 %v5615_v56 }
 0x11a   : > { %4587 = vmatprep.mubr.bf16.mxu0 %v5652_v11  ;;  %v4269_v24 = vpop.f32.mrf.mxu0 }
 0x11b   : > { %4604 = vmatmul.mubr.msk.bf16.gmra.mxu1 %vm886_vm4, %v3992_v32 }
 0x11c   : > { %v827_v38 = vpop.f32.mrf.mxu0  ;;  %v4285_v44 = vpop.f32.mrf.mxu1 }
 0x11d   : > { %v958_v3 = vadd.f32 %v4285_v44, %v4269_v24 }
 0x11e   : > { %v4270_v58 = vpop.f32.mrf.mxu0  ;;  %v949_v14 = vpop.f32.mrf.mxu1 }
 0x11f   : > { %v950_v48 = vadd.f32 %v949_v14, %v827_v38 }
 0x120   : > { %v4286_v20 = vpop.f32.mrf.mxu1  ;;  %v830_v62 = vpop.f32.mrf.mxu0 }
 0x121   : > { %4588 = vmatmul.mubr.bf16.gmra.mxu0 %v3983_v27  ;;  %v961_v56 = vadd.f32 %v4286_v20, %v4270_v58  ;;  %v4770_v20 = vld [vmem:[%s6036_s5 + $0x30] sm:$0xff]  }
 0x122   : > { %v952_v49 = vpop.f32.mrf.mxu1 }
 0x123   : > { %v953_v11 = vadd.f32 %v952_v49, %v830_v62 }
 0x125   : > { %v4305_v21 = vpop.f32.mrf.mxu1 }
 0x127   : > { %v4321_v51 = vpop.f32.mrf.mxu0  ;;  %v1315_v19 = vpop.f32.mrf.mxu1 }
 0x128   : > { %v1437_v22 = vadd.f32 %v4321_v51, %v4305_v21 }
 0x129   : > { %v1428_v33 = vpop.f32.mrf.mxu0  ;;  %v4306_v55 = vpop.f32.mrf.mxu1 }
 0x12a   : > { %v1461_v60 = vadd.f32 %v1437_v22, %v942_v23  ;;  %v1429_v42 = vadd.f32 %v1428_v33, %v1315_v19  ;;  %v4771_v22 = vld [vmem:[%s6036_s5 + $0x28] sm:$0xff]  }
 0x12b   : > { %v4322_v53 = vpop.f32.mrf.mxu0  ;;  %v1318_v59 = vpop.f32.mrf.mxu1 }
 0x12c   : > { %v1459_v50 = vadd.f32 %v1429_v42, %v934_v61  ;;  %v1440_v28 = vadd.f32 %v4322_v53, %v4306_v55  ;;  %v4772_v42 = vld [vmem:[%s6036_s5 + $0x20] sm:$0xff]   ;;  %v4773_v53 = vld [vmem:[%s6036_s5 + $0x18] sm:$0xff]  }
 0x12d   : > { %v1431_v10 = vpop.f32.mrf.mxu0 }
 0x12e   : > { %v1462_v40 = vadd.f32 %v1440_v28, %v945_v43  ;;  %v1432_v34 = vadd.f32 %v1431_v10, %v1318_v59 }
 0x130   : > { %v1460_v7 = vadd.f32 %v1432_v34, %v937_v63 }
 0x13b   : > { %v4309_v52 = vpop.f32.mrf.mxu1 }
 0x13d   : > { %v1331_v37 = vpop.f32.mrf.mxu1 }
 0x13f   : > { %v4310_v41 = vpop.f32.mrf.mxu1 }
 0x141   : > { %v4325_v25 = vpop.f32.mrf.mxu0  ;;  %v1334_v39 = vpop.f32.mrf.mxu1 }
 0x142   : > { %v1453_v2 = vadd.f32 %v4325_v25, %v4309_v52 }
 0x143   : > { %v1444_v30 = vpop.f32.mrf.mxu0  ;;  %v4361_v57 = vpop.f32.mrf.mxu1 }
 0x144   : > { %v1465_v4 = vadd.f32 %v1453_v2, %v958_v3  ;;  %v1445_v47 = vadd.f32 %v1444_v30, %v1331_v37 }
 0x145   : > { %v4326_v26 = vpop.f32.mrf.mxu0  ;;  %v1787_v45 = vpop.f32.mrf.mxu1 }
 0x146   : > { %v1463_v6 = vadd.f32 %v1445_v47, %v950_v48  ;;  %v1456_v29 = vadd.f32 %v4326_v26, %v4310_v41  ;;  %v4769_v48 = vld [vmem:[%s6036_s5 + $0x38] sm:$0xff]  }
 0x147   : > { %v1447_v8 = vpop.f32.mrf.mxu0  ;;  %v4362_v23 = vpop.f32.mrf.mxu1  ;;  %4607 = vmatprep.subr.bf16.mxu1 %v4769_v48 }
 0x148   : > { %v1466_v31 = vadd.f32 %v1456_v29, %v961_v56  ;;  %v1448_v54 = vadd.f32 %v1447_v8, %v1334_v39  ;;  %4608 = vmatpush3.bf16.msra.mxu1 %v4769_v48  ;;  %v4775_v39 = vld [vmem:[%s6036_s5 + $0x8] sm:$0xff]  }
 0x149   : > { %v4345_v5 = vpop.f32.mrf.mxu0  ;;  %v1790_v61 = vpop.f32.mrf.mxu1  ;;  %4609 = vmatprep.subr.bf16.mxu1 %v4770_v20 }
 0x14a   : > { %v1464_v35 = vadd.f32 %v1448_v54, %v953_v11  ;;  %v1796_v15 = vadd.f32 %v4361_v57, %v4345_v5 }
 0x14b   : > { %v1674_v18 = vpop.f32.mrf.mxu0  ;;  %v4365_v43 = vpop.f32.mrf.mxu1 }
 0x14c   : > { %v1820_v36 = vadd.f32 %v1796_v15, %v1461_v60  ;;  %v1788_v17 = vadd.f32 %v1787_v45, %v1674_v18  ;;  %4610 = vmatpush3.bf16.msra.mxu1 %v4770_v20  ;;  %v4776_v45 = vld [vmem:[%s6036_s5] sm:$0xff]  }
 0x14d   : > { %v4346_v12 = vpop.f32.mrf.mxu0  ;;  %v1803_v16 = vpop.f32.mrf.mxu1  ;;  %4611 = vmatprep.subr.bf16.mxu1 %v4771_v22 }
 0x14e   : > { %v1818_v1 = vadd.f32 %v1788_v17, %v1459_v50  ;;  %v1799_v63 = vadd.f32 %v4362_v23, %v4346_v12 }
 0x14f   : > { %v1677_v9 = vpop.f32.mrf.mxu0  ;;  %v4366_v13 = vpop.f32.mrf.mxu1 }
 0x150   : > { %v1821_v46 = vadd.f32 %v1799_v63, %v1462_v40  ;;  %v1791_v0 = vadd.f32 %v1790_v61, %v1677_v9  ;;  %4612 = vmatpush3.bf16.msra.mxu1 %v4771_v22  ;;  %v4774_v40 = vld [vmem:[%s6036_s5 + $0x10] sm:$0xff]  }
 0x151   : > { %v4349_v32 = vpop.f32.mrf.mxu0  ;;  %v1806_v14 = vpop.f32.mrf.mxu1  ;;  %4613 = vmatprep.subr.bf16.mxu1 %v4772_v42 }
 0x152   : > { %v1819_v24 = vadd.f32 %v1791_v0, %v1460_v7  ;;  %v1812_v27 = vadd.f32 %v4365_v43, %v4349_v32 }
 0x153   : > { %v1690_v38 = vpop.f32.mrf.mxu0 }
 0x154   : > { %v1824_v44 = vadd.f32 %v1812_v27, %v1465_v4  ;;  %v1804_v3 = vadd.f32 %v1803_v16, %v1690_v38  ;;  %4614 = vmatpush3.bf16.msra.mxu1 %v4772_v42 }
 0x155   : > { %v4350_v58 = vpop.f32.mrf.mxu0  ;;  %4615 = vmatprep.subr.bf16.mxu1 %v4773_v53 }
 0x156   : > { %v1822_v62 = vadd.f32 %v1804_v3, %v1463_v6  ;;  %v1815_v56 = vadd.f32 %v4366_v13, %v4350_v58 }
 0x157   : > { %v1693_v49 = vpop.f32.mrf.mxu0 }
 0x158   : > { %v1825_v11 = vadd.f32 %v1815_v56, %v1466_v31  ;;  %v1807_v21 = vadd.f32 %v1806_v14, %v1693_v49  ;;  %4616 = vmatpush3.bf16.msra.mxu1 %v4773_v53 }
 0x159   : > { %v4401_v51 = vpop.f32.mrf.mxu0  ;;  %4617 = vmatprep.subr.bf16.mxu1 %v4774_v40 }
 0x15a   : > { %v1823_v19 = vadd.f32 %v1807_v21, %v1464_v35 }
 0x15b   : > { %v2051_v33 = vpop.f32.mrf.mxu0 }
 0x15c   : > { %4618 = vmatpush3.bf16.msra.mxu1 %v4774_v40 }
 0x15d   : > { %v4402_v60 = vpop.f32.mrf.mxu0  ;;  %4619 = vmatprep.subr.bf16.mxu1 %v4775_v39 }
 0x15f   : > { %v2054_v55 = vpop.f32.mrf.mxu0 }
 0x160   : > { %4620 = vmatpush3.bf16.msra.mxu1 %v4775_v39 }
 0x161   : > { %v4405_v28 = vpop.f32.mrf.mxu0  ;;  %4621 = vmatprep.subr.bf16.mxu1 %v4776_v45 }
 0x163   : > { %v4385_v50 = vpop.f32.mrf.mxu1  ;;  %v2067_v37 = vpop.f32.mrf.mxu0 }
 0x164   : > { %v2060_v59 = vadd.f32 %v4401_v51, %v4385_v50  ;;  %4622 = vmatpush3.bf16.msra.mxu1 %v4776_v45 }
 0x165   : > { %v1944_v10 = vpop.f32.mrf.mxu1  ;;  %v4406_v57 = vpop.f32.mrf.mxu0 }
 0x166   : > { %v5913_v34 = vadd.f32 %v2060_v59, %v1820_v36  ;;  %v2052_v7 = vadd.f32 %v2051_v33, %v1944_v10 }
 0x167   : > { %v4386_v52 = vpop.f32.mrf.mxu1  ;;  %v2070_v23 = vpop.f32.mrf.mxu0 }
 0x168   : > { %v5915_v41 = vadd.f32 %v2052_v7, %v1818_v1  ;;  %v2063_v25 = vadd.f32 %v4402_v60, %v4386_v52 }
 0x169   : > { %v1947_v2 = vpop.f32.mrf.mxu1 }
 0x16a   : > { %v5920_v30 = vadd.f32 %v2063_v25, %v1821_v46  ;;  %v2055_v4 = vadd.f32 %v2054_v55, %v1947_v2 }
 0x16b   : > { %v4389_v47 = vpop.f32.mrf.mxu1 }
 0x16c   : > { %v5922_v26 = vadd.f32 %v2055_v4, %v1819_v24  ;;  %v2076_v6 = vadd.f32 %v4405_v28, %v4389_v47 }
 0x16d   : > { %v1960_v29 = vpop.f32.mrf.mxu1 }
 0x16e   : > { %v5927_v8 = vadd.f32 %v2076_v6, %v1824_v44  ;;  %v2068_v31 = vadd.f32 %v2067_v37, %v1960_v29 }
 0x16f   : > { %v4390_v54 = vpop.f32.mrf.mxu1 }
 0x170   : > { %v5929_v5 = vadd.f32 %v2068_v31, %v1822_v62  ;;  %v2079_v35 = vadd.f32 %v4406_v57, %v4390_v54 }
 0x171   : > { %v1963_v15 = vpop.f32.mrf.mxu1 }
 0x172   : > { %v5931_v61 = vadd.f32 %v2079_v35, %v1825_v11  ;;  %v2071_v18 = vadd.f32 %v2070_v23, %v1963_v15 }
 0x173   : > { %v4441_v17 = vpop.f32.mrf.mxu1 }
 0x174   : > { %v5933_v36 = vadd.f32 %v2071_v18, %v1823_v19 }
 0x175   : > { %v2341_v12 = vpop.f32.mrf.mxu1 }
 0x177   : > { %v4442_v16 = vpop.f32.mrf.mxu1 }
 0x179   : > { %v4425_v43 = vpop.f32.mrf.mxu0  ;;  %v2344_v0 = vpop.f32.mrf.mxu1 }
 0x17b   : > { %v2235_v1 = vpop.f32.mrf.mxu0  ;;  %v4445_v13 = vpop.f32.mrf.mxu1 }
 0x17d   : > { %v4426_v63 = vpop.f32.mrf.mxu0  ;;  %v2357_v38 = vpop.f32.mrf.mxu1 }
 0x17f   : > { %v2238_v9 = vpop.f32.mrf.mxu0  ;;  %v4446_v3 = vpop.f32.mrf.mxu1 }
 0x181   : > { %v4429_v46 = vpop.f32.mrf.mxu0  ;;  %v2360_v14 = vpop.f32.mrf.mxu1 }
 0x183   : > { %v2251_v32 = vpop.f32.mrf.mxu0 }
 0x185   : > { %v4430_v24 = vpop.f32.mrf.mxu0 }
 0x187   : > { %v2254_v27 = vpop.f32.mrf.mxu0 }
 0x189   : > { %v4481_v44 = vpop.f32.mrf.mxu0 }
 0x18b   : > { %v2613_v58 = vpop.f32.mrf.mxu0 }
 0x18d   : > { %v4482_v48 = vpop.f32.mrf.mxu0 }
 0x18f   : > { %v5935_v56 = vpop.f32.mrf.mxu0 }
 0x191   : > { %v5939_v21 = vpop.f32.mrf.mxu0 }
 0x192   : > { %6127 = vst [vmem:[#allocation13_spill] sm:$0xff] %v5939_v21 }
 0x193   : > { %v4465_v20 = vpop.f32.mrf.mxu1  ;;  %v5945_v19 = vpop.f32.mrf.mxu0 }
 0x194   : > { %6130 = vst [vmem:[#allocation14_spill] sm:$0xff] %v5945_v19  ;;  %v2358_v19 = vadd.f32 %v2357_v38, %v2251_v32 }
 0x195   : > { %v2507_v62 = vpop.f32.mrf.mxu1  ;;  %v5949_v60 = vpop.f32.mrf.mxu0 }
 0x196   : > { %6132 = vst [vmem:[#allocation8_spill] sm:$0xff] %v5949_v60  ;;  %v2622_v60 = vadd.f32 %v4481_v44, %v4465_v20  ;;  %v2376_v32 = vadd.f32 %v2358_v19, %v5929_v5 }
 0x197   : > { %v4466_v49 = vpop.f32.mrf.mxu1  ;;  %v5953_v53 = vpop.f32.mrf.mxu0 }
 0x198   : > { %6134 = vst [vmem:[#allocation10_spill] sm:$0xff] %v5953_v53  ;;  %v2353_v53 = vadd.f32 %v4442_v16, %v4426_v63 }
 0x199   : > { %v5937_v11 = vpop.f32.mrf.mxu1 }
 0x19b   : > { %v5941_v51 = vpop.f32.mrf.mxu1  ;;  %v6150_v20 = vld [vmem:[#allocation14_spill] sm:$0xff] }
 0x19c   : > { %6128 = vst [vmem:[#allocation16_spill] sm:$0xff] %v5941_v51 }
 0x19d   : > { %v5943_v22 = vpop.f32.mrf.mxu1 }
 0x19e   : > { %6129 = vst [vmem:[#allocation19_spill] sm:$0xff] %v5943_v22  ;;  %v2614_v22 = vadd.f32 %v2613_v58, %v2507_v62  ;;  %v6148_v58 = vld [vmem:[#allocation13_spill] sm:$0xff] }
 0x19f   : > { %v5947_v33 = vpop.f32.mrf.mxu1 }
 0x1a0   : > { %6131 = vst [vmem:[#allocation18_spill] sm:$0xff] %v5947_v33 }
 0x1a1   : > { %v5951_v42 = vpop.f32.mrf.mxu1 }
 0x1a2   : > { %6133 = vst [vmem:[#allocation7_spill] sm:$0xff] %v5951_v42  ;;  %v2366_v42 = vadd.f32 %v4445_v13, %v4429_v46  ;;  %v2617_v13 = vadd.f32 %v5935_v56, %v5937_v11 }
 0x1a3   : > { %v4521_v55 = vpop.f32.mrf.mxu1 }
 0x1a4   : > { %v2378_v16 = vadd.f32 %v2366_v42, %v5927_v8  ;;  %v6147_v8 = vld [vmem:[#allocation16_spill] sm:$0xff] }
 0x1a5   : > { %v2859_v28 = vpop.f32.mrf.mxu1 }
 0x1a7   : > { %v4522_v40 = vpop.f32.mrf.mxu1  ;;  %v6151_v42 = vld [vmem:[#allocation18_spill] sm:$0xff] }
 0x1a9   : > { %v4505_v50 = vpop.f32.mrf.mxu0  ;;  %v2862_v37 = vpop.f32.mrf.mxu1 }
 0x1aa   : > { %v2868_v51 = vadd.f32 %v4521_v55, %v4505_v50  ;;  %v6153_v55 = vld [vmem:[#allocation7_spill] sm:$0xff] }
 0x1ab   : > { %v2764_v59 = vpop.f32.mrf.mxu0  ;;  %v5959_v2 = vpop.f32.mrf.mxu1 }
 0x1ac   : > { %6137 = vst [vmem:[#allocation11_spill] sm:$0xff] %v5959_v2 }
 0x1ad   : > { %v4506_v10 = vpop.f32.mrf.mxu0  ;;  %v5965_v47 = vpop.f32.mrf.mxu1 }
 0x1ae   : > { %6140 = vst [vmem:[#allocation23_spill] sm:$0xff] %v5965_v47  ;;  %v2350_v47 = vadd.f32 %v4441_v17, %v4425_v43  ;;  %v2375_v43 = vadd.f32 %v2353_v53, %v5920_v30  ;;  %v6154_v53 = vld [vmem:[#allocation10_spill] sm:$0xff] }
 0x1af   : > { %v2767_v7 = vpop.f32.mrf.mxu0  ;;  %v5967_v6 = vpop.f32.mrf.mxu1  ;;  %v2633_v50 = vadd.f32 %v6154_v53, %v6153_v55 }
 0x1b0   : > { %6141 = vst [vmem:[#allocation20_spill] sm:$0xff] %v5967_v6  ;;  %v2342_v6 = vadd.f32 %v2341_v12, %v2235_v1  ;;  %v2625_v12 = vadd.f32 %v4482_v48, %v4466_v49  ;;  %v2860_v1 = vadd.f32 %v2859_v28, %v2764_v59  ;;  %v6149_v48 = vld [vmem:[#allocation19_spill] sm:$0xff] }
 0x1b1   : > { %v5955_v52 = vpop.f32.mrf.mxu0  ;;  %v5969_v45 = vpop.f32.mrf.mxu1  ;;  %v2630_v5 = vadd.f32 %v6150_v20, %v6149_v48 }
 0x1b2   : > { %6135 = vst [vmem:[#allocation12_spill] sm:$0xff] %v5955_v52  ;;  %6142 = vst [vmem:[#allocation21_spill] sm:$0xff] %v5969_v45  ;;  %v2345_v45 = vadd.f32 %v2344_v0, %v2238_v9  ;;  %v2372_v17 = vadd.f32 %v2342_v6, %v5915_v41 }
 0x1b3   : > { %v5957_v25 = vpop.f32.mrf.mxu0 }
 0x1b4   : > { %6136 = vst [vmem:[#allocation9_spill] sm:$0xff] %v5957_v25  ;;  %v2373_v63 = vadd.f32 %v2345_v45, %v5922_v26 }
 0x1b5   : > { %v5961_v39 = vpop.f32.mrf.mxu0 }
 0x1b6   : > { %6138 = vst [vmem:[#allocation15_spill] sm:$0xff] %v5961_v39 }
 0x1b7   : > { %v5963_v4 = vpop.f32.mrf.mxu0 }
 0x1b8   : > { %6139 = vst [vmem:[#allocation17_spill] sm:$0xff] %v5963_v4 }
 0x1b9   : > { %v4561_v57 = vpop.f32.mrf.mxu0 }
 0x1bb   : > { %v3131_v29 = vpop.f32.mrf.mxu0  ;;  %v6157_v6 = vld [vmem:[#allocation9_spill] sm:$0xff] }
 0x1bd   : > { %v4562_v31 = vpop.f32.mrf.mxu0 }
 0x1bf   : > { %v3134_v35 = vpop.f32.mrf.mxu0 }
 0x1c1   : > { %v5971_v25 = vpop.f32.mrf.mxu0 }
 0x1c2   : > { %6143 = vst [vmem:[#allocation22_spill] sm:$0xff] %v5971_v25  ;;  %v2374_v25 = vadd.f32 %v2350_v47, %v5913_v34  ;;  %v2644_v34 = vadd.f32 %v2614_v22, %v2372_v17  ;;  %v2863_v22 = vadd.f32 %v2862_v37, %v2767_v7  ;;  %v2648_v7 = vadd.f32 %v2630_v5, %v2376_v32  ;;  %v6155_v37 = vld [vmem:[#allocation12_spill] sm:$0xff] }
 0x1c3   : > { %v4545_v54 = vpop.f32.mrf.mxu1  ;;  %v5977_v4 = vpop.f32.mrf.mxu0 }
 0x1c4   : > { %6146 = vst [vmem:[#allocation26_spill] sm:$0xff] %v5977_v4  ;;  %v2646_v9 = vadd.f32 %v2622_v60, %v2374_v25  ;;  %v3140_v46 = vadd.f32 %v4561_v57, %v4545_v54  ;;  %v2890_v62 = vadd.f32 %v2860_v1, %v2644_v34  ;;  %v6156_v57 = vld [vmem:[#allocation11_spill] sm:$0xff] }
 0x1c5   : > { %v3037_v23 = vpop.f32.mrf.mxu1  ;;  %v5983_v21 = vpop.f32.mrf.mxu0 }
 0x1c6   : > { %v2892_v38 = vadd.f32 %v2868_v51, %v2646_v9  ;;  %v3132_v44 = vadd.f32 %v3131_v29, %v3037_v23  ;;  %v6158_v29 = vld [vmem:[#allocation23_spill] sm:$0xff] }
 0x1c7   : > { %v4546_v15 = vpop.f32.mrf.mxu1  ;;  %v2876_v45 = vadd.f32 %v6158_v29, %v6157_v6 }
 0x1c8   : > { %v3164_v56 = vadd.f32 %v3140_v46, %v2892_v38  ;;  %v3143_v11 = vadd.f32 %v4562_v31, %v4546_v15  ;;  %v4001_v31 = vld [vmem:[%s6035_s4] ss:$0 sm:$0xff] }
 0x1c9   : > { %v3040_v18 = vpop.f32.mrf.mxu1  ;;  %v6160_v1 = vld [vmem:[#allocation22_spill] sm:$0xff] }
 0x1cb   : > { %v5973_v2 = vpop.f32.mrf.mxu1  ;;  %v6162_v9 = vld [vmem:[#allocation26_spill] sm:$0xff] }
 0x1cc   : > { %6144 = vst [vmem:[#allocation24_spill] sm:$0xff] %v5973_v2  ;;  %v2369_v2 = vadd.f32 %v4446_v3, %v4430_v24  ;;  %v2871_v24 = vadd.f32 %v4522_v40, %v4506_v10  ;;  %v2647_v3 = vadd.f32 %v2625_v12, %v2375_v43  ;;  %v3162_v10 = vadd.f32 %v3132_v44, %v2890_v62 }
 0x1cd   : > { %v5975_v39 = vpop.f32.mrf.mxu1  ;;  %v3135_v40 = vadd.f32 %v3134_v35, %v3040_v18 }
 0x1ce   : > { %6145 = vst [vmem:[#allocation25_spill] sm:$0xff] %v5975_v39  ;;  %v2361_v39 = vadd.f32 %v2360_v14, %v2254_v27  ;;  %v3150_v27 = vpop.f32.mrf.mxu0  ;;  %v2379_v41 = vadd.f32 %v2369_v2, %v5931_v61  ;;  %v2638_v14 = vadd.f32 %v6148_v58, %v6147_v8  ;;  %v2645_v61 = vadd.f32 %v2617_v13, %v2373_v63  ;;  %v6163_v8 = vld [vmem:[#allocation15_spill] sm:$0xff]  ;;  %v6164_v58 = vld [vmem:[#allocation20_spill] sm:$0xff] }
 0x1cf   : > { %v5979_v52 = vpop.f32.mrf.mxu1  ;;  %v2893_v28 = vadd.f32 %v2871_v24, %v2647_v3  ;;  %v2894_v3 = vadd.f32 %v2876_v45, %v2648_v7 }
 0x1d0   : > { %v2377_v30 = vadd.f32 %v2361_v39, %v5933_v36  ;;  %v6152_v36 = vld [vmem:[#allocation8_spill] sm:$0xff]  ;;  %v2650_v47 = vadd.f32 %v2638_v14, %v2378_v16  ;;  %v2891_v23 = vadd.f32 %v2863_v22, %v2645_v61  ;;  %v2887_v14 = vadd.f32 %v6164_v58, %v6163_v8 }
 0x1d1   : > { %v5981_v33 = vpop.f32.mrf.mxu1  ;;  %v2641_v51 = vadd.f32 %v6152_v36, %v6151_v42  ;;  %v3165_v15 = vadd.f32 %v3143_v11, %v2893_v28  ;;  %v3159_v11 = vadd.f32 %v5983_v21, %v5979_v52 }
 0x1d2   : > { %v2649_v43 = vadd.f32 %v2633_v50, %v2377_v30  ;;  %v3163_v34 = vadd.f32 %v3135_v40, %v2891_v23 }
 0x1d3   : > { %v4601_v4 = vpop.f32.mrf.mxu1  ;;  %v2651_v18 = vadd.f32 %v2641_v51, %v2379_v41  ;;  %v6159_v12 = vld [vmem:[#allocation24_spill] sm:$0xff]  ;;  %v6166_v41 = vld [vmem:[#allocation21_spill] sm:$0xff] }
 0x1d4   : > { %v3156_v63 = vadd.f32 %v6160_v1, %v6159_v12  ;;  %v4002_v12 = vld [vmem:[%s6037_s6] ss:$0 sm:$0xff] }
 0x1d5   : > { %v3385_v0 = vpop.f32.mrf.mxu1  ;;  %v6161_v16 = vld [vmem:[#allocation25_spill] sm:$0xff]  ;;  %v2897_v53 = vadd.f32 %v2887_v14, %v2651_v18 }
 0x1d6   : > { %v3148_v46 = vadd.f32 %v6162_v9, %v6161_v16 }
 0x1d7   : > { %v4602_v26 = vpop.f32.mrf.mxu1 }
 0x1d9   : > { %v4585_v49 = vpop.f32.mrf.mxu0  ;;  %v3388_v60 = vpop.f32.mrf.mxu1 }
 0x1da   : > { %v3394_v19 = vadd.f32 %v4601_v4, %v4585_v49  ;;  %v2884_v4 = vadd.f32 %v6156_v57, %v6155_v37 }
 0x1db   : > { %v3291_v59 = vpop.f32.mrf.mxu0  ;;  %v4605_v39 = vpop.f32.mrf.mxu1 }
 0x1dc   : > { %v3418_v25 = vadd.f32 %v3394_v19, %v3164_v56  ;;  %v3386_v2 = vadd.f32 %v3385_v0, %v3291_v59  ;;  %v2896_v44 = vadd.f32 %v2884_v4, %v2650_v47  ;;  %v3166_v56 = vadd.f32 %v3148_v46, %v2894_v3 }
 0x1dd   : > { %v4586_v54 = vpop.f32.mrf.mxu0  ;;  %v3401_v0 = vpop.f32.mrf.mxu1  ;;  %v3151_v19 = vadd.f32 %v3150_v27, %v5981_v33 }
 0x1de   : > { %v3416_v17 = vadd.f32 %v3386_v2, %v3162_v10  ;;  %v3397_v35 = vadd.f32 %v4602_v26, %v4586_v54  ;;  %v3433_v13 = vadd.f32 %v4001_v31, %v3418_v25  ;;  %v6165_v26 = vld [vmem:[#allocation17_spill] sm:$0xff]  ;;  %v3168_v22 = vadd.f32 %v3156_v63, %v2896_v44 }
 0x1df   : > { %v3294_v32 = vpop.f32.mrf.mxu0  ;;  %v2879_v30 = vadd.f32 %v6166_v41, %v6165_v26 }
 0x1e0   : > { %v3419_v24 = vadd.f32 %v3397_v35, %v3165_v15  ;;  %v3389_v38 = vadd.f32 %v3388_v60, %v3294_v32  ;;  %v3431_v20 = vadd.f32 %v4001_v31, %v3416_v17  ;;  %v4606_v60 = vpop.f32.mrf.mxu1  ;;  %v3441_v42 = vmax.f32 %v3433_v13, 0.0 }
 0x1e1   : > { %v4589_v48 = vpop.f32.mrf.mxu0  ;;  %v2895_v50 = vadd.f32 %v2879_v30, %v2649_v43 }
 0x1e2   : > { %v3434_v5 = vadd.f32 %v4001_v31, %v3419_v24  ;;  %v3417_v62 = vadd.f32 %v3389_v38, %v3163_v34  ;;  %v3410_v49 = vadd.f32 %v4605_v39, %v4589_v48  ;;  %v3439_v10 = vmax.f32 %v3431_v20, 0.0  ;;  %v3404_v47 = vpop.f32.mrf.mxu1 }
 0x1e3   : > { %v3307_v61 = vpop.f32.mrf.mxu0  ;;  %v3169_v39 = vadd.f32 %v3159_v11, %v2897_v53  ;;  %v3167_v52 = vadd.f32 %v3151_v19, %v2895_v50 }
 0x1e4   : > { %v3442_v36 = vmax.f32 %v3434_v5, 0.0  ;;  %v3432_v51 = vadd.f32 %v4001_v31, %v3417_v62  ;;  %v3402_v55 = vadd.f32 %v3401_v0, %v3307_v61  ;;  %v3422_v28 = vadd.f32 %v3410_v49, %v3168_v22 }
 0x1e5   : > { %v4590_v59 = vpop.f32.mrf.mxu0 }
 0x1e6   : > { %v3448_v40 = vpack.c.bf16 %v3442_v36, %v3441_v42  ;;  %v3440_v25 = vmax.f32 %v3432_v51, 0.0  ;;  %v3420_v2 = vadd.f32 %v3402_v55, %v3166_v56  ;;  %v3413_v7 = vadd.f32 %v4606_v60, %v4590_v59 }
 0x1e7   : > { %v3310_v21 = vpop.f32.mrf.mxu0  ;;  %v3437_v37 = vadd.f32 %v4001_v31, %v3422_v28 }
 0x1e8   : > { %v3405_v33 = vadd.f32 %v3404_v47, %v3310_v21  ;;  %v3447_v27 = vpack.c.bf16 %v3440_v25, %v3439_v10  ;;  %v3423_v57 = vadd.f32 %v3413_v7, %v3169_v39  ;;  %v3435_v4 = vadd.f32 %v4001_v31, %v3420_v2 }
 0x1e9   : > { %v3445_v54 = vmax.f32 %v3437_v37, 0.0 }
 0x1ea   : > { %v3421_v6 = vadd.f32 %v3405_v33, %v3167_v52  ;;  %4623 = vmatprep.mubr.bf16.mxu1 %v3447_v27  ;;  %v3438_v29 = vadd.f32 %v4001_v31, %v3423_v57  ;;  %v3443_v15 = vmax.f32 %v3435_v4, 0.0 }
 0x1eb   : > { %4624 = vmatmul.mubr.bf16.vlgmr.msra.gmra.mxu1 %v3448_v40 }
 0x1ec   : > { %v3436_v45 = vadd.f32 %v4001_v31, %v3421_v6  ;;  %v3446_v23 = vmax.f32 %v3438_v29, 0.0 }
 0x1ee   : > { %v3444_v17 = vmax.f32 %v3436_v45, 0.0  ;;  %v3450_v35 = vpack.c.bf16 %v3446_v23, %v3445_v54 }
 0x1f0   : > { %v3449_v18 = vpack.c.bf16 %v3444_v17, %v3443_v15 }
 0x1f2   : > { %4627 = vmatprep.mubr.bf16.mxu1 %v3449_v18 }
 0x1f3   : > { %4628 = vmatmul.mubr.bf16.gmra.mxu1 %v3450_v35 }
 0x2ab   : > { %v4625_v43 = vpop.f32.mrf.mxu1 }
 0x2ac   : > { %v3565_v16 = vadd.f32 %v4625_v43, %v4002_v12 }
 0x2ad   : > { %v3556_v1 = vpop.f32.mrf.mxu1 }
 0x2ae   : > { %v3557_v46 = vadd.f32 %v4002_v12, %v3556_v1 }
 0x2af   : > { %v4626_v63 = vpop.f32.mrf.mxu1 }
 0x2b0   : > { %v3568_v9 = vadd.f32 %v4626_v63, %v4002_v12 }
 0x2b1   : > { %v3559_v31 = vpop.f32.mrf.mxu1 }
 0x2b2   : > { %v4040_v0 = vpack.c.bf16 %v3568_v9, %v3565_v16  ;;  %v3560_v32 = vadd.f32 %v4002_v12, %v3559_v31 }
 0x2b3   : > { %v4629_v34 = vpop.f32.mrf.mxu1 }
 0x2b4   : > { %4052 = vst [vmem:[%s313_s29 + $0x8] sm:$0xff] %v4040_v0   ;;  %v4035_v13 = vpack.c.bf16 %v3560_v32, %v3557_v46  ;;  %v3581_v44 = vadd.f32 %v4629_v34, %v4002_v12 }
 0x2b5   : > { %v3572_v24 = vpop.f32.mrf.mxu1 }
 0x2b6   : > { %4036 = vst [vmem:[%s313_s29] sm:$0xff] %v4035_v13   ;;  %v3573_v58 = vadd.f32 %v4002_v12, %v3572_v24 }
 0x2b7   : > { %v4630_v38 = vpop.f32.mrf.mxu1 }
 0x2b8   : > { %v3584_v3 = vadd.f32 %v4630_v38, %v4002_v12 }
 0x2b9   : > { %v3575_v8 = vpop.f32.mrf.mxu1 }
 0x2ba   : > { %v4050_v14 = vpack.c.bf16 %v3584_v3, %v3581_v44  ;;  %v3576_v26 = vadd.f32 %v4002_v12, %v3575_v8 }
 0x2bc   : > { %4054 = vst [vmem:[%s313_s29 + $0x18] sm:$0xff] %v4050_v14   ;;  %v4045_v41 = vpack.c.bf16 %v3576_v26, %v3573_v58 }
 0x2be   : > { %4053 = vst [vmem:[%s313_s29 + $0x10] sm:$0xff] %v4045_v41  }
 0x2bf PF: > { %s18_s24 = sadd.s32 1, %s4813_s24  }
 0x2c0   : > { %p15_p1 = scmp.ge.s32.totalorder %s18_s24, 4  }
 0x2c2   :  { %17 = sbr.rel (!%p15_p1) target bundleno = 1 (0x1), region = 104 }
 0x2c7   :  { %3648 = vsyncpa [#allocation5], 1 }
 0x2c8   :  { %3650 = vsyncpa [#allocation5 + $0x1], 1 }

</bundles_post_ra>
